<compile_context>
chip_gen: v7x
topology: tpu7x:2x2x1
jax: 0.10.0
libtpu: 0.0.40
codegen_flags: <defaults>
</compile_context>

<pallas_src>
import numpy as np
import jax
import jax.numpy as jnp
from jax.experimental import pallas as pl
from jax.experimental.pallas import tpu as pltpu

# ----------------------------------------------------------------------------
# Deterministic synthetic kinematic description (stands in for the URDF).
# TODO(synk): real URDF parsing / pytorch_kinematics chain construction and
# trimesh point-cloud assets have no Pallas equivalent; structure is synthetic.
# ----------------------------------------------------------------------------
N_JOINTS = 20
ACTIVE = [0, 1, 4, 5, 8, 9, 12, 13, 16]          # 9 actuated DOFs
N_DOFS = len(ACTIVE)
MIMIC = [  # (joint_idx, source_joint_idx (active), multiplier, offset)
    (2, 1, 1.0, 0.0),
    (3, 1, 0.5, 0.0),
    (6, 5, 1.045, 0.0),
    (7, 5, 1.0, 0.0),
    (10, 9, 1.0434, 0.0),
    (11, 9, 1.0, 0.0),
    (14, 13, 1.0450, 0.0),
    (15, 13, 1.0, 0.0),
    (17, 16, 0.5, 0.0),
    (18, 16, 1.0, 0.0),
    (19, 16, 1.0, 0.0),
]
N_LINKS = N_JOINTS + 1  # base link + one link per joint

# finger chains start at joints 0, 4, 8, 12, 16 and attach to the base link
PARENT_LINK = [0 if j in (0, 4, 8, 12, 16) else j for j in range(N_JOINTS)]

_AXIS_PATTERN = [(0.0, 0.0, 1.0), (1.0, 0.0, 0.0), (0.0, 1.0, 0.0)]
AXES = [_AXIS_PATTERN[j % 3] for j in range(N_JOINTS)]

ORIGINS = []
for j in range(N_JOINTS):
    t = (0.002 * ((j % 4) + 1), -0.005 + 0.001 * j, 0.03 + 0.0015 * j)
    ORIGINS.append([
        [1.0, 0.0, 0.0, t[0]],
        [0.0, 1.0, 0.0, t[1]],
        [0.0, 0.0, 1.0, t[2]],
        [0.0, 0.0, 0.0, 1.0],
    ])
# 3x4 affine part of each (identity-rotation) joint-origin transform, as floats
ORIGINS_34 = [[[float(ORIGINS[j][i][k]) for k in range(4)] for i in range(3)]
              for j in range(N_JOINTS)]

# Per-joint mimic expansion: joint j's angle = theta[:, src_row] * mult + off
_MIMIC_BY_JOINT = {j: (src, mult, off) for (j, src, mult, off) in MIMIC}
JOINT_SOURCE = []
for j in range(N_JOINTS):
    if j in _MIMIC_BY_JOINT:
        src, mult, off = _MIMIC_BY_JOINT[j]
        JOINT_SOURCE.append((ACTIVE.index(src), float(mult), float(off)))
    else:
        JOINT_SOURCE.append((ACTIVE.index(j), 1.0, 0.0))

# Linear-map form of the mimic expansion (used only by the pure-JAX reference).
_M = np.zeros((N_DOFS, N_JOINTS), dtype=np.float32)
_OFF = np.zeros((1, N_JOINTS), dtype=np.float32)
for a_i, j in enumerate(ACTIVE):
    _M[a_i, j] = 1.0
for (j, src, mult, off) in MIMIC:
    _M[ACTIVE.index(src), j] = mult
    _OFF[0, j] = off
MIMIC_MAT = jnp.asarray(_M)
MIMIC_OFF = jnp.asarray(_OFF)


# to_mano_transform buffer (computed like the PyTorch module, but NOT applied
# in forward() -- matching the reference semantics).
def _rotvec_to_rotmat(v):
    v = np.asarray(v, np.float64)
    th = np.linalg.norm(v)
    if th < 1e-12:
        return np.eye(3, dtype=np.float32)
    k = v / th
    K = np.array([[0, -k[2], k[1]], [k[2], 0, -k[0]], [-k[1], k[0], 0]])
    R = np.eye(3) + np.sin(th) * K + (1 - np.cos(th)) * (K @ K)
    return R.astype(np.float32)


_base = np.eye(4, dtype=np.float32)
_base[:3, :] = np.array([[0.0, 0.0, -1.0, 0.128],
                         [0.0, -1.0, 0.0, -0.0075],
                         [-1.0, 0.0, 0.0, 0.0]], np.float32)
_tmp = np.eye(4, dtype=np.float32)
_tmp[:3, :3] = _rotvec_to_rotmat([0.0, -0.175, 0.0])
TO_MANO_TRANSFORM = jnp.asarray(_tmp @ _base)


# ----------------------------------------------------------------------------
# Trace-time symbolic helpers: transform entries are either Python floats
# (compile-time constants) or (8, LANES) jnp arrays.  Multiplies by 0/±1 and
# adds of 0 are folded at trace time (XLA does not fold f32 x*0.0).
# ----------------------------------------------------------------------------
def _is_const(x):
    return isinstance(x, (int, float))


def _sym_mul(a, b):
    if _is_const(a) and _is_const(b):
        return float(a) * float(b)
    if _is_const(a):
        a, b = b, a                      # put the constant second
    if _is_const(b):
        b = float(b)
        if b == 0.0:
            return 0.0
        if b == 1.0:
            return a
        if b == -1.0:
            return -a
        return a * b
    return a * b


def _sym_add(a, b):
    if _is_const(a) and _is_const(b):
        return float(a) + float(b)
    if _is_const(a):
        a, b = b, a
    if _is_const(b):
        b = float(b)
        if b == 0.0:
            return a
        return a + b
    return a + b


def _sym_compose(parent, local):
    """(parent @ local) for 3x4 affine transforms (implicit last row 0 0 0 1)."""
    out = []
    for i in range(3):
        row = []
        for k in range(4):
            acc = 0.0
            for m in range(3):
                acc = _sym_add(acc, _sym_mul(parent[i][m], local[m][k]))
            if k == 3:
                acc = _sym_add(acc, parent[i][3])
            row.append(acc)
        out.append(row)
    return out


def _sym_rot(c, s, axis):
    """Rodrigues rotation about a constant axis; one-hot axes specialized."""
    ax, ay, az = (float(axis[0]), float(axis[1]), float(axis[2]))
    if (ax, ay, az) == (1.0, 0.0, 0.0):
        return [[1.0, 0.0, 0.0], [0.0, c, -s], [0.0, s, c]]
    if (ax, ay, az) == (0.0, 1.0, 0.0):
        return [[c, 0.0, s], [0.0, 1.0, 0.0], [-s, 0.0, c]]
    if (ax, ay, az) == (0.0, 0.0, 1.0):
        return [[c, -s, 0.0], [s, c, 0.0], [0.0, 0.0, 1.0]]
    omc = 1.0 - c                        # general-axis fallback (unused here)
    return [
        [_sym_add(c, _sym_mul(omc, ax * ax)),
         _sym_add(_sym_mul(omc, ax * ay), _sym_mul(-az, s)),
         _sym_add(_sym_mul(omc, ax * az), _sym_mul(ay, s))],
        [_sym_add(_sym_mul(omc, ax * ay), _sym_mul(az, s)),
         _sym_add(c, _sym_mul(omc, ay * ay)),
         _sym_add(_sym_mul(omc, ay * az), _sym_mul(-ax, s))],
        [_sym_add(_sym_mul(omc, ax * az), _sym_mul(-ay, s)),
         _sym_add(_sym_mul(omc, ay * az), _sym_mul(ax, s)),
         _sym_add(c, _sym_mul(omc, az * az))],
    ]


# ----------------------------------------------------------------------------
# Pallas kernel.  Batch folds onto (8 sublanes, LANES lanes) per tile:
#   theta_ref: (N_DOFS*8, LANES)   row = dof*8 + sub
#   out_ref  : (N_JOINTS*12*8, LANES)   row = ((link-1)*12 + 4*i + k)*8 + sub
# ----------------------------------------------------------------------------
SUB = 8  # sublanes per vreg


def _fk_kernel(theta_ref, out_ref):
    lanes = out_ref.shape[1]
    blk = (SUB, lanes)

    # Hoisted constant vregs (JAX does not CSE broadcast_in_dim).
    const_cache = {0.0: jnp.zeros(blk, jnp.float32),
                   1.0: jnp.ones(blk, jnp.float32)}

    def as_block(v):
        if _is_const(v):
            v = float(v)
            if v not in const_cache:
                const_cache[v] = jnp.full(blk, v, jnp.float32)
            return const_cache[v]
        return v

    # Load each active-DOF slab once (full-density (8, LANES) vregs).
    dof = [theta_ref[pl.ds(a * SUB, SUB), :] for a in range(N_DOFS)]

    # sin/cos cached per unique (active_idx, mult, off) triple.
    trig_cache = {}

    def trig(ai, mult, off):
        key = (ai, mult, off)
        if key not in trig_cache:
            ang = dof[ai]
            if mult != 1.0:
                ang = ang * mult
            if off != 0.0:
                ang = ang + off
            trig_cache[key] = (jnp.cos(ang), jnp.sin(ang))
        return trig_cache[key]

    def store_affine(link, tf34):
        base = (link - 1) * 12 * SUB
        for i in range(3):
            for k in range(4):
                row0 = base + (4 * i + k) * SUB          # static, 8-aligned
                out_ref[pl.ds(row0, SUB), :] = as_block(tf34[i][k])

    identity34 = [[1.0, 0.0, 0.0, 0.0],
                  [0.0, 1.0, 0.0, 0.0],
                  [0.0, 0.0, 1.0, 0.0]]
    world = {0: identity34}

    for j in range(N_JOINTS):
        # --- mimic expansion: per-joint gather + scalar scale (no MXU) ---
        ai, mult, off = JOINT_SOURCE[j]
        c, s = trig(ai, mult, off)

        # --- local = origin @ rot ; folds to [R | t] for identity origins ---
        R = _sym_rot(c, s, AXES[j])
        rot34 = [[R[0][0], R[0][1], R[0][2], 0.0],
                 [R[1][0], R[1][1], R[1][2], 0.0],
                 [R[2][0], R[2][1], R[2][2], 0.0]]
        local = _sym_compose(ORIGINS_34[j], rot34)

        # --- world = parent_world @ local ; stream to out_ref immediately ---
        w = _sym_compose(world[PARENT_LINK[j]], local)
        world[j + 1] = w
        store_affine(j + 1, w)


def svh_hand_forward(theta):
    """theta: (B, N_DOFS) float32 -> (B, N_LINKS, 4, 4) link-to-base transforms."""
    batch = theta.shape[0]

    # Lane width per tile (tile covers 8*lanes batch elems).  Capped so that
    # the double-buffered output block (1920 x lanes x 4B x 2) stays < ~4 MiB,
    # comfortably inside the default scoped-VMEM limit on every generation.
    lanes = -(-batch // SUB)
    lanes = ((lanes + 127) // 128) * 128
    lanes = max(128, min(256, lanes))
    tile_b = SUB * lanes
    g = -(-batch // tile_b)
    bpad = g * tile_b

    theta_p = jnp.pad(theta.astype(jnp.float32), ((0, bpad - batch), (0, 0)))
    # batch b = gi*tile_b + sub*lanes + lane  ->  row dof*8+sub, col gi*lanes+lane
    x = (theta_p.reshape(g, SUB, lanes, N_DOFS)
         .transpose(3, 1, 0, 2)
         .reshape(N_DOFS * SUB, g * lanes))

    rows = N_JOINTS * 12 * SUB           # 1920
    out = pl.pallas_call(
        _fk_kernel,
        out_shape=jax.ShapeDtypeStruct((rows, g * lanes), jnp.float32),
        grid=(g,),
        in_specs=[pl.BlockSpec((N_DOFS * SUB, lanes), lambda i: (0, i))],
        out_specs=pl.BlockSpec((rows, lanes), lambda i: (0, i)),
        compiler_params=pltpu.CompilerParams(
            dimension_semantics=("parallel",)),   # megacore where available
    )(x)

    # rows = r*8 + sub with r = (link-1)*12 + 4*i + k ; cols = gi*lanes + lane
    aff = (out.reshape(N_JOINTS * 12, SUB, g, lanes)
           .transpose(2, 1, 3, 0)
           .reshape(bpad, N_JOINTS * 12))[:batch].reshape(batch, N_JOINTS, 3, 4)

    # Constant homogeneous row and base-link identity are appended outside the
    # kernel (they are batch-independent constants).
    last = jnp.broadcast_to(
        jnp.asarray([0.0, 0.0, 0.0, 1.0], jnp.float32).reshape(1, 1, 1, 4),
        (batch, N_JOINTS, 1, 4))
    links = jnp.concatenate([aff, last], axis=2)          # (B, 20, 4, 4)
    base = jnp.broadcast_to(jnp.eye(4, dtype=jnp.float32).reshape(1, 1, 4, 4),
                            (batch, 1, 4, 4))
    return jnp.concatenate([base, links], axis=1)         # (B, 21, 4, 4)


# ----------------------------------------------------------------------------
# Pure-JAX reference (same math) used to sanity-check the kernel.
# ----------------------------------------------------------------------------
def svh_hand_forward_ref(theta):
    tc = theta @ MIMIC_MAT + MIMIC_OFF
    batch = theta.shape[0]
    world = [jnp.broadcast_to(jnp.eye(4, dtype=jnp.float32), (batch, 4, 4))]
    for j in range(N_JOINTS):
        ang = tc[:, j]
        c, s = jnp.cos(ang), jnp.sin(ang)
        ax, ay, az = AXES[j]
        omc = 1.0 - c
        R = jnp.stack([
            jnp.stack([c + omc * ax * ax, omc * ax * ay - s * az, omc * ax * az + s * ay], -1),
            jnp.stack([omc * ax * ay + s * az, c + omc * ay * ay, omc * ay * az - s * ax], -1),
            jnp.stack([omc * ax * az - s * ay, omc * ay * az + s * ax, c + omc * az * az], -1),
        ], -2)
        rot4 = jnp.zeros((batch, 4, 4), jnp.float32)
        rot4 = rot4.at[:, :3, :3].set(R).at[:, 3, 3].set(1.0)
        local = jnp.asarray(ORIGINS[j], jnp.float32)[None] @ rot4
        world.append(world[PARENT_LINK[j]] @ local)
    return jnp.stack(world, axis=1)


if __name__ == "__main__":
    key = jax.random.PRNGKey(0)
    batch = 2
    # theta ~ plausible joint-angle range, shape (B, 9) like the PyTorch module.
    theta = jax.random.uniform(key, (batch, N_DOFS), jnp.float32, minval=-0.3, maxval=0.8)

    out = jax.jit(svh_hand_forward)(theta)
    out = jax.block_until_ready(out)

    ref = jax.block_until_ready(svh_hand_forward_ref(theta))
    assert out.shape == (batch, N_LINKS, 4, 4)
    np.testing.assert_allclose(np.asarray(out), np.asarray(ref), atol=1e-4, rtol=1e-4)

    print("KERNEL_OK")
</pallas_src>

<mosaic_0001>
module attributes {stable_mosaic.version = 11 : i64} {
  func.func @_fk_kernel(%arg0: i32, %arg1: memref<72x128xf32, #tpu.memory_space<vmem>>, %arg2: memref<1920x128xf32, #tpu.memory_space<vmem>>) attributes {dimension_semantics = [#tpu.dimension_semantics<parallel>], iteration_bounds = array<i64: 1>, scalar_prefetch = 0 : i64, scratch_operands = 0 : i64, tpu.core_type = #tpu.core_type<tc>, window_params = [{transform_indices = @transform_0, window_bounds = array<i64: 72, 128>}, {transform_indices = @transform_1, window_bounds = array<i64: 1920, 128>}]} {
    %cst = arith.constant 0.000000e+00 : f32
    %0 = vector.broadcast %cst : f32 to vector<8x128xf32>
    %cst_0 = arith.constant 1.000000e+00 : f32
    %1 = vector.broadcast %cst_0 : f32 to vector<8x128xf32>
    %c0 = arith.constant 0 : index
    %c0_1 = arith.constant 0 : index
    %2 = vector.load %arg1[%c0, %c0_1] : memref<72x128xf32, #tpu.memory_space<vmem>>, vector<8x128xf32>
    %c8 = arith.constant 8 : index
    %c0_2 = arith.constant 0 : index
    %3 = vector.load %arg1[%c8, %c0_2] : memref<72x128xf32, #tpu.memory_space<vmem>>, vector<8x128xf32>
    %c16 = arith.constant 16 : index
    %c0_3 = arith.constant 0 : index
    %4 = vector.load %arg1[%c16, %c0_3] : memref<72x128xf32, #tpu.memory_space<vmem>>, vector<8x128xf32>
    %c24 = arith.constant 24 : index
    %c0_4 = arith.constant 0 : index
    %5 = vector.load %arg1[%c24, %c0_4] : memref<72x128xf32, #tpu.memory_space<vmem>>, vector<8x128xf32>
    %c32 = arith.constant 32 : index
    %c0_5 = arith.constant 0 : index
    %6 = vector.load %arg1[%c32, %c0_5] : memref<72x128xf32, #tpu.memory_space<vmem>>, vector<8x128xf32>
    %c40 = arith.constant 40 : index
    %c0_6 = arith.constant 0 : index
    %7 = vector.load %arg1[%c40, %c0_6] : memref<72x128xf32, #tpu.memory_space<vmem>>, vector<8x128xf32>
    %c48 = arith.constant 48 : index
    %c0_7 = arith.constant 0 : index
    %8 = vector.load %arg1[%c48, %c0_7] : memref<72x128xf32, #tpu.memory_space<vmem>>, vector<8x128xf32>
    %c56 = arith.constant 56 : index
    %c0_8 = arith.constant 0 : index
    %9 = vector.load %arg1[%c56, %c0_8] : memref<72x128xf32, #tpu.memory_space<vmem>>, vector<8x128xf32>
    %c64 = arith.constant 64 : index
    %c0_9 = arith.constant 0 : index
    %10 = vector.load %arg1[%c64, %c0_9] : memref<72x128xf32, #tpu.memory_space<vmem>>, vector<8x128xf32>
    %11 = math.cos %2 : vector<8x128xf32>
    %12 = math.sin %2 : vector<8x128xf32>
    %cst_10 = arith.constant 0.000000e+00 : f32
    %13 = vector.broadcast %cst_10 : f32 to vector<8x128xf32>
    %14 = arith.subf %13, %12 : vector<8x128xf32>
    %c0_11 = arith.constant 0 : index
    %c0_12 = arith.constant 0 : index
    %15 = vector.load %arg2[%c0_11, %c0_12] : memref<1920x128xf32, #tpu.memory_space<vmem>>, vector<8x128xf32>
    tpu.vector_store %arg2[%c0_11, %c0_12], %11 {strides = array<i32>} : memref<1920x128xf32, #tpu.memory_space<vmem>>, vector<8x128xf32>,
    %c8_13 = arith.constant 8 : index
    %c0_14 = arith.constant 0 : index
    %16 = vector.load %arg2[%c8_13, %c0_14] : memref<1920x128xf32, #tpu.memory_space<vmem>>, vector<8x128xf32>
    tpu.vector_store %arg2[%c8_13, %c0_14], %14 {strides = array<i32>} : memref<1920x128xf32, #tpu.memory_space<vmem>>, vector<8x128xf32>,
    %c16_15 = arith.constant 16 : index
    %c0_16 = arith.constant 0 : index
    %17 = vector.load %arg2[%c16_15, %c0_16] : memref<1920x128xf32, #tpu.memory_space<vmem>>, vector<8x128xf32>
    tpu.vector_store %arg2[%c16_15, %c0_16], %0 {strides = array<i32>} : memref<1920x128xf32, #tpu.memory_space<vmem>>, vector<8x128xf32>,
    %cst_17 = arith.constant 2.000000e-03 : f32
    %18 = vector.broadcast %cst_17 : f32 to vector<8x128xf32>
    %c24_18 = arith.constant 24 : index
    %c0_19 = arith.constant 0 : index
    %19 = vector.load %arg2[%c24_18, %c0_19] : memref<1920x128xf32, #tpu.memory_space<vmem>>, vector<8x128xf32>
    tpu.vector_store %arg2[%c24_18, %c0_19], %18 {strides = array<i32>} : memref<1920x128xf32, #tpu.memory_space<vmem>>, vector<8x128xf32>,
    %c32_20 = arith.constant 32 : index
    %c0_21 = arith.constant 0 : index
    %20 = vector.load %arg2[%c32_20, %c0_21] : memref<1920x128xf32, #tpu.memory_space<vmem>>, vector<8x128xf32>
    tpu.vector_store %arg2[%c32_20, %c0_21], %12 {strides = array<i32>} : memref<1920x128xf32, #tpu.memory_space<vmem>>, vector<8x128xf32>,
    %c40_22 = arith.constant 40 : index
    %c0_23 = arith.constant 0 : index
    %21 = vector.load %arg2[%c40_22, %c0_23] : memref<1920x128xf32, #tpu.memory_space<vmem>>, vector<8x128xf32>
    tpu.vector_store %arg2[%c40_22, %c0_23], %11 {strides = array<i32>} : memref<1920x128xf32, #tpu.memory_space<vmem>>, vector<8x128xf32>,
    %c48_24 = arith.constant 48 : index
    %c0_25 = arith.constant 0 : index
    %22 = vector.load %arg2[%c48_24, %c0_25] : memref<1920x128xf32, #tpu.memory_space<vmem>>, vector<8x128xf32>
    tpu.vector_store %arg2[%c48_24, %c0_25], %0 {strides = array<i32>} : memref<1920x128xf32, #tpu.memory_space<vmem>>, vector<8x128xf32>,
    %cst_26 = arith.constant -5.000000e-03 : f32
    %23 = vector.broadcast %cst_26 : f32 to vector<8x128xf32>
    %c56_27 = arith.constant 56 : index
    %c0_28 = arith.constant 0 : index
    %24 = vector.load %arg2[%c56_27, %c0_28] : memref<1920x128xf32, #tpu.memory_space<vmem>>, vector<8x128xf32>
    tpu.vector_store %arg2[%c56_27, %c0_28], %23 {strides = array<i32>} : memref<1920x128xf32, #tpu.memory_space<vmem>>, vector<8x128xf32>,
    %c64_29 = arith.constant 64 : index
    %c0_30 = arith.constant 0 : index
    %25 = vector.load %arg2[%c64_29, %c0_30] : memref<1920x128xf32, #tpu.memory_space<vmem>>, vector<8x128xf32>
    tpu.vector_store %arg2[%c64_29, %c0_30], %0 {strides = array<i32>} : memref<1920x128xf32, #tpu.memory_space<vmem>>, vector<8x128xf32>,
    %c72 = arith.constant 72 : index
    %c0_31 = arith.constant 0 : index
    %26 = vector.load %arg2[%c72, %c0_31] : memref<1920x128xf32, #tpu.memory_space<vmem>>, vector<8x128xf32>
    tpu.vector_store %arg2[%c72, %c0_31], %0 {strides = array<i32>} : memref<1920x128xf32, #tpu.memory_space<vmem>>, vector<8x128xf32>,
    %c80 = arith.constant 80 : index
    %c0_32 = arith.constant 0 : index
    %27 = vector.load %arg2[%c80, %c0_32] : memref<1920x128xf32, #tpu.memory_space<vmem>>, vector<8x128xf32>
    tpu.vector_store %arg2[%c80, %c0_32], %1 {strides = array<i32>} : memref<1920x128xf32, #tpu.memory_space<vmem>>, vector<8x128xf32>,
    %cst_33 = arith.constant 3.000000e-02 : f32
    %28 = vector.broadcast %cst_33 : f32 to vector<8x128xf32>
    %c88 = arith.constant 88 : index
    %c0_34 = arith.constant 0 : index
    %29 = vector.load %arg2[%c88, %c0_34] : memref<1920x128xf32, #tpu.memory_space<vmem>>, vector<8x128xf32>
    tpu.vector_store %arg2[%c88, %c0_34], %28 {strides = array<i32>} : memref<1920x128xf32, #tpu.memory_space<vmem>>, vector<8x128xf32>,
    %30 = math.cos %3 : vector<8x128xf32>
    %31 = math.sin %3 : vector<8x128xf32>
    %cst_35 = arith.constant 0.000000e+00 : f32
    %32 = vector.broadcast %cst_35 : f32 to vector<8x128xf32>
    %33 = arith.subf %32, %31 : vector<8x128xf32>
    %34 = arith.mulf %14, %30 : vector<8x128xf32>
    %35 = arith.mulf %14, %33 : vector<8x128xf32>
    %cst_36 = arith.constant 4.000000e-03 : f32
    %36 = vector.broadcast %cst_36 : f32 to vector<8x128xf32>
    %37 = arith.mulf %11, %36 : vector<8x128xf32>
    %cst_37 = arith.constant -4.000000e-03 : f32
    %38 = vector.broadcast %cst_37 : f32 to vector<8x128xf32>
    %39 = arith.mulf %14, %38 : vector<8x128xf32>
    %40 = arith.addf %37, %39 : vector<8x128xf32>
    %cst_38 = arith.constant 2.000000e-03 : f32
    %41 = vector.broadcast %cst_38 : f32 to vector<8x128xf32>
    %42 = arith.addf %40, %41 : vector<8x128xf32>
    %43 = arith.mulf %11, %30 : vector<8x128xf32>
    %44 = arith.mulf %11, %33 : vector<8x128xf32>
    %cst_39 = arith.constant 4.000000e-03 : f32
    %45 = vector.broadcast %cst_39 : f32 to vector<8x128xf32>
    %46 = arith.mulf %12, %45 : vector<8x128xf32>
    %cst_40 = arith.constant -4.000000e-03 : f32
    %47 = vector.broadcast %cst_40 : f32 to vector<8x128xf32>
    %48 = arith.mulf %11, %47 : vector<8x128xf32>
    %49 = arith.addf %46, %48 : vector<8x128xf32>
    %cst_41 = arith.constant -5.000000e-03 : f32
    %50 = vector.broadcast %cst_41 : f32 to vector<8x128xf32>
    %51 = arith.addf %49, %50 : vector<8x128xf32>
    %c96 = arith.constant 96 : index
    %c0_42 = arith.constant 0 : index
    %52 = vector.load %arg2[%c96, %c0_42] : memref<1920x128xf32, #tpu.memory_space<vmem>>, vector<8x128xf32>
    tpu.vector_store %arg2[%c96, %c0_42], %11 {strides = array<i32>} : memref<1920x128xf32, #tpu.memory_space<vmem>>, vector<8x128xf32>,
    %c104 = arith.constant 104 : index
    %c0_43 = arith.constant 0 : index
    %53 = vector.load %arg2[%c104, %c0_43] : memref<1920x128xf32, #tpu.memory_space<vmem>>, vector<8x128xf32>
    tpu.vector_store %arg2[%c104, %c0_43], %34 {strides = array<i32>} : memref<1920x128xf32, #tpu.memory_space<vmem>>, vector<8x128xf32>,
    %c112 = arith.constant 112 : index
    %c0_44 = arith.constant 0 : index
    %54 = vector.load %arg2[%c112, %c0_44] : memref<1920x128xf32, #tpu.memory_space<vmem>>, vector<8x128xf32>
    tpu.vector_store %arg2[%c112, %c0_44], %35 {strides = array<i32>} : memref<1920x128xf32, #tpu.memory_space<vmem>>, vector<8x128xf32>,
    %c120 = arith.constant 120 : index
    %c0_45 = arith.constant 0 : index
    %55 = vector.load %arg2[%c120, %c0_45] : memref<1920x128xf32, #tpu.memory_space<vmem>>, vector<8x128xf32>
    tpu.vector_store %arg2[%c120, %c0_45], %42 {strides = array<i32>} : memref<1920x128xf32, #tpu.memory_space<vmem>>, vector<8x128xf32>,
    %c128 = arith.constant 128 : index
    %c0_46 = arith.constant 0 : index
    %56 = vector.load %arg2[%c128, %c0_46] : memref<1920x128xf32, #tpu.memory_space<vmem>>, vector<8x128xf32>
    tpu.vector_store %arg2[%c128, %c0_46], %12 {strides = array<i32>} : memref<1920x128xf32, #tpu.memory_space<vmem>>, vector<8x128xf32>,
    %c136 = arith.constant 136 : index
    %c0_47 = arith.constant 0 : index
    %57 = vector.load %arg2[%c136, %c0_47] : memref<1920x128xf32, #tpu.memory_space<vmem>>, vector<8x128xf32>
    tpu.vector_store %arg2[%c136, %c0_47], %43 {strides = array<i32>} : memref<1920x128xf32, #tpu.memory_space<vmem>>, vector<8x128xf32>,
    %c144 = arith.constant 144 : index
    %c0_48 = arith.constant 0 : index
    %58 = vector.load %arg2[%c144, %c0_48] : memref<1920x128xf32, #tpu.memory_space<vmem>>, vector<8x128xf32>
    tpu.vector_store %arg2[%c144, %c0_48], %44 {strides = array<i32>} : memref<1920x128xf32, #tpu.memory_space<vmem>>, vector<8x128xf32>,
    %c152 = arith.constant 152 : index
    %c0_49 = arith.constant 0 : index
    %59 = vector.load %arg2[%c152, %c0_49] : memref<1920x128xf32, #tpu.memory_space<vmem>>, vector<8x128xf32>
    tpu.vector_store %arg2[%c152, %c0_49], %51 {strides = array<i32>} : memref<1920x128xf32, #tpu.memory_space<vmem>>, vector<8x128xf32>,
    %c160 = arith.constant 160 : index
    %c0_50 = arith.constant 0 : index
    %60 = vector.load %arg2[%c160, %c0_50] : memref<1920x128xf32, #tpu.memory_space<vmem>>, vector<8x128xf32>
    tpu.vector_store %arg2[%c160, %c0_50], %0 {strides = array<i32>} : memref<1920x128xf32, #tpu.memory_space<vmem>>, vector<8x128xf32>,
    %c168 = arith.constant 168 : index
    %c0_51 = arith.constant 0 : index
    %61 = vector.load %arg2[%c168, %c0_51] : memref<1920x128xf32, #tpu.memory_space<vmem>>, vector<8x128xf32>
    tpu.vector_store %arg2[%c168, %c0_51], %31 {strides = array<i32>} : memref<1920x128xf32, #tpu.memory_space<vmem>>, vector<8x128xf32>,
    %c176 = arith.constant 176 : index
    %c0_52 = arith.constant 0 : index
    %62 = vector.load %arg2[%c176, %c0_52] : memref<1920x128xf32, #tpu.memory_space<vmem>>, vector<8x128xf32>
    tpu.vector_store %arg2[%c176, %c0_52], %30 {strides = array<i32>} : memref<1920x128xf32, #tpu.memory_space<vmem>>, vector<8x128xf32>,
    %cst_53 = arith.constant 6.150000e-02 : f32
    %63 = vector.broadcast %cst_53 : f32 to vector<8x128xf32>
    %c184 = arith.constant 184 : index
    %c0_54 = arith.constant 0 : index
    %64 = vector.load %arg2[%c184, %c0_54] : memref<1920x128xf32, #tpu.memory_space<vmem>>, vector<8x128xf32>
    tpu.vector_store %arg2[%c184, %c0_54], %63 {strides = array<i32>} : memref<1920x128xf32, #tpu.memory_space<vmem>>, vector<8x128xf32>,
    %cst_55 = arith.constant 0.000000e+00 : f32
    %65 = vector.broadcast %cst_55 : f32 to vector<8x128xf32>
    %66 = arith.subf %65, %31 : vector<8x128xf32>
    %67 = arith.mulf %11, %30 : vector<8x128xf32>
    %68 = arith.mulf %35, %66 : vector<8x128xf32>
    %69 = arith.addf %67, %68 : vector<8x128xf32>
    %70 = arith.mulf %11, %31 : vector<8x128xf32>
    %71 = arith.mulf %35, %30 : vector<8x128xf32>
    %72 = arith.addf %70, %71 : vector<8x128xf32>
    %cst_56 = arith.constant 6.000000e-03 : f32
    %73 = vector.broadcast %cst_56 : f32 to vector<8x128xf32>
    %74 = arith.mulf %11, %73 : vector<8x128xf32>
    %cst_57 = arith.constant -3.000000e-03 : f32
    %75 = vector.broadcast %cst_57 : f32 to vector<8x128xf32>
    %76 = arith.mulf %34, %75 : vector<8x128xf32>
    %77 = arith.addf %74, %76 : vector<8x128xf32>
    %cst_58 = arith.constant 3.300000e-02 : f32
    %78 = vector.broadcast %cst_58 : f32 to vector<8x128xf32>
    %79 = arith.mulf %35, %78 : vector<8x128xf32>
    %80 = arith.addf %77, %79 : vector<8x128xf32>
    %81 = arith.addf %80, %42 : vector<8x128xf32>
    %82 = arith.mulf %12, %30 : vector<8x128xf32>
    %83 = arith.mulf %44, %66 : vector<8x128xf32>
    %84 = arith.addf %82, %83 : vector<8x128xf32>
    %85 = arith.mulf %12, %31 : vector<8x128xf32>
    %86 = arith.mulf %44, %30 : vector<8x128xf32>
    %87 = arith.addf %85, %86 : vector<8x128xf32>
    %cst_59 = arith.constant 6.000000e-03 : f32
    %88 = vector.broadcast %cst_59 : f32 to vector<8x128xf32>
    %89 = arith.mulf %12, %88 : vector<8x128xf32>
    %cst_60 = arith.constant -3.000000e-03 : f32
    %90 = vector.broadcast %cst_60 : f32 to vector<8x128xf32>
    %91 = arith.mulf %43, %90 : vector<8x128xf32>
    %92 = arith.addf %89, %91 : vector<8x128xf32>
    %cst_61 = arith.constant 3.300000e-02 : f32
    %93 = vector.broadcast %cst_61 : f32 to vector<8x128xf32>
    %94 = arith.mulf %44, %93 : vector<8x128xf32>
    %95 = arith.addf %92, %94 : vector<8x128xf32>
    %96 = arith.addf %95, %51 : vector<8x128xf32>
    %97 = arith.mulf %30, %66 : vector<8x128xf32>
    %98 = arith.mulf %30, %30 : vector<8x128xf32>
    %cst_62 = arith.constant -3.000000e-03 : f32
    %99 = vector.broadcast %cst_62 : f32 to vector<8x128xf32>
    %100 = arith.mulf %31, %99 : vector<8x128xf32>
    %cst_63 = arith.constant 3.300000e-02 : f32
    %101 = vector.broadcast %cst_63 : f32 to vector<8x128xf32>
    %102 = arith.mulf %30, %101 : vector<8x128xf32>
    %103 = arith.addf %100, %102 : vector<8x128xf32>
    %cst_64 = arith.constant 6.150000e-02 : f32
    %104 = vector.broadcast %cst_64 : f32 to vector<8x128xf32>
    %105 = arith.addf %103, %104 : vector<8x128xf32>
    %c192 = arith.constant 192 : index
    %c0_65 = arith.constant 0 : index
    %106 = vector.load %arg2[%c192, %c0_65] : memref<1920x128xf32, #tpu.memory_space<vmem>>, vector<8x128xf32>
    tpu.vector_store %arg2[%c192, %c0_65], %69 {strides = array<i32>} : memref<1920x128xf32, #tpu.memory_space<vmem>>, vector<8x128xf32>,
    %c200 = arith.constant 200 : index
    %c0_66 = arith.constant 0 : index
    %107 = vector.load %arg2[%c200, %c0_66] : memref<1920x128xf32, #tpu.memory_space<vmem>>, vector<8x128xf32>
    tpu.vector_store %arg2[%c200, %c0_66], %34 {strides = array<i32>} : memref<1920x128xf32, #tpu.memory_space<vmem>>, vector<8x128xf32>,
    %c208 = arith.constant 208 : index
    %c0_67 = arith.constant 0 : index
    %108 = vector.load %arg2[%c208, %c0_67] : memref<1920x128xf32, #tpu.memory_space<vmem>>, vector<8x128xf32>
    tpu.vector_store %arg2[%c208, %c0_67], %72 {strides = array<i32>} : memref<1920x128xf32, #tpu.memory_space<vmem>>, vector<8x128xf32>,
    %c216 = arith.constant 216 : index
    %c0_68 = arith.constant 0 : index
    %109 = vector.load %arg2[%c216, %c0_68] : memref<1920x128xf32, #tpu.memory_space<vmem>>, vector<8x128xf32>
    tpu.vector_store %arg2[%c216, %c0_68], %81 {strides = array<i32>} : memref<1920x128xf32, #tpu.memory_space<vmem>>, vector<8x128xf32>,
    %c224 = arith.constant 224 : index
    %c0_69 = arith.constant 0 : index
    %110 = vector.load %arg2[%c224, %c0_69] : memref<1920x128xf32, #tpu.memory_space<vmem>>, vector<8x128xf32>
    tpu.vector_store %arg2[%c224, %c0_69], %84 {strides = array<i32>} : memref<1920x128xf32, #tpu.memory_space<vmem>>, vector<8x128xf32>,
    %c232 = arith.constant 232 : index
    %c0_70 = arith.constant 0 : index
    %111 = vector.load %arg2[%c232, %c0_70] : memref<1920x128xf32, #tpu.memory_space<vmem>>, vector<8x128xf32>
    tpu.vector_store %arg2[%c232, %c0_70], %43 {strides = array<i32>} : memref<1920x128xf32, #tpu.memory_space<vmem>>, vector<8x128xf32>,
    %c240 = arith.constant 240 : index
    %c0_71 = arith.constant 0 : index
    %112 = vector.load %arg2[%c240, %c0_71] : memref<1920x128xf32, #tpu.memory_space<vmem>>, vector<8x128xf32>
    tpu.vector_store %arg2[%c240, %c0_71], %87 {strides = array<i32>} : memref<1920x128xf32, #tpu.memory_space<vmem>>, vector<8x128xf32>,
    %c248 = arith.constant 248 : index
    %c0_72 = arith.constant 0 : index
    %113 = vector.load %arg2[%c248, %c0_72] : memref<1920x128xf32, #tpu.memory_space<vmem>>, vector<8x128xf32>
    tpu.vector_store %arg2[%c248, %c0_72], %96 {strides = array<i32>} : memref<1920x128xf32, #tpu.memory_space<vmem>>, vector<8x128xf32>,
    %c256 = arith.constant 256 : index
    %c0_73 = arith.constant 0 : index
    %114 = vector.load %arg2[%c256, %c0_73] : memref<1920x128xf32, #tpu.memory_space<vmem>>, vector<8x128xf32>
    tpu.vector_store %arg2[%c256, %c0_73], %97 {strides = array<i32>} : memref<1920x128xf32, #tpu.memory_space<vmem>>, vector<8x128xf32>,
    %c264 = arith.constant 264 : index
    %c0_74 = arith.constant 0 : index
    %115 = vector.load %arg2[%c264, %c0_74] : memref<1920x128xf32, #tpu.memory_space<vmem>>, vector<8x128xf32>
    tpu.vector_store %arg2[%c264, %c0_74], %31 {strides = array<i32>} : memref<1920x128xf32, #tpu.memory_space<vmem>>, vector<8x128xf32>,
    %c272 = arith.constant 272 : index
    %c0_75 = arith.constant 0 : index
    %116 = vector.load %arg2[%c272, %c0_75] : memref<1920x128xf32, #tpu.memory_space<vmem>>, vector<8x128xf32>
    tpu.vector_store %arg2[%c272, %c0_75], %98 {strides = array<i32>} : memref<1920x128xf32, #tpu.memory_space<vmem>>, vector<8x128xf32>,
    %c280 = arith.constant 280 : index
    %c0_76 = arith.constant 0 : index
    %117 = vector.load %arg2[%c280, %c0_76] : memref<1920x128xf32, #tpu.memory_space<vmem>>, vector<8x128xf32>
    tpu.vector_store %arg2[%c280, %c0_76], %105 {strides = array<i32>} : memref<1920x128xf32, #tpu.memory_space<vmem>>, vector<8x128xf32>,
    %cst_77 = arith.constant 5.000000e-01 : f32
    %118 = vector.broadcast %cst_77 : f32 to vector<8x128xf32>
    %119 = arith.mulf %3, %118 : vector<8x128xf32>
    %120 = math.cos %119 : vector<8x128xf32>
    %121 = math.sin %119 : vector<8x128xf32>
    %cst_78 = arith.constant 0.000000e+00 : f32
    %122 = vector.broadcast %cst_78 : f32 to vector<8x128xf32>
    %123 = arith.subf %122, %121 : vector<8x128xf32>
    %124 = arith.mulf %69, %120 : vector<8x128xf32>
    %125 = arith.mulf %34, %121 : vector<8x128xf32>
    %126 = arith.addf %124, %125 : vector<8x128xf32>
    %127 = arith.mulf %69, %123 : vector<8x128xf32>
    %128 = arith.mulf %34, %120 : vector<8x128xf32>
    %129 = arith.addf %127, %128 : vector<8x128xf32>
    %cst_79 = arith.constant 8.000000e-03 : f32
    %130 = vector.broadcast %cst_79 : f32 to vector<8x128xf32>
    %131 = arith.mulf %69, %130 : vector<8x128xf32>
    %cst_80 = arith.constant -2.000000e-03 : f32
    %132 = vector.broadcast %cst_80 : f32 to vector<8x128xf32>
    %133 = arith.mulf %34, %132 : vector<8x128xf32>
    %134 = arith.addf %131, %133 : vector<8x128xf32>
    %cst_81 = arith.constant 3.450000e-02 : f32
    %135 = vector.broadcast %cst_81 : f32 to vector<8x128xf32>
    %136 = arith.mulf %72, %135 : vector<8x128xf32>
    %137 = arith.addf %134, %136 : vector<8x128xf32>
    %138 = arith.addf %137, %81 : vector<8x128xf32>
    %139 = arith.mulf %84, %120 : vector<8x128xf32>
    %140 = arith.mulf %43, %121 : vector<8x128xf32>
    %141 = arith.addf %139, %140 : vector<8x128xf32>
    %142 = arith.mulf %84, %123 : vector<8x128xf32>
    %143 = arith.mulf %43, %120 : vector<8x128xf32>
    %144 = arith.addf %142, %143 : vector<8x128xf32>
    %cst_82 = arith.constant 8.000000e-03 : f32
    %145 = vector.broadcast %cst_82 : f32 to vector<8x128xf32>
    %146 = arith.mulf %84, %145 : vector<8x128xf32>
    %cst_83 = arith.constant -2.000000e-03 : f32
    %147 = vector.broadcast %cst_83 : f32 to vector<8x128xf32>
    %148 = arith.mulf %43, %147 : vector<8x128xf32>
    %149 = arith.addf %146, %148 : vector<8x128xf32>
    %cst_84 = arith.constant 3.450000e-02 : f32
    %150 = vector.broadcast %cst_84 : f32 to vector<8x128xf32>
    %151 = arith.mulf %87, %150 : vector<8x128xf32>
    %152 = arith.addf %149, %151 : vector<8x128xf32>
    %153 = arith.addf %152, %96 : vector<8x128xf32>
    %154 = arith.mulf %97, %120 : vector<8x128xf32>
    %155 = arith.mulf %31, %121 : vector<8x128xf32>
    %156 = arith.addf %154, %155 : vector<8x128xf32>
    %157 = arith.mulf %97, %123 : vector<8x128xf32>
    %158 = arith.mulf %31, %120 : vector<8x128xf32>
    %159 = arith.addf %157, %158 : vector<8x128xf32>
    %cst_85 = arith.constant 8.000000e-03 : f32
    %160 = vector.broadcast %cst_85 : f32 to vector<8x128xf32>
    %161 = arith.mulf %97, %160 : vector<8x128xf32>
    %cst_86 = arith.constant -2.000000e-03 : f32
    %162 = vector.broadcast %cst_86 : f32 to vector<8x128xf32>
    %163 = arith.mulf %31, %162 : vector<8x128xf32>
    %164 = arith.addf %161, %163 : vector<8x128xf32>
    %cst_87 = arith.constant 3.450000e-02 : f32
    %165 = vector.broadcast %cst_87 : f32 to vector<8x128xf32>
    %166 = arith.mulf %98, %165 : vector<8x128xf32>
    %167 = arith.addf %164, %166 : vector<8x128xf32>
    %168 = arith.addf %167, %105 : vector<8x128xf32>
    %c288 = arith.constant 288 : index
    %c0_88 = arith.constant 0 : index
    %169 = vector.load %arg2[%c288, %c0_88] : memref<1920x128xf32, #tpu.memory_space<vmem>>, vector<8x128xf32>
    tpu.vector_store %arg2[%c288, %c0_88], %126 {strides = array<i32>} : memref<1920x128xf32, #tpu.memory_space<vmem>>, vector<8x128xf32>,
    %c296 = arith.constant 296 : index
    %c0_89 = arith.constant 0 : index
    %170 = vector.load %arg2[%c296, %c0_89] : memref<1920x128xf32, #tpu.memory_space<vmem>>, vector<8x128xf32>
    tpu.vector_store %arg2[%c296, %c0_89], %129 {strides = array<i32>} : memref<1920x128xf32, #tpu.memory_space<vmem>>, vector<8x128xf32>,
    %c304 = arith.constant 304 : index
    %c0_90 = arith.constant 0 : index
    %171 = vector.load %arg2[%c304, %c0_90] : memref<1920x128xf32, #tpu.memory_space<vmem>>, vector<8x128xf32>
    tpu.vector_store %arg2[%c304, %c0_90], %72 {strides = array<i32>} : memref<1920x128xf32, #tpu.memory_space<vmem>>, vector<8x128xf32>,
    %c312 = arith.constant 312 : index
    %c0_91 = arith.constant 0 : index
    %172 = vector.load %arg2[%c312, %c0_91] : memref<1920x128xf32, #tpu.memory_space<vmem>>, vector<8x128xf32>
    tpu.vector_store %arg2[%c312, %c0_91], %138 {strides = array<i32>} : memref<1920x128xf32, #tpu.memory_space<vmem>>, vector<8x128xf32>,
    %c320 = arith.constant 320 : index
    %c0_92 = arith.constant 0 : index
    %173 = vector.load %arg2[%c320, %c0_92] : memref<1920x128xf32, #tpu.memory_space<vmem>>, vector<8x128xf32>
    tpu.vector_store %arg2[%c320, %c0_92], %141 {strides = array<i32>} : memref<1920x128xf32, #tpu.memory_space<vmem>>, vector<8x128xf32>,
    %c328 = arith.constant 328 : index
    %c0_93 = arith.constant 0 : index
    %174 = vector.load %arg2[%c328, %c0_93] : memref<1920x128xf32, #tpu.memory_space<vmem>>, vector<8x128xf32>
    tpu.vector_store %arg2[%c328, %c0_93], %144 {strides = array<i32>} : memref<1920x128xf32, #tpu.memory_space<vmem>>, vector<8x128xf32>,
    %c336 = arith.constant 336 : index
    %c0_94 = arith.constant 0 : index
    %175 = vector.load %arg2[%c336, %c0_94] : memref<1920x128xf32, #tpu.memory_space<vmem>>, vector<8x128xf32>
    tpu.vector_store %arg2[%c336, %c0_94], %87 {strides = array<i32>} : memref<1920x128xf32, #tpu.memory_space<vmem>>, vector<8x128xf32>,
    %c344 = arith.constant 344 : index
    %c0_95 = arith.constant 0 : index
    %176 = vector.load %arg2[%c344, %c0_95] : memref<1920x128xf32, #tpu.memory_space<vmem>>, vector<8x128xf32>
    tpu.vector_store %arg2[%c344, %c0_95], %153 {strides = array<i32>} : memref<1920x128xf32, #tpu.memory_space<vmem>>, vector<8x128xf32>,
    %c352 = arith.constant 352 : index
    %c0_96 = arith.constant 0 : index
    %177 = vector.load %arg2[%c352, %c0_96] : memref<1920x128xf32, #tpu.memory_space<vmem>>, vector<8x128xf32>
    tpu.vector_store %arg2[%c352, %c0_96], %156 {strides = array<i32>} : memref<1920x128xf32, #tpu.memory_space<vmem>>, vector<8x128xf32>,
    %c360 = arith.constant 360 : index
    %c0_97 = arith.constant 0 : index
    %178 = vector.load %arg2[%c360, %c0_97] : memref<1920x128xf32, #tpu.memory_space<vmem>>, vector<8x128xf32>
    tpu.vector_store %arg2[%c360, %c0_97], %159 {strides = array<i32>} : memref<1920x128xf32, #tpu.memory_space<vmem>>, vector<8x128xf32>,
    %c368 = arith.constant 368 : index
    %c0_98 = arith.constant 0 : index
    %179 = vector.load %arg2[%c368, %c0_98] : memref<1920x128xf32, #tpu.memory_space<vmem>>, vector<8x128xf32>
    tpu.vector_store %arg2[%c368, %c0_98], %98 {strides = array<i32>} : memref<1920x128xf32, #tpu.memory_space<vmem>>, vector<8x128xf32>,
    %c376 = arith.constant 376 : index
    %c0_99 = arith.constant 0 : index
    %180 = vector.load %arg2[%c376, %c0_99] : memref<1920x128xf32, #tpu.memory_space<vmem>>, vector<8x128xf32>
    tpu.vector_store %arg2[%c376, %c0_99], %168 {strides = array<i32>} : memref<1920x128xf32, #tpu.memory_space<vmem>>, vector<8x128xf32>,
    %181 = math.cos %4 : vector<8x128xf32>
    %182 = math.sin %4 : vector<8x128xf32>
    %cst_100 = arith.constant 0.000000e+00 : f32
    %183 = vector.broadcast %cst_100 : f32 to vector<8x128xf32>
    %184 = arith.subf %183, %182 : vector<8x128xf32>
    %c384 = arith.constant 384 : index
    %c0_101 = arith.constant 0 : index
    %185 = vector.load %arg2[%c384, %c0_101] : memref<1920x128xf32, #tpu.memory_space<vmem>>, vector<8x128xf32>
    tpu.vector_store %arg2[%c384, %c0_101], %1 {strides = array<i32>} : memref<1920x128xf32, #tpu.memory_space<vmem>>, vector<8x128xf32>,
    %c392 = arith.constant 392 : index
    %c0_102 = arith.constant 0 : index
    %186 = vector.load %arg2[%c392, %c0_102] : memref<1920x128xf32, #tpu.memory_space<vmem>>, vector<8x128xf32>
    tpu.vector_store %arg2[%c392, %c0_102], %0 {strides = array<i32>} : memref<1920x128xf32, #tpu.memory_space<vmem>>, vector<8x128xf32>,
    %c400 = arith.constant 400 : index
    %c0_103 = arith.constant 0 : index
    %187 = vector.load %arg2[%c400, %c0_103] : memref<1920x128xf32, #tpu.memory_space<vmem>>, vector<8x128xf32>
    tpu.vector_store %arg2[%c400, %c0_103], %0 {strides = array<i32>} : memref<1920x128xf32, #tpu.memory_space<vmem>>, vector<8x128xf32>,
    %c408 = arith.constant 408 : index
    %c0_104 = arith.constant 0 : index
    %188 = vector.load %arg2[%c408, %c0_104] : memref<1920x128xf32, #tpu.memory_space<vmem>>, vector<8x128xf32>
    tpu.vector_store %arg2[%c408, %c0_104], %18 {strides = array<i32>} : memref<1920x128xf32, #tpu.memory_space<vmem>>, vector<8x128xf32>,
    %c416 = arith.constant 416 : index
    %c0_105 = arith.constant 0 : index
    %189 = vector.load %arg2[%c416, %c0_105] : memref<1920x128xf32, #tpu.memory_space<vmem>>, vector<8x128xf32>
    tpu.vector_store %arg2[%c416, %c0_105], %0 {strides = array<i32>} : memref<1920x128xf32, #tpu.memory_space<vmem>>, vector<8x128xf32>,
    %c424 = arith.constant 424 : index
    %c0_106 = arith.constant 0 : index
    %190 = vector.load %arg2[%c424, %c0_106] : memref<1920x128xf32, #tpu.memory_space<vmem>>, vector<8x128xf32>
    tpu.vector_store %arg2[%c424, %c0_106], %181 {strides = array<i32>} : memref<1920x128xf32, #tpu.memory_space<vmem>>, vector<8x128xf32>,
    %c432 = arith.constant 432 : index
    %c0_107 = arith.constant 0 : index
    %191 = vector.load %arg2[%c432, %c0_107] : memref<1920x128xf32, #tpu.memory_space<vmem>>, vector<8x128xf32>
    tpu.vector_store %arg2[%c432, %c0_107], %184 {strides = array<i32>} : memref<1920x128xf32, #tpu.memory_space<vmem>>, vector<8x128xf32>,
    %cst_108 = arith.constant -1.000000e-03 : f32
    %192 = vector.broadcast %cst_108 : f32 to vector<8x128xf32>
    %c440 = arith.constant 440 : index
    %c0_109 = arith.constant 0 : index
    %193 = vector.load %arg2[%c440, %c0_109] : memref<1920x128xf32, #tpu.memory_space<vmem>>, vector<8x128xf32>
    tpu.vector_store %arg2[%c440, %c0_109], %192 {strides = array<i32>} : memref<1920x128xf32, #tpu.memory_space<vmem>>, vector<8x128xf32>,
    %c448 = arith.constant 448 : index
    %c0_110 = arith.constant 0 : index
    %194 = vector.load %arg2[%c448, %c0_110] : memref<1920x128xf32, #tpu.memory_space<vmem>>, vector<8x128xf32>
    tpu.vector_store %arg2[%c448, %c0_110], %0 {strides = array<i32>} : memref<1920x128xf32, #tpu.memory_space<vmem>>, vector<8x128xf32>,
    %c456 = arith.constant 456 : index
    %c0_111 = arith.constant 0 : index
    %195 = vector.load %arg2[%c456, %c0_111] : memref<1920x128xf32, #tpu.memory_space<vmem>>, vector<8x128xf32>
    tpu.vector_store %arg2[%c456, %c0_111], %182 {strides = array<i32>} : memref<1920x128xf32, #tpu.memory_space<vmem>>, vector<8x128xf32>,
    %c464 = arith.constant 464 : index
    %c0_112 = arith.constant 0 : index
    %196 = vector.load %arg2[%c464, %c0_112] : memref<1920x128xf32, #tpu.memory_space<vmem>>, vector<8x128xf32>
    tpu.vector_store %arg2[%c464, %c0_112], %181 {strides = array<i32>} : memref<1920x128xf32, #tpu.memory_space<vmem>>, vector<8x128xf32>,
    %cst_113 = arith.constant 3.600000e-02 : f32
    %197 = vector.broadcast %cst_113 : f32 to vector<8x128xf32>
    %c472 = arith.constant 472 : index
    %c0_114 = arith.constant 0 : index
    %198 = vector.load %arg2[%c472, %c0_114] : memref<1920x128xf32, #tpu.memory_space<vmem>>, vector<8x128xf32>
    tpu.vector_store %arg2[%c472, %c0_114], %197 {strides = array<i32>} : memref<1920x128xf32, #tpu.memory_space<vmem>>, vector<8x128xf32>,
    %199 = math.cos %5 : vector<8x128xf32>
    %200 = math.sin %5 : vector<8x128xf32>
    %cst_115 = arith.constant 0.000000e+00 : f32
    %201 = vector.broadcast %cst_115 : f32 to vector<8x128xf32>
    %202 = arith.subf %201, %200 : vector<8x128xf32>
    %203 = arith.mulf %184, %202 : vector<8x128xf32>
    %204 = arith.mulf %184, %199 : vector<8x128xf32>
    %cst_116 = arith.constant 3.750000e-02 : f32
    %205 = vector.broadcast %cst_116 : f32 to vector<8x128xf32>
    %206 = arith.mulf %184, %205 : vector<8x128xf32>
    %cst_117 = arith.constant -1.000000e-03 : f32
    %207 = vector.broadcast %cst_117 : f32 to vector<8x128xf32>
    %208 = arith.addf %206, %207 : vector<8x128xf32>
    %209 = arith.mulf %181, %202 : vector<8x128xf32>
    %210 = arith.mulf %181, %199 : vector<8x128xf32>
    %cst_118 = arith.constant 3.750000e-02 : f32
    %211 = vector.broadcast %cst_118 : f32 to vector<8x128xf32>
    %212 = arith.mulf %181, %211 : vector<8x128xf32>
    %cst_119 = arith.constant 3.600000e-02 : f32
    %213 = vector.broadcast %cst_119 : f32 to vector<8x128xf32>
    %214 = arith.addf %212, %213 : vector<8x128xf32>
    %c480 = arith.constant 480 : index
    %c0_120 = arith.constant 0 : index
    %215 = vector.load %arg2[%c480, %c0_120] : memref<1920x128xf32, #tpu.memory_space<vmem>>, vector<8x128xf32>
    tpu.vector_store %arg2[%c480, %c0_120], %199 {strides = array<i32>} : memref<1920x128xf32, #tpu.memory_space<vmem>>, vector<8x128xf32>,
    %c488 = arith.constant 488 : index
    %c0_121 = arith.constant 0 : index
    %216 = vector.load %arg2[%c488, %c0_121] : memref<1920x128xf32, #tpu.memory_space<vmem>>, vector<8x128xf32>
    tpu.vector_store %arg2[%c488, %c0_121], %0 {strides = array<i32>} : memref<1920x128xf32, #tpu.memory_space<vmem>>, vector<8x128xf32>,
    %c496 = arith.constant 496 : index
    %c0_122 = arith.constant 0 : index
    %217 = vector.load %arg2[%c496, %c0_122] : memref<1920x128xf32, #tpu.memory_space<vmem>>, vector<8x128xf32>
    tpu.vector_store %arg2[%c496, %c0_122], %200 {strides = array<i32>} : memref<1920x128xf32, #tpu.memory_space<vmem>>, vector<8x128xf32>,
    %cst_123 = arith.constant 6.000000e-03 : f32
    %218 = vector.broadcast %cst_123 : f32 to vector<8x128xf32>
    %c504 = arith.constant 504 : index
    %c0_124 = arith.constant 0 : index
    %219 = vector.load %arg2[%c504, %c0_124] : memref<1920x128xf32, #tpu.memory_space<vmem>>, vector<8x128xf32>
    tpu.vector_store %arg2[%c504, %c0_124], %218 {strides = array<i32>} : memref<1920x128xf32, #tpu.memory_space<vmem>>, vector<8x128xf32>,
    %c512 = arith.constant 512 : index
    %c0_125 = arith.constant 0 : index
    %220 = vector.load %arg2[%c512, %c0_125] : memref<1920x128xf32, #tpu.memory_space<vmem>>, vector<8x128xf32>
    tpu.vector_store %arg2[%c512, %c0_125], %203 {strides = array<i32>} : memref<1920x128xf32, #tpu.memory_space<vmem>>, vector<8x128xf32>,
    %c520 = arith.constant 520 : index
    %c0_126 = arith.constant 0 : index
    %221 = vector.load %arg2[%c520, %c0_126] : memref<1920x128xf32, #tpu.memory_space<vmem>>, vector<8x128xf32>
    tpu.vector_store %arg2[%c520, %c0_126], %181 {strides = array<i32>} : memref<1920x128xf32, #tpu.memory_space<vmem>>, vector<8x128xf32>,
    %c528 = arith.constant 528 : index
    %c0_127 = arith.constant 0 : index
    %222 = vector.load %arg2[%c528, %c0_127] : memref<1920x128xf32, #tpu.memory_space<vmem>>, vector<8x128xf32>
    tpu.vector_store %arg2[%c528, %c0_127], %204 {strides = array<i32>} : memref<1920x128xf32, #tpu.memory_space<vmem>>, vector<8x128xf32>,
    %c536 = arith.constant 536 : index
    %c0_128 = arith.constant 0 : index
    %223 = vector.load %arg2[%c536, %c0_128] : memref<1920x128xf32, #tpu.memory_space<vmem>>, vector<8x128xf32>
    tpu.vector_store %arg2[%c536, %c0_128], %208 {strides = array<i32>} : memref<1920x128xf32, #tpu.memory_space<vmem>>, vector<8x128xf32>,
    %c544 = arith.constant 544 : index
    %c0_129 = arith.constant 0 : index
    %224 = vector.load %arg2[%c544, %c0_129] : memref<1920x128xf32, #tpu.memory_space<vmem>>, vector<8x128xf32>
    tpu.vector_store %arg2[%c544, %c0_129], %209 {strides = array<i32>} : memref<1920x128xf32, #tpu.memory_space<vmem>>, vector<8x128xf32>,
    %c552 = arith.constant 552 : index
    %c0_130 = arith.constant 0 : index
    %225 = vector.load %arg2[%c552, %c0_130] : memref<1920x128xf32, #tpu.memory_space<vmem>>, vector<8x128xf32>
    tpu.vector_store %arg2[%c552, %c0_130], %182 {strides = array<i32>} : memref<1920x128xf32, #tpu.memory_space<vmem>>, vector<8x128xf32>,
    %c560 = arith.constant 560 : index
    %c0_131 = arith.constant 0 : index
    %226 = vector.load %arg2[%c560, %c0_131] : memref<1920x128xf32, #tpu.memory_space<vmem>>, vector<8x128xf32>
    tpu.vector_store %arg2[%c560, %c0_131], %210 {strides = array<i32>} : memref<1920x128xf32, #tpu.memory_space<vmem>>, vector<8x128xf32>,
    %c568 = arith.constant 568 : index
    %c0_132 = arith.constant 0 : index
    %227 = vector.load %arg2[%c568, %c0_132] : memref<1920x128xf32, #tpu.memory_space<vmem>>, vector<8x128xf32>
    tpu.vector_store %arg2[%c568, %c0_132], %214 {strides = array<i32>} : memref<1920x128xf32, #tpu.memory_space<vmem>>, vector<8x128xf32>,
    %cst_133 = arith.constant 1.045000e+00 : f32
    %228 = vector.broadcast %cst_133 : f32 to vector<8x128xf32>
    %229 = arith.mulf %5, %228 : vector<8x128xf32>
    %230 = math.cos %229 : vector<8x128xf32>
    %231 = math.sin %229 : vector<8x128xf32>
    %cst_134 = arith.constant 0.000000e+00 : f32
    %232 = vector.broadcast %cst_134 : f32 to vector<8x128xf32>
    %233 = arith.subf %232, %231 : vector<8x128xf32>
    %234 = arith.mulf %199, %230 : vector<8x128xf32>
    %235 = arith.mulf %199, %233 : vector<8x128xf32>
    %cst_135 = arith.constant 6.000000e-03 : f32
    %236 = vector.broadcast %cst_135 : f32 to vector<8x128xf32>
    %237 = arith.mulf %199, %236 : vector<8x128xf32>
    %cst_136 = arith.constant 3.900000e-02 : f32
    %238 = vector.broadcast %cst_136 : f32 to vector<8x128xf32>
    %239 = arith.mulf %200, %238 : vector<8x128xf32>
    %240 = arith.addf %237, %239 : vector<8x128xf32>
    %cst_137 = arith.constant 6.000000e-03 : f32
    %241 = vector.broadcast %cst_137 : f32 to vector<8x128xf32>
    %242 = arith.addf %240, %241 : vector<8x128xf32>
    %243 = arith.mulf %203, %230 : vector<8x128xf32>
    %244 = arith.mulf %181, %231 : vector<8x128xf32>
    %245 = arith.addf %243, %244 : vector<8x128xf32>
    %246 = arith.mulf %203, %233 : vector<8x128xf32>
    %247 = arith.mulf %181, %230 : vector<8x128xf32>
    %248 = arith.addf %246, %247 : vector<8x128xf32>
    %cst_138 = arith.constant 6.000000e-03 : f32
    %249 = vector.broadcast %cst_138 : f32 to vector<8x128xf32>
    %250 = arith.mulf %203, %249 : vector<8x128xf32>
    %cst_139 = arith.constant 1.000000e-03 : f32
    %251 = vector.broadcast %cst_139 : f32 to vector<8x128xf32>
    %252 = arith.mulf %181, %251 : vector<8x128xf32>
    %253 = arith.addf %250, %252 : vector<8x128xf32>
    %cst_140 = arith.constant 3.900000e-02 : f32
    %254 = vector.broadcast %cst_140 : f32 to vector<8x128xf32>
    %255 = arith.mulf %204, %254 : vector<8x128xf32>
    %256 = arith.addf %253, %255 : vector<8x128xf32>
    %257 = arith.addf %256, %208 : vector<8x128xf32>
    %258 = arith.mulf %209, %230 : vector<8x128xf32>
    %259 = arith.mulf %182, %231 : vector<8x128xf32>
    %260 = arith.addf %258, %259 : vector<8x128xf32>
    %261 = arith.mulf %209, %233 : vector<8x128xf32>
    %262 = arith.mulf %182, %230 : vector<8x128xf32>
    %263 = arith.addf %261, %262 : vector<8x128xf32>
    %cst_141 = arith.constant 6.000000e-03 : f32
    %264 = vector.broadcast %cst_141 : f32 to vector<8x128xf32>
    %265 = arith.mulf %209, %264 : vector<8x128xf32>
    %cst_142 = arith.constant 1.000000e-03 : f32
    %266 = vector.broadcast %cst_142 : f32 to vector<8x128xf32>
    %267 = arith.mulf %182, %266 : vector<8x128xf32>
    %268 = arith.addf %265, %267 : vector<8x128xf32>
    %cst_143 = arith.constant 3.900000e-02 : f32
    %269 = vector.broadcast %cst_143 : f32 to vector<8x128xf32>
    %270 = arith.mulf %210, %269 : vector<8x128xf32>
    %271 = arith.addf %268, %270 : vector<8x128xf32>
    %272 = arith.addf %271, %214 : vector<8x128xf32>
    %c576 = arith.constant 576 : index
    %c0_144 = arith.constant 0 : index
    %273 = vector.load %arg2[%c576, %c0_144] : memref<1920x128xf32, #tpu.memory_space<vmem>>, vector<8x128xf32>
    tpu.vector_store %arg2[%c576, %c0_144], %234 {strides = array<i32>} : memref<1920x128xf32, #tpu.memory_space<vmem>>, vector<8x128xf32>,
    %c584 = arith.constant 584 : index
    %c0_145 = arith.constant 0 : index
    %274 = vector.load %arg2[%c584, %c0_145] : memref<1920x128xf32, #tpu.memory_space<vmem>>, vector<8x128xf32>
    tpu.vector_store %arg2[%c584, %c0_145], %235 {strides = array<i32>} : memref<1920x128xf32, #tpu.memory_space<vmem>>, vector<8x128xf32>,
    %c592 = arith.constant 592 : index
    %c0_146 = arith.constant 0 : index
    %275 = vector.load %arg2[%c592, %c0_146] : memref<1920x128xf32, #tpu.memory_space<vmem>>, vector<8x128xf32>
    tpu.vector_store %arg2[%c592, %c0_146], %200 {strides = array<i32>} : memref<1920x128xf32, #tpu.memory_space<vmem>>, vector<8x128xf32>,
    %c600 = arith.constant 600 : index
    %c0_147 = arith.constant 0 : index
    %276 = vector.load %arg2[%c600, %c0_147] : memref<1920x128xf32, #tpu.memory_space<vmem>>, vector<8x128xf32>
    tpu.vector_store %arg2[%c600, %c0_147], %242 {strides = array<i32>} : memref<1920x128xf32, #tpu.memory_space<vmem>>, vector<8x128xf32>,
    %c608 = arith.constant 608 : index
    %c0_148 = arith.constant 0 : index
    %277 = vector.load %arg2[%c608, %c0_148] : memref<1920x128xf32, #tpu.memory_space<vmem>>, vector<8x128xf32>
    tpu.vector_store %arg2[%c608, %c0_148], %245 {strides = array<i32>} : memref<1920x128xf32, #tpu.memory_space<vmem>>, vector<8x128xf32>,
    %c616 = arith.constant 616 : index
    %c0_149 = arith.constant 0 : index
    %278 = vector.load %arg2[%c616, %c0_149] : memref<1920x128xf32, #tpu.memory_space<vmem>>, vector<8x128xf32>
    tpu.vector_store %arg2[%c616, %c0_149], %248 {strides = array<i32>} : memref<1920x128xf32, #tpu.memory_space<vmem>>, vector<8x128xf32>,
    %c624 = arith.constant 624 : index
    %c0_150 = arith.constant 0 : index
    %279 = vector.load %arg2[%c624, %c0_150] : memref<1920x128xf32, #tpu.memory_space<vmem>>, vector<8x128xf32>
    tpu.vector_store %arg2[%c624, %c0_150], %204 {strides = array<i32>} : memref<1920x128xf32, #tpu.memory_space<vmem>>, vector<8x128xf32>,
    %c632 = arith.constant 632 : index
    %c0_151 = arith.constant 0 : index
    %280 = vector.load %arg2[%c632, %c0_151] : memref<1920x128xf32, #tpu.memory_space<vmem>>, vector<8x128xf32>
    tpu.vector_store %arg2[%c632, %c0_151], %257 {strides = array<i32>} : memref<1920x128xf32, #tpu.memory_space<vmem>>, vector<8x128xf32>,
    %c640 = arith.constant 640 : index
    %c0_152 = arith.constant 0 : index
    %281 = vector.load %arg2[%c640, %c0_152] : memref<1920x128xf32, #tpu.memory_space<vmem>>, vector<8x128xf32>
    tpu.vector_store %arg2[%c640, %c0_152], %260 {strides = array<i32>} : memref<1920x128xf32, #tpu.memory_space<vmem>>, vector<8x128xf32>,
    %c648 = arith.constant 648 : index
    %c0_153 = arith.constant 0 : index
    %282 = vector.load %arg2[%c648, %c0_153] : memref<1920x128xf32, #tpu.memory_space<vmem>>, vector<8x128xf32>
    tpu.vector_store %arg2[%c648, %c0_153], %263 {strides = array<i32>} : memref<1920x128xf32, #tpu.memory_space<vmem>>, vector<8x128xf32>,
    %c656 = arith.constant 656 : index
    %c0_154 = arith.constant 0 : index
    %283 = vector.load %arg2[%c656, %c0_154] : memref<1920x128xf32, #tpu.memory_space<vmem>>, vector<8x128xf32>
    tpu.vector_store %arg2[%c656, %c0_154], %210 {strides = array<i32>} : memref<1920x128xf32, #tpu.memory_space<vmem>>, vector<8x128xf32>,
    %c664 = arith.constant 664 : index
    %c0_155 = arith.constant 0 : index
    %284 = vector.load %arg2[%c664, %c0_155] : memref<1920x128xf32, #tpu.memory_space<vmem>>, vector<8x128xf32>
    tpu.vector_store %arg2[%c664, %c0_155], %272 {strides = array<i32>} : memref<1920x128xf32, #tpu.memory_space<vmem>>, vector<8x128xf32>,
    %cst_156 = arith.constant 0.000000e+00 : f32
    %285 = vector.broadcast %cst_156 : f32 to vector<8x128xf32>
    %286 = arith.subf %285, %200 : vector<8x128xf32>
    %287 = arith.mulf %235, %199 : vector<8x128xf32>
    %288 = arith.mulf %200, %200 : vector<8x128xf32>
    %289 = arith.addf %287, %288 : vector<8x128xf32>
    %290 = arith.mulf %235, %286 : vector<8x128xf32>
    %291 = arith.mulf %200, %199 : vector<8x128xf32>
    %292 = arith.addf %290, %291 : vector<8x128xf32>
    %cst_157 = arith.constant 8.000000e-03 : f32
    %293 = vector.broadcast %cst_157 : f32 to vector<8x128xf32>
    %294 = arith.mulf %234, %293 : vector<8x128xf32>
    %cst_158 = arith.constant 2.000000e-03 : f32
    %295 = vector.broadcast %cst_158 : f32 to vector<8x128xf32>
    %296 = arith.mulf %235, %295 : vector<8x128xf32>
    %297 = arith.addf %294, %296 : vector<8x128xf32>
    %cst_159 = arith.constant 4.050000e-02 : f32
    %298 = vector.broadcast %cst_159 : f32 to vector<8x128xf32>
    %299 = arith.mulf %200, %298 : vector<8x128xf32>
    %300 = arith.addf %297, %299 : vector<8x128xf32>
    %301 = arith.addf %300, %242 : vector<8x128xf32>
    %302 = arith.mulf %248, %199 : vector<8x128xf32>
    %303 = arith.mulf %204, %200 : vector<8x128xf32>
    %304 = arith.addf %302, %303 : vector<8x128xf32>
    %305 = arith.mulf %248, %286 : vector<8x128xf32>
    %306 = arith.mulf %204, %199 : vector<8x128xf32>
    %307 = arith.addf %305, %306 : vector<8x128xf32>
    %cst_160 = arith.constant 8.000000e-03 : f32
    %308 = vector.broadcast %cst_160 : f32 to vector<8x128xf32>
    %309 = arith.mulf %245, %308 : vector<8x128xf32>
    %cst_161 = arith.constant 2.000000e-03 : f32
    %310 = vector.broadcast %cst_161 : f32 to vector<8x128xf32>
    %311 = arith.mulf %248, %310 : vector<8x128xf32>
    %312 = arith.addf %309, %311 : vector<8x128xf32>
    %cst_162 = arith.constant 4.050000e-02 : f32
    %313 = vector.broadcast %cst_162 : f32 to vector<8x128xf32>
    %314 = arith.mulf %204, %313 : vector<8x128xf32>
    %315 = arith.addf %312, %314 : vector<8x128xf32>
    %316 = arith.addf %315, %257 : vector<8x128xf32>
    %317 = arith.mulf %263, %199 : vector<8x128xf32>
    %318 = arith.mulf %210, %200 : vector<8x128xf32>
    %319 = arith.addf %317, %318 : vector<8x128xf32>
    %320 = arith.mulf %263, %286 : vector<8x128xf32>
    %321 = arith.mulf %210, %199 : vector<8x128xf32>
    %322 = arith.addf %320, %321 : vector<8x128xf32>
    %cst_163 = arith.constant 8.000000e-03 : f32
    %323 = vector.broadcast %cst_163 : f32 to vector<8x128xf32>
    %324 = arith.mulf %260, %323 : vector<8x128xf32>
    %cst_164 = arith.constant 2.000000e-03 : f32
    %325 = vector.broadcast %cst_164 : f32 to vector<8x128xf32>
    %326 = arith.mulf %263, %325 : vector<8x128xf32>
    %327 = arith.addf %324, %326 : vector<8x128xf32>
    %cst_165 = arith.constant 4.050000e-02 : f32
    %328 = vector.broadcast %cst_165 : f32 to vector<8x128xf32>
    %329 = arith.mulf %210, %328 : vector<8x128xf32>
    %330 = arith.addf %327, %329 : vector<8x128xf32>
    %331 = arith.addf %330, %272 : vector<8x128xf32>
    %c672 = arith.constant 672 : index
    %c0_166 = arith.constant 0 : index
    %332 = vector.load %arg2[%c672, %c0_166] : memref<1920x128xf32, #tpu.memory_space<vmem>>, vector<8x128xf32>
    tpu.vector_store %arg2[%c672, %c0_166], %234 {strides = array<i32>} : memref<1920x128xf32, #tpu.memory_space<vmem>>, vector<8x128xf32>,
    %c680 = arith.constant 680 : index
    %c0_167 = arith.constant 0 : index
    %333 = vector.load %arg2[%c680, %c0_167] : memref<1920x128xf32, #tpu.memory_space<vmem>>, vector<8x128xf32>
    tpu.vector_store %arg2[%c680, %c0_167], %289 {strides = array<i32>} : memref<1920x128xf32, #tpu.memory_space<vmem>>, vector<8x128xf32>,
    %c688 = arith.constant 688 : index
    %c0_168 = arith.constant 0 : index
    %334 = vector.load %arg2[%c688, %c0_168] : memref<1920x128xf32, #tpu.memory_space<vmem>>, vector<8x128xf32>
    tpu.vector_store %arg2[%c688, %c0_168], %292 {strides = array<i32>} : memref<1920x128xf32, #tpu.memory_space<vmem>>, vector<8x128xf32>,
    %c696 = arith.constant 696 : index
    %c0_169 = arith.constant 0 : index
    %335 = vector.load %arg2[%c696, %c0_169] : memref<1920x128xf32, #tpu.memory_space<vmem>>, vector<8x128xf32>
    tpu.vector_store %arg2[%c696, %c0_169], %301 {strides = array<i32>} : memref<1920x128xf32, #tpu.memory_space<vmem>>, vector<8x128xf32>,
    %c704 = arith.constant 704 : index
    %c0_170 = arith.constant 0 : index
    %336 = vector.load %arg2[%c704, %c0_170] : memref<1920x128xf32, #tpu.memory_space<vmem>>, vector<8x128xf32>
    tpu.vector_store %arg2[%c704, %c0_170], %245 {strides = array<i32>} : memref<1920x128xf32, #tpu.memory_space<vmem>>, vector<8x128xf32>,
    %c712 = arith.constant 712 : index
    %c0_171 = arith.constant 0 : index
    %337 = vector.load %arg2[%c712, %c0_171] : memref<1920x128xf32, #tpu.memory_space<vmem>>, vector<8x128xf32>
    tpu.vector_store %arg2[%c712, %c0_171], %304 {strides = array<i32>} : memref<1920x128xf32, #tpu.memory_space<vmem>>, vector<8x128xf32>,
    %c720 = arith.constant 720 : index
    %c0_172 = arith.constant 0 : index
    %338 = vector.load %arg2[%c720, %c0_172] : memref<1920x128xf32, #tpu.memory_space<vmem>>, vector<8x128xf32>
    tpu.vector_store %arg2[%c720, %c0_172], %307 {strides = array<i32>} : memref<1920x128xf32, #tpu.memory_space<vmem>>, vector<8x128xf32>,
    %c728 = arith.constant 728 : index
    %c0_173 = arith.constant 0 : index
    %339 = vector.load %arg2[%c728, %c0_173] : memref<1920x128xf32, #tpu.memory_space<vmem>>, vector<8x128xf32>
    tpu.vector_store %arg2[%c728, %c0_173], %316 {strides = array<i32>} : memref<1920x128xf32, #tpu.memory_space<vmem>>, vector<8x128xf32>,
    %c736 = arith.constant 736 : index
    %c0_174 = arith.constant 0 : index
    %340 = vector.load %arg2[%c736, %c0_174] : memref<1920x128xf32, #tpu.memory_space<vmem>>, vector<8x128xf32>
    tpu.vector_store %arg2[%c736, %c0_174], %260 {strides = array<i32>} : memref<1920x128xf32, #tpu.memory_space<vmem>>, vector<8x128xf32>,
    %c744 = arith.constant 744 : index
    %c0_175 = arith.constant 0 : index
    %341 = vector.load %arg2[%c744, %c0_175] : memref<1920x128xf32, #tpu.memory_space<vmem>>, vector<8x128xf32>
    tpu.vector_store %arg2[%c744, %c0_175], %319 {strides = array<i32>} : memref<1920x128xf32, #tpu.memory_space<vmem>>, vector<8x128xf32>,
    %c752 = arith.constant 752 : index
    %c0_176 = arith.constant 0 : index
    %342 = vector.load %arg2[%c752, %c0_176] : memref<1920x128xf32, #tpu.memory_space<vmem>>, vector<8x128xf32>
    tpu.vector_store %arg2[%c752, %c0_176], %322 {strides = array<i32>} : memref<1920x128xf32, #tpu.memory_space<vmem>>, vector<8x128xf32>,
    %c760 = arith.constant 760 : index
    %c0_177 = arith.constant 0 : index
    %343 = vector.load %arg2[%c760, %c0_177] : memref<1920x128xf32, #tpu.memory_space<vmem>>, vector<8x128xf32>
    tpu.vector_store %arg2[%c760, %c0_177], %331 {strides = array<i32>} : memref<1920x128xf32, #tpu.memory_space<vmem>>, vector<8x128xf32>,
    %344 = math.cos %6 : vector<8x128xf32>
    %345 = math.sin %6 : vector<8x128xf32>
    %cst_178 = arith.constant 0.000000e+00 : f32
    %346 = vector.broadcast %cst_178 : f32 to vector<8x128xf32>
    %347 = arith.subf %346, %345 : vector<8x128xf32>
    %c768 = arith.constant 768 : index
    %c0_179 = arith.constant 0 : index
    %348 = vector.load %arg2[%c768, %c0_179] : memref<1920x128xf32, #tpu.memory_space<vmem>>, vector<8x128xf32>
    tpu.vector_store %arg2[%c768, %c0_179], %344 {strides = array<i32>} : memref<1920x128xf32, #tpu.memory_space<vmem>>, vector<8x128xf32>,
    %c776 = arith.constant 776 : index
    %c0_180 = arith.constant 0 : index
    %349 = vector.load %arg2[%c776, %c0_180] : memref<1920x128xf32, #tpu.memory_space<vmem>>, vector<8x128xf32>
    tpu.vector_store %arg2[%c776, %c0_180], %0 {strides = array<i32>} : memref<1920x128xf32, #tpu.memory_space<vmem>>, vector<8x128xf32>,
    %c784 = arith.constant 784 : index
    %c0_181 = arith.constant 0 : index
    %350 = vector.load %arg2[%c784, %c0_181] : memref<1920x128xf32, #tpu.memory_space<vmem>>, vector<8x128xf32>
    tpu.vector_store %arg2[%c784, %c0_181], %345 {strides = array<i32>} : memref<1920x128xf32, #tpu.memory_space<vmem>>, vector<8x128xf32>,
    %c792 = arith.constant 792 : index
    %c0_182 = arith.constant 0 : index
    %351 = vector.load %arg2[%c792, %c0_182] : memref<1920x128xf32, #tpu.memory_space<vmem>>, vector<8x128xf32>
    tpu.vector_store %arg2[%c792, %c0_182], %18 {strides = array<i32>} : memref<1920x128xf32, #tpu.memory_space<vmem>>, vector<8x128xf32>,
    %c800 = arith.constant 800 : index
    %c0_183 = arith.constant 0 : index
    %352 = vector.load %arg2[%c800, %c0_183] : memref<1920x128xf32, #tpu.memory_space<vmem>>, vector<8x128xf32>
    tpu.vector_store %arg2[%c800, %c0_183], %0 {strides = array<i32>} : memref<1920x128xf32, #tpu.memory_space<vmem>>, vector<8x128xf32>,
    %c808 = arith.constant 808 : index
    %c0_184 = arith.constant 0 : index
    %353 = vector.load %arg2[%c808, %c0_184] : memref<1920x128xf32, #tpu.memory_space<vmem>>, vector<8x128xf32>
    tpu.vector_store %arg2[%c808, %c0_184], %1 {strides = array<i32>} : memref<1920x128xf32, #tpu.memory_space<vmem>>, vector<8x128xf32>,
    %c816 = arith.constant 816 : index
    %c0_185 = arith.constant 0 : index
    %354 = vector.load %arg2[%c816, %c0_185] : memref<1920x128xf32, #tpu.memory_space<vmem>>, vector<8x128xf32>
    tpu.vector_store %arg2[%c816, %c0_185], %0 {strides = array<i32>} : memref<1920x128xf32, #tpu.memory_space<vmem>>, vector<8x128xf32>,
    %cst_186 = arith.constant 3.000000e-03 : f32
    %355 = vector.broadcast %cst_186 : f32 to vector<8x128xf32>
    %c824 = arith.constant 824 : index
    %c0_187 = arith.constant 0 : index
    %356 = vector.load %arg2[%c824, %c0_187] : memref<1920x128xf32, #tpu.memory_space<vmem>>, vector<8x128xf32>
    tpu.vector_store %arg2[%c824, %c0_187], %355 {strides = array<i32>} : memref<1920x128xf32, #tpu.memory_space<vmem>>, vector<8x128xf32>,
    %c832 = arith.constant 832 : index
    %c0_188 = arith.constant 0 : index
    %357 = vector.load %arg2[%c832, %c0_188] : memref<1920x128xf32, #tpu.memory_space<vmem>>, vector<8x128xf32>
    tpu.vector_store %arg2[%c832, %c0_188], %347 {strides = array<i32>} : memref<1920x128xf32, #tpu.memory_space<vmem>>, vector<8x128xf32>,
    %c840 = arith.constant 840 : index
    %c0_189 = arith.constant 0 : index
    %358 = vector.load %arg2[%c840, %c0_189] : memref<1920x128xf32, #tpu.memory_space<vmem>>, vector<8x128xf32>
    tpu.vector_store %arg2[%c840, %c0_189], %0 {strides = array<i32>} : memref<1920x128xf32, #tpu.memory_space<vmem>>, vector<8x128xf32>,
    %c848 = arith.constant 848 : index
    %c0_190 = arith.constant 0 : index
    %359 = vector.load %arg2[%c848, %c0_190] : memref<1920x128xf32, #tpu.memory_space<vmem>>, vector<8x128xf32>
    tpu.vector_store %arg2[%c848, %c0_190], %344 {strides = array<i32>} : memref<1920x128xf32, #tpu.memory_space<vmem>>, vector<8x128xf32>,
    %cst_191 = arith.constant 4.200000e-02 : f32
    %360 = vector.broadcast %cst_191 : f32 to vector<8x128xf32>
    %c856 = arith.constant 856 : index
    %c0_192 = arith.constant 0 : index
    %361 = vector.load %arg2[%c856, %c0_192] : memref<1920x128xf32, #tpu.memory_space<vmem>>, vector<8x128xf32>
    tpu.vector_store %arg2[%c856, %c0_192], %360 {strides = array<i32>} : memref<1920x128xf32, #tpu.memory_space<vmem>>, vector<8x128xf32>,
    %362 = math.cos %7 : vector<8x128xf32>
    %363 = math.sin %7 : vector<8x128xf32>
    %cst_193 = arith.constant 0.000000e+00 : f32
    %364 = vector.broadcast %cst_193 : f32 to vector<8x128xf32>
    %365 = arith.subf %364, %363 : vector<8x128xf32>
    %366 = arith.mulf %344, %362 : vector<8x128xf32>
    %367 = arith.mulf %344, %365 : vector<8x128xf32>
    %cst_194 = arith.constant 4.000000e-03 : f32
    %368 = vector.broadcast %cst_194 : f32 to vector<8x128xf32>
    %369 = arith.mulf %344, %368 : vector<8x128xf32>
    %cst_195 = arith.constant 4.350000e-02 : f32
    %370 = vector.broadcast %cst_195 : f32 to vector<8x128xf32>
    %371 = arith.mulf %345, %370 : vector<8x128xf32>
    %372 = arith.addf %369, %371 : vector<8x128xf32>
    %cst_196 = arith.constant 2.000000e-03 : f32
    %373 = vector.broadcast %cst_196 : f32 to vector<8x128xf32>
    %374 = arith.addf %372, %373 : vector<8x128xf32>
    %375 = arith.mulf %347, %362 : vector<8x128xf32>
    %376 = arith.mulf %347, %365 : vector<8x128xf32>
    %cst_197 = arith.constant 4.000000e-03 : f32
    %377 = vector.broadcast %cst_197 : f32 to vector<8x128xf32>
    %378 = arith.mulf %347, %377 : vector<8x128xf32>
    %cst_198 = arith.constant 4.350000e-02 : f32
    %379 = vector.broadcast %cst_198 : f32 to vector<8x128xf32>
    %380 = arith.mulf %344, %379 : vector<8x128xf32>
    %381 = arith.addf %378, %380 : vector<8x128xf32>
    %cst_199 = arith.constant 4.200000e-02 : f32
    %382 = vector.broadcast %cst_199 : f32 to vector<8x128xf32>
    %383 = arith.addf %381, %382 : vector<8x128xf32>
    %c864 = arith.constant 864 : index
    %c0_200 = arith.constant 0 : index
    %384 = vector.load %arg2[%c864, %c0_200] : memref<1920x128xf32, #tpu.memory_space<vmem>>, vector<8x128xf32>
    tpu.vector_store %arg2[%c864, %c0_200], %366 {strides = array<i32>} : memref<1920x128xf32, #tpu.memory_space<vmem>>, vector<8x128xf32>,
    %c872 = arith.constant 872 : index
    %c0_201 = arith.constant 0 : index
    %385 = vector.load %arg2[%c872, %c0_201] : memref<1920x128xf32, #tpu.memory_space<vmem>>, vector<8x128xf32>
    tpu.vector_store %arg2[%c872, %c0_201], %367 {strides = array<i32>} : memref<1920x128xf32, #tpu.memory_space<vmem>>, vector<8x128xf32>,
    %c880 = arith.constant 880 : index
    %c0_202 = arith.constant 0 : index
    %386 = vector.load %arg2[%c880, %c0_202] : memref<1920x128xf32, #tpu.memory_space<vmem>>, vector<8x128xf32>
    tpu.vector_store %arg2[%c880, %c0_202], %345 {strides = array<i32>} : memref<1920x128xf32, #tpu.memory_space<vmem>>, vector<8x128xf32>,
    %c888 = arith.constant 888 : index
    %c0_203 = arith.constant 0 : index
    %387 = vector.load %arg2[%c888, %c0_203] : memref<1920x128xf32, #tpu.memory_space<vmem>>, vector<8x128xf32>
    tpu.vector_store %arg2[%c888, %c0_203], %374 {strides = array<i32>} : memref<1920x128xf32, #tpu.memory_space<vmem>>, vector<8x128xf32>,
    %c896 = arith.constant 896 : index
    %c0_204 = arith.constant 0 : index
    %388 = vector.load %arg2[%c896, %c0_204] : memref<1920x128xf32, #tpu.memory_space<vmem>>, vector<8x128xf32>
    tpu.vector_store %arg2[%c896, %c0_204], %363 {strides = array<i32>} : memref<1920x128xf32, #tpu.memory_space<vmem>>, vector<8x128xf32>,
    %c904 = arith.constant 904 : index
    %c0_205 = arith.constant 0 : index
    %389 = vector.load %arg2[%c904, %c0_205] : memref<1920x128xf32, #tpu.memory_space<vmem>>, vector<8x128xf32>
    tpu.vector_store %arg2[%c904, %c0_205], %362 {strides = array<i32>} : memref<1920x128xf32, #tpu.memory_space<vmem>>, vector<8x128xf32>,
    %c912 = arith.constant 912 : index
    %c0_206 = arith.constant 0 : index
    %390 = vector.load %arg2[%c912, %c0_206] : memref<1920x128xf32, #tpu.memory_space<vmem>>, vector<8x128xf32>
    tpu.vector_store %arg2[%c912, %c0_206], %0 {strides = array<i32>} : memref<1920x128xf32, #tpu.memory_space<vmem>>, vector<8x128xf32>,
    %cst_207 = arith.constant 7.000000e-03 : f32
    %391 = vector.broadcast %cst_207 : f32 to vector<8x128xf32>
    %c920 = arith.constant 920 : index
    %c0_208 = arith.constant 0 : index
    %392 = vector.load %arg2[%c920, %c0_208] : memref<1920x128xf32, #tpu.memory_space<vmem>>, vector<8x128xf32>
    tpu.vector_store %arg2[%c920, %c0_208], %391 {strides = array<i32>} : memref<1920x128xf32, #tpu.memory_space<vmem>>, vector<8x128xf32>,
    %c928 = arith.constant 928 : index
    %c0_209 = arith.constant 0 : index
    %393 = vector.load %arg2[%c928, %c0_209] : memref<1920x128xf32, #tpu.memory_space<vmem>>, vector<8x128xf32>
    tpu.vector_store %arg2[%c928, %c0_209], %375 {strides = array<i32>} : memref<1920x128xf32, #tpu.memory_space<vmem>>, vector<8x128xf32>,
    %c936 = arith.constant 936 : index
    %c0_210 = arith.constant 0 : index
    %394 = vector.load %arg2[%c936, %c0_210] : memref<1920x128xf32, #tpu.memory_space<vmem>>, vector<8x128xf32>
    tpu.vector_store %arg2[%c936, %c0_210], %376 {strides = array<i32>} : memref<1920x128xf32, #tpu.memory_space<vmem>>, vector<8x128xf32>,
    %c944 = arith.constant 944 : index
    %c0_211 = arith.constant 0 : index
    %395 = vector.load %arg2[%c944, %c0_211] : memref<1920x128xf32, #tpu.memory_space<vmem>>, vector<8x128xf32>
    tpu.vector_store %arg2[%c944, %c0_211], %344 {strides = array<i32>} : memref<1920x128xf32, #tpu.memory_space<vmem>>, vector<8x128xf32>,
    %c952 = arith.constant 952 : index
    %c0_212 = arith.constant 0 : index
    %396 = vector.load %arg2[%c952, %c0_212] : memref<1920x128xf32, #tpu.memory_space<vmem>>, vector<8x128xf32>
    tpu.vector_store %arg2[%c952, %c0_212], %383 {strides = array<i32>} : memref<1920x128xf32, #tpu.memory_space<vmem>>, vector<8x128xf32>,
    %cst_213 = arith.constant 1.043400e+00 : f32
    %397 = vector.broadcast %cst_213 : f32 to vector<8x128xf32>
    %398 = arith.mulf %7, %397 : vector<8x128xf32>
    %399 = math.cos %398 : vector<8x128xf32>
    %400 = math.sin %398 : vector<8x128xf32>
    %cst_214 = arith.constant 0.000000e+00 : f32
    %401 = vector.broadcast %cst_214 : f32 to vector<8x128xf32>
    %402 = arith.subf %401, %400 : vector<8x128xf32>
    %403 = arith.mulf %367, %399 : vector<8x128xf32>
    %404 = arith.mulf %345, %400 : vector<8x128xf32>
    %405 = arith.addf %403, %404 : vector<8x128xf32>
    %406 = arith.mulf %367, %402 : vector<8x128xf32>
    %407 = arith.mulf %345, %399 : vector<8x128xf32>
    %408 = arith.addf %406, %407 : vector<8x128xf32>
    %cst_215 = arith.constant 6.000000e-03 : f32
    %409 = vector.broadcast %cst_215 : f32 to vector<8x128xf32>
    %410 = arith.mulf %366, %409 : vector<8x128xf32>
    %cst_216 = arith.constant 5.000000e-03 : f32
    %411 = vector.broadcast %cst_216 : f32 to vector<8x128xf32>
    %412 = arith.mulf %367, %411 : vector<8x128xf32>
    %413 = arith.addf %410, %412 : vector<8x128xf32>
    %cst_217 = arith.constant 4.500000e-02 : f32
    %414 = vector.broadcast %cst_217 : f32 to vector<8x128xf32>
    %415 = arith.mulf %345, %414 : vector<8x128xf32>
    %416 = arith.addf %413, %415 : vector<8x128xf32>
    %417 = arith.addf %416, %374 : vector<8x128xf32>
    %418 = arith.mulf %362, %399 : vector<8x128xf32>
    %419 = arith.mulf %362, %402 : vector<8x128xf32>
    %cst_218 = arith.constant 6.000000e-03 : f32
    %420 = vector.broadcast %cst_218 : f32 to vector<8x128xf32>
    %421 = arith.mulf %363, %420 : vector<8x128xf32>
    %cst_219 = arith.constant 5.000000e-03 : f32
    %422 = vector.broadcast %cst_219 : f32 to vector<8x128xf32>
    %423 = arith.mulf %362, %422 : vector<8x128xf32>
    %424 = arith.addf %421, %423 : vector<8x128xf32>
    %cst_220 = arith.constant 7.000000e-03 : f32
    %425 = vector.broadcast %cst_220 : f32 to vector<8x128xf32>
    %426 = arith.addf %424, %425 : vector<8x128xf32>
    %427 = arith.mulf %376, %399 : vector<8x128xf32>
    %428 = arith.mulf %344, %400 : vector<8x128xf32>
    %429 = arith.addf %427, %428 : vector<8x128xf32>
    %430 = arith.mulf %376, %402 : vector<8x128xf32>
    %431 = arith.mulf %344, %399 : vector<8x128xf32>
    %432 = arith.addf %430, %431 : vector<8x128xf32>
    %cst_221 = arith.constant 6.000000e-03 : f32
    %433 = vector.broadcast %cst_221 : f32 to vector<8x128xf32>
    %434 = arith.mulf %375, %433 : vector<8x128xf32>
    %cst_222 = arith.constant 5.000000e-03 : f32
    %435 = vector.broadcast %cst_222 : f32 to vector<8x128xf32>
    %436 = arith.mulf %376, %435 : vector<8x128xf32>
    %437 = arith.addf %434, %436 : vector<8x128xf32>
    %cst_223 = arith.constant 4.500000e-02 : f32
    %438 = vector.broadcast %cst_223 : f32 to vector<8x128xf32>
    %439 = arith.mulf %344, %438 : vector<8x128xf32>
    %440 = arith.addf %437, %439 : vector<8x128xf32>
    %441 = arith.addf %440, %383 : vector<8x128xf32>
    %c960 = arith.constant 960 : index
    %c0_224 = arith.constant 0 : index
    %442 = vector.load %arg2[%c960, %c0_224] : memref<1920x128xf32, #tpu.memory_space<vmem>>, vector<8x128xf32>
    tpu.vector_store %arg2[%c960, %c0_224], %366 {strides = array<i32>} : memref<1920x128xf32, #tpu.memory_space<vmem>>, vector<8x128xf32>,
    %c968 = arith.constant 968 : index
    %c0_225 = arith.constant 0 : index
    %443 = vector.load %arg2[%c968, %c0_225] : memref<1920x128xf32, #tpu.memory_space<vmem>>, vector<8x128xf32>
    tpu.vector_store %arg2[%c968, %c0_225], %405 {strides = array<i32>} : memref<1920x128xf32, #tpu.memory_space<vmem>>, vector<8x128xf32>,
    %c976 = arith.constant 976 : index
    %c0_226 = arith.constant 0 : index
    %444 = vector.load %arg2[%c976, %c0_226] : memref<1920x128xf32, #tpu.memory_space<vmem>>, vector<8x128xf32>
    tpu.vector_store %arg2[%c976, %c0_226], %408 {strides = array<i32>} : memref<1920x128xf32, #tpu.memory_space<vmem>>, vector<8x128xf32>,
    %c984 = arith.constant 984 : index
    %c0_227 = arith.constant 0 : index
    %445 = vector.load %arg2[%c984, %c0_227] : memref<1920x128xf32, #tpu.memory_space<vmem>>, vector<8x128xf32>
    tpu.vector_store %arg2[%c984, %c0_227], %417 {strides = array<i32>} : memref<1920x128xf32, #tpu.memory_space<vmem>>, vector<8x128xf32>,
    %c992 = arith.constant 992 : index
    %c0_228 = arith.constant 0 : index
    %446 = vector.load %arg2[%c992, %c0_228] : memref<1920x128xf32, #tpu.memory_space<vmem>>, vector<8x128xf32>
    tpu.vector_store %arg2[%c992, %c0_228], %363 {strides = array<i32>} : memref<1920x128xf32, #tpu.memory_space<vmem>>, vector<8x128xf32>,
    %c1000 = arith.constant 1000 : index
    %c0_229 = arith.constant 0 : index
    %447 = vector.load %arg2[%c1000, %c0_229] : memref<1920x128xf32, #tpu.memory_space<vmem>>, vector<8x128xf32>
    tpu.vector_store %arg2[%c1000, %c0_229], %418 {strides = array<i32>} : memref<1920x128xf32, #tpu.memory_space<vmem>>, vector<8x128xf32>,
    %c1008 = arith.constant 1008 : index
    %c0_230 = arith.constant 0 : index
    %448 = vector.load %arg2[%c1008, %c0_230] : memref<1920x128xf32, #tpu.memory_space<vmem>>, vector<8x128xf32>
    tpu.vector_store %arg2[%c1008, %c0_230], %419 {strides = array<i32>} : memref<1920x128xf32, #tpu.memory_space<vmem>>, vector<8x128xf32>,
    %c1016 = arith.constant 1016 : index
    %c0_231 = arith.constant 0 : index
    %449 = vector.load %arg2[%c1016, %c0_231] : memref<1920x128xf32, #tpu.memory_space<vmem>>, vector<8x128xf32>
    tpu.vector_store %arg2[%c1016, %c0_231], %426 {strides = array<i32>} : memref<1920x128xf32, #tpu.memory_space<vmem>>, vector<8x128xf32>,
    %c1024 = arith.constant 1024 : index
    %c0_232 = arith.constant 0 : index
    %450 = vector.load %arg2[%c1024, %c0_232] : memref<1920x128xf32, #tpu.memory_space<vmem>>, vector<8x128xf32>
    tpu.vector_store %arg2[%c1024, %c0_232], %375 {strides = array<i32>} : memref<1920x128xf32, #tpu.memory_space<vmem>>, vector<8x128xf32>,
    %c1032 = arith.constant 1032 : index
    %c0_233 = arith.constant 0 : index
    %451 = vector.load %arg2[%c1032, %c0_233] : memref<1920x128xf32, #tpu.memory_space<vmem>>, vector<8x128xf32>
    tpu.vector_store %arg2[%c1032, %c0_233], %429 {strides = array<i32>} : memref<1920x128xf32, #tpu.memory_space<vmem>>, vector<8x128xf32>,
    %c1040 = arith.constant 1040 : index
    %c0_234 = arith.constant 0 : index
    %452 = vector.load %arg2[%c1040, %c0_234] : memref<1920x128xf32, #tpu.memory_space<vmem>>, vector<8x128xf32>
    tpu.vector_store %arg2[%c1040, %c0_234], %432 {strides = array<i32>} : memref<1920x128xf32, #tpu.memory_space<vmem>>, vector<8x128xf32>,
    %c1048 = arith.constant 1048 : index
    %c0_235 = arith.constant 0 : index
    %453 = vector.load %arg2[%c1048, %c0_235] : memref<1920x128xf32, #tpu.memory_space<vmem>>, vector<8x128xf32>
    tpu.vector_store %arg2[%c1048, %c0_235], %441 {strides = array<i32>} : memref<1920x128xf32, #tpu.memory_space<vmem>>, vector<8x128xf32>,
    %cst_236 = arith.constant 0.000000e+00 : f32
    %454 = vector.broadcast %cst_236 : f32 to vector<8x128xf32>
    %455 = arith.subf %454, %363 : vector<8x128xf32>
    %456 = arith.mulf %366, %362 : vector<8x128xf32>
    %457 = arith.mulf %408, %455 : vector<8x128xf32>
    %458 = arith.addf %456, %457 : vector<8x128xf32>
    %459 = arith.mulf %366, %363 : vector<8x128xf32>
    %460 = arith.mulf %408, %362 : vector<8x128xf32>
    %461 = arith.addf %459, %460 : vector<8x128xf32>
    %cst_237 = arith.constant 8.000000e-03 : f32
    %462 = vector.broadcast %cst_237 : f32 to vector<8x128xf32>
    %463 = arith.mulf %366, %462 : vector<8x128xf32>
    %cst_238 = arith.constant 6.000000e-03 : f32
    %464 = vector.broadcast %cst_238 : f32 to vector<8x128xf32>
    %465 = arith.mulf %405, %464 : vector<8x128xf32>
    %466 = arith.addf %463, %465 : vector<8x128xf32>
    %cst_239 = arith.constant 4.650000e-02 : f32
    %467 = vector.broadcast %cst_239 : f32 to vector<8x128xf32>
    %468 = arith.mulf %408, %467 : vector<8x128xf32>
    %469 = arith.addf %466, %468 : vector<8x128xf32>
    %470 = arith.addf %469, %417 : vector<8x128xf32>
    %471 = arith.mulf %363, %362 : vector<8x128xf32>
    %472 = arith.mulf %419, %455 : vector<8x128xf32>
    %473 = arith.addf %471, %472 : vector<8x128xf32>
    %474 = arith.mulf %363, %363 : vector<8x128xf32>
    %475 = arith.mulf %419, %362 : vector<8x128xf32>
    %476 = arith.addf %474, %475 : vector<8x128xf32>
    %cst_240 = arith.constant 8.000000e-03 : f32
    %477 = vector.broadcast %cst_240 : f32 to vector<8x128xf32>
    %478 = arith.mulf %363, %477 : vector<8x128xf32>
    %cst_241 = arith.constant 6.000000e-03 : f32
    %479 = vector.broadcast %cst_241 : f32 to vector<8x128xf32>
    %480 = arith.mulf %418, %479 : vector<8x128xf32>
    %481 = arith.addf %478, %480 : vector<8x128xf32>
    %cst_242 = arith.constant 4.650000e-02 : f32
    %482 = vector.broadcast %cst_242 : f32 to vector<8x128xf32>
    %483 = arith.mulf %419, %482 : vector<8x128xf32>
    %484 = arith.addf %481, %483 : vector<8x128xf32>
    %485 = arith.addf %484, %426 : vector<8x128xf32>
    %486 = arith.mulf %375, %362 : vector<8x128xf32>
    %487 = arith.mulf %432, %455 : vector<8x128xf32>
    %488 = arith.addf %486, %487 : vector<8x128xf32>
    %489 = arith.mulf %375, %363 : vector<8x128xf32>
    %490 = arith.mulf %432, %362 : vector<8x128xf32>
    %491 = arith.addf %489, %490 : vector<8x128xf32>
    %cst_243 = arith.constant 8.000000e-03 : f32
    %492 = vector.broadcast %cst_243 : f32 to vector<8x128xf32>
    %493 = arith.mulf %375, %492 : vector<8x128xf32>
    %cst_244 = arith.constant 6.000000e-03 : f32
    %494 = vector.broadcast %cst_244 : f32 to vector<8x128xf32>
    %495 = arith.mulf %429, %494 : vector<8x128xf32>
    %496 = arith.addf %493, %495 : vector<8x128xf32>
    %cst_245 = arith.constant 4.650000e-02 : f32
    %497 = vector.broadcast %cst_245 : f32 to vector<8x128xf32>
    %498 = arith.mulf %432, %497 : vector<8x128xf32>
    %499 = arith.addf %496, %498 : vector<8x128xf32>
    %500 = arith.addf %499, %441 : vector<8x128xf32>
    %c1056 = arith.constant 1056 : index
    %c0_246 = arith.constant 0 : index
    %501 = vector.load %arg2[%c1056, %c0_246] : memref<1920x128xf32, #tpu.memory_space<vmem>>, vector<8x128xf32>
    tpu.vector_store %arg2[%c1056, %c0_246], %458 {strides = array<i32>} : memref<1920x128xf32, #tpu.memory_space<vmem>>, vector<8x128xf32>,
    %c1064 = arith.constant 1064 : index
    %c0_247 = arith.constant 0 : index
    %502 = vector.load %arg2[%c1064, %c0_247] : memref<1920x128xf32, #tpu.memory_space<vmem>>, vector<8x128xf32>
    tpu.vector_store %arg2[%c1064, %c0_247], %405 {strides = array<i32>} : memref<1920x128xf32, #tpu.memory_space<vmem>>, vector<8x128xf32>,
    %c1072 = arith.constant 1072 : index
    %c0_248 = arith.constant 0 : index
    %503 = vector.load %arg2[%c1072, %c0_248] : memref<1920x128xf32, #tpu.memory_space<vmem>>, vector<8x128xf32>
    tpu.vector_store %arg2[%c1072, %c0_248], %461 {strides = array<i32>} : memref<1920x128xf32, #tpu.memory_space<vmem>>, vector<8x128xf32>,
    %c1080 = arith.constant 1080 : index
    %c0_249 = arith.constant 0 : index
    %504 = vector.load %arg2[%c1080, %c0_249] : memref<1920x128xf32, #tpu.memory_space<vmem>>, vector<8x128xf32>
    tpu.vector_store %arg2[%c1080, %c0_249], %470 {strides = array<i32>} : memref<1920x128xf32, #tpu.memory_space<vmem>>, vector<8x128xf32>,
    %c1088 = arith.constant 1088 : index
    %c0_250 = arith.constant 0 : index
    %505 = vector.load %arg2[%c1088, %c0_250] : memref<1920x128xf32, #tpu.memory_space<vmem>>, vector<8x128xf32>
    tpu.vector_store %arg2[%c1088, %c0_250], %473 {strides = array<i32>} : memref<1920x128xf32, #tpu.memory_space<vmem>>, vector<8x128xf32>,
    %c1096 = arith.constant 1096 : index
    %c0_251 = arith.constant 0 : index
    %506 = vector.load %arg2[%c1096, %c0_251] : memref<1920x128xf32, #tpu.memory_space<vmem>>, vector<8x128xf32>
    tpu.vector_store %arg2[%c1096, %c0_251], %418 {strides = array<i32>} : memref<1920x128xf32, #tpu.memory_space<vmem>>, vector<8x128xf32>,
    %c1104 = arith.constant 1104 : index
    %c0_252 = arith.constant 0 : index
    %507 = vector.load %arg2[%c1104, %c0_252] : memref<1920x128xf32, #tpu.memory_space<vmem>>, vector<8x128xf32>
    tpu.vector_store %arg2[%c1104, %c0_252], %476 {strides = array<i32>} : memref<1920x128xf32, #tpu.memory_space<vmem>>, vector<8x128xf32>,
    %c1112 = arith.constant 1112 : index
    %c0_253 = arith.constant 0 : index
    %508 = vector.load %arg2[%c1112, %c0_253] : memref<1920x128xf32, #tpu.memory_space<vmem>>, vector<8x128xf32>
    tpu.vector_store %arg2[%c1112, %c0_253], %485 {strides = array<i32>} : memref<1920x128xf32, #tpu.memory_space<vmem>>, vector<8x128xf32>,
    %c1120 = arith.constant 1120 : index
    %c0_254 = arith.constant 0 : index
    %509 = vector.load %arg2[%c1120, %c0_254] : memref<1920x128xf32, #tpu.memory_space<vmem>>, vector<8x128xf32>
    tpu.vector_store %arg2[%c1120, %c0_254], %488 {strides = array<i32>} : memref<1920x128xf32, #tpu.memory_space<vmem>>, vector<8x128xf32>,
    %c1128 = arith.constant 1128 : index
    %c0_255 = arith.constant 0 : index
    %510 = vector.load %arg2[%c1128, %c0_255] : memref<1920x128xf32, #tpu.memory_space<vmem>>, vector<8x128xf32>
    tpu.vector_store %arg2[%c1128, %c0_255], %429 {strides = array<i32>} : memref<1920x128xf32, #tpu.memory_space<vmem>>, vector<8x128xf32>,
    %c1136 = arith.constant 1136 : index
    %c0_256 = arith.constant 0 : index
    %511 = vector.load %arg2[%c1136, %c0_256] : memref<1920x128xf32, #tpu.memory_space<vmem>>, vector<8x128xf32>
    tpu.vector_store %arg2[%c1136, %c0_256], %491 {strides = array<i32>} : memref<1920x128xf32, #tpu.memory_space<vmem>>, vector<8x128xf32>,
    %c1144 = arith.constant 1144 : index
    %c0_257 = arith.constant 0 : index
    %512 = vector.load %arg2[%c1144, %c0_257] : memref<1920x128xf32, #tpu.memory_space<vmem>>, vector<8x128xf32>
    tpu.vector_store %arg2[%c1144, %c0_257], %500 {strides = array<i32>} : memref<1920x128xf32, #tpu.memory_space<vmem>>, vector<8x128xf32>,
    %513 = math.cos %8 : vector<8x128xf32>
    %514 = math.sin %8 : vector<8x128xf32>
    %cst_258 = arith.constant 0.000000e+00 : f32
    %515 = vector.broadcast %cst_258 : f32 to vector<8x128xf32>
    %516 = arith.subf %515, %514 : vector<8x128xf32>
    %c1152 = arith.constant 1152 : index
    %c0_259 = arith.constant 0 : index
    %517 = vector.load %arg2[%c1152, %c0_259] : memref<1920x128xf32, #tpu.memory_space<vmem>>, vector<8x128xf32>
    tpu.vector_store %arg2[%c1152, %c0_259], %513 {strides = array<i32>} : memref<1920x128xf32, #tpu.memory_space<vmem>>, vector<8x128xf32>,
    %c1160 = arith.constant 1160 : index
    %c0_260 = arith.constant 0 : index
    %518 = vector.load %arg2[%c1160, %c0_260] : memref<1920x128xf32, #tpu.memory_space<vmem>>, vector<8x128xf32>
    tpu.vector_store %arg2[%c1160, %c0_260], %516 {strides = array<i32>} : memref<1920x128xf32, #tpu.memory_space<vmem>>, vector<8x128xf32>,
    %c1168 = arith.constant 1168 : index
    %c0_261 = arith.constant 0 : index
    %519 = vector.load %arg2[%c1168, %c0_261] : memref<1920x128xf32, #tpu.memory_space<vmem>>, vector<8x128xf32>
    tpu.vector_store %arg2[%c1168, %c0_261], %0 {strides = array<i32>} : memref<1920x128xf32, #tpu.memory_space<vmem>>, vector<8x128xf32>,
    %c1176 = arith.constant 1176 : index
    %c0_262 = arith.constant 0 : index
    %520 = vector.load %arg2[%c1176, %c0_262] : memref<1920x128xf32, #tpu.memory_space<vmem>>, vector<8x128xf32>
    tpu.vector_store %arg2[%c1176, %c0_262], %18 {strides = array<i32>} : memref<1920x128xf32, #tpu.memory_space<vmem>>, vector<8x128xf32>,
    %c1184 = arith.constant 1184 : index
    %c0_263 = arith.constant 0 : index
    %521 = vector.load %arg2[%c1184, %c0_263] : memref<1920x128xf32, #tpu.memory_space<vmem>>, vector<8x128xf32>
    tpu.vector_store %arg2[%c1184, %c0_263], %514 {strides = array<i32>} : memref<1920x128xf32, #tpu.memory_space<vmem>>, vector<8x128xf32>,
    %c1192 = arith.constant 1192 : index
    %c0_264 = arith.constant 0 : index
    %522 = vector.load %arg2[%c1192, %c0_264] : memref<1920x128xf32, #tpu.memory_space<vmem>>, vector<8x128xf32>
    tpu.vector_store %arg2[%c1192, %c0_264], %513 {strides = array<i32>} : memref<1920x128xf32, #tpu.memory_space<vmem>>, vector<8x128xf32>,
    %c1200 = arith.constant 1200 : index
    %c0_265 = arith.constant 0 : index
    %523 = vector.load %arg2[%c1200, %c0_265] : memref<1920x128xf32, #tpu.memory_space<vmem>>, vector<8x128xf32>
    tpu.vector_store %arg2[%c1200, %c0_265], %0 {strides = array<i32>} : memref<1920x128xf32, #tpu.memory_space<vmem>>, vector<8x128xf32>,
    %cst_266 = arith.constant 7.000000e-03 : f32
    %524 = vector.broadcast %cst_266 : f32 to vector<8x128xf32>
    %c1208 = arith.constant 1208 : index
    %c0_267 = arith.constant 0 : index
    %525 = vector.load %arg2[%c1208, %c0_267] : memref<1920x128xf32, #tpu.memory_space<vmem>>, vector<8x128xf32>
    tpu.vector_store %arg2[%c1208, %c0_267], %524 {strides = array<i32>} : memref<1920x128xf32, #tpu.memory_space<vmem>>, vector<8x128xf32>,
    %c1216 = arith.constant 1216 : index
    %c0_268 = arith.constant 0 : index
    %526 = vector.load %arg2[%c1216, %c0_268] : memref<1920x128xf32, #tpu.memory_space<vmem>>, vector<8x128xf32>
    tpu.vector_store %arg2[%c1216, %c0_268], %0 {strides = array<i32>} : memref<1920x128xf32, #tpu.memory_space<vmem>>, vector<8x128xf32>,
    %c1224 = arith.constant 1224 : index
    %c0_269 = arith.constant 0 : index
    %527 = vector.load %arg2[%c1224, %c0_269] : memref<1920x128xf32, #tpu.memory_space<vmem>>, vector<8x128xf32>
    tpu.vector_store %arg2[%c1224, %c0_269], %0 {strides = array<i32>} : memref<1920x128xf32, #tpu.memory_space<vmem>>, vector<8x128xf32>,
    %c1232 = arith.constant 1232 : index
    %c0_270 = arith.constant 0 : index
    %528 = vector.load %arg2[%c1232, %c0_270] : memref<1920x128xf32, #tpu.memory_space<vmem>>, vector<8x128xf32>
    tpu.vector_store %arg2[%c1232, %c0_270], %1 {strides = array<i32>} : memref<1920x128xf32, #tpu.memory_space<vmem>>, vector<8x128xf32>,
    %cst_271 = arith.constant 4.800000e-02 : f32
    %529 = vector.broadcast %cst_271 : f32 to vector<8x128xf32>
    %c1240 = arith.constant 1240 : index
    %c0_272 = arith.constant 0 : index
    %530 = vector.load %arg2[%c1240, %c0_272] : memref<1920x128xf32, #tpu.memory_space<vmem>>, vector<8x128xf32>
    tpu.vector_store %arg2[%c1240, %c0_272], %529 {strides = array<i32>} : memref<1920x128xf32, #tpu.memory_space<vmem>>, vector<8x128xf32>,
    %531 = math.cos %9 : vector<8x128xf32>
    %532 = math.sin %9 : vector<8x128xf32>
    %cst_273 = arith.constant 0.000000e+00 : f32
    %533 = vector.broadcast %cst_273 : f32 to vector<8x128xf32>
    %534 = arith.subf %533, %532 : vector<8x128xf32>
    %535 = arith.mulf %516, %531 : vector<8x128xf32>
    %536 = arith.mulf %516, %534 : vector<8x128xf32>
    %cst_274 = arith.constant 4.000000e-03 : f32
    %537 = vector.broadcast %cst_274 : f32 to vector<8x128xf32>
    %538 = arith.mulf %513, %537 : vector<8x128xf32>
    %cst_275 = arith.constant 8.000000e-03 : f32
    %539 = vector.broadcast %cst_275 : f32 to vector<8x128xf32>
    %540 = arith.mulf %516, %539 : vector<8x128xf32>
    %541 = arith.addf %538, %540 : vector<8x128xf32>
    %cst_276 = arith.constant 2.000000e-03 : f32
    %542 = vector.broadcast %cst_276 : f32 to vector<8x128xf32>
    %543 = arith.addf %541, %542 : vector<8x128xf32>
    %544 = arith.mulf %513, %531 : vector<8x128xf32>
    %545 = arith.mulf %513, %534 : vector<8x128xf32>
    %cst_277 = arith.constant 4.000000e-03 : f32
    %546 = vector.broadcast %cst_277 : f32 to vector<8x128xf32>
    %547 = arith.mulf %514, %546 : vector<8x128xf32>
    %cst_278 = arith.constant 8.000000e-03 : f32
    %548 = vector.broadcast %cst_278 : f32 to vector<8x128xf32>
    %549 = arith.mulf %513, %548 : vector<8x128xf32>
    %550 = arith.addf %547, %549 : vector<8x128xf32>
    %cst_279 = arith.constant 7.000000e-03 : f32
    %551 = vector.broadcast %cst_279 : f32 to vector<8x128xf32>
    %552 = arith.addf %550, %551 : vector<8x128xf32>
    %c1248 = arith.constant 1248 : index
    %c0_280 = arith.constant 0 : index
    %553 = vector.load %arg2[%c1248, %c0_280] : memref<1920x128xf32, #tpu.memory_space<vmem>>, vector<8x128xf32>
    tpu.vector_store %arg2[%c1248, %c0_280], %513 {strides = array<i32>} : memref<1920x128xf32, #tpu.memory_space<vmem>>, vector<8x128xf32>,
    %c1256 = arith.constant 1256 : index
    %c0_281 = arith.constant 0 : index
    %554 = vector.load %arg2[%c1256, %c0_281] : memref<1920x128xf32, #tpu.memory_space<vmem>>, vector<8x128xf32>
    tpu.vector_store %arg2[%c1256, %c0_281], %535 {strides = array<i32>} : memref<1920x128xf32, #tpu.memory_space<vmem>>, vector<8x128xf32>,
    %c1264 = arith.constant 1264 : index
    %c0_282 = arith.constant 0 : index
    %555 = vector.load %arg2[%c1264, %c0_282] : memref<1920x128xf32, #tpu.memory_space<vmem>>, vector<8x128xf32>
    tpu.vector_store %arg2[%c1264, %c0_282], %536 {strides = array<i32>} : memref<1920x128xf32, #tpu.memory_space<vmem>>, vector<8x128xf32>,
    %c1272 = arith.constant 1272 : index
    %c0_283 = arith.constant 0 : index
    %556 = vector.load %arg2[%c1272, %c0_283] : memref<1920x128xf32, #tpu.memory_space<vmem>>, vector<8x128xf32>
    tpu.vector_store %arg2[%c1272, %c0_283], %543 {strides = array<i32>} : memref<1920x128xf32, #tpu.memory_space<vmem>>, vector<8x128xf32>,
    %c1280 = arith.constant 1280 : index
    %c0_284 = arith.constant 0 : index
    %557 = vector.load %arg2[%c1280, %c0_284] : memref<1920x128xf32, #tpu.memory_space<vmem>>, vector<8x128xf32>
    tpu.vector_store %arg2[%c1280, %c0_284], %514 {strides = array<i32>} : memref<1920x128xf32, #tpu.memory_space<vmem>>, vector<8x128xf32>,
    %c1288 = arith.constant 1288 : index
    %c0_285 = arith.constant 0 : index
    %558 = vector.load %arg2[%c1288, %c0_285] : memref<1920x128xf32, #tpu.memory_space<vmem>>, vector<8x128xf32>
    tpu.vector_store %arg2[%c1288, %c0_285], %544 {strides = array<i32>} : memref<1920x128xf32, #tpu.memory_space<vmem>>, vector<8x128xf32>,
    %c1296 = arith.constant 1296 : index
    %c0_286 = arith.constant 0 : index
    %559 = vector.load %arg2[%c1296, %c0_286] : memref<1920x128xf32, #tpu.memory_space<vmem>>, vector<8x128xf32>
    tpu.vector_store %arg2[%c1296, %c0_286], %545 {strides = array<i32>} : memref<1920x128xf32, #tpu.memory_space<vmem>>, vector<8x128xf32>,
    %c1304 = arith.constant 1304 : index
    %c0_287 = arith.constant 0 : index
    %560 = vector.load %arg2[%c1304, %c0_287] : memref<1920x128xf32, #tpu.memory_space<vmem>>, vector<8x128xf32>
    tpu.vector_store %arg2[%c1304, %c0_287], %552 {strides = array<i32>} : memref<1920x128xf32, #tpu.memory_space<vmem>>, vector<8x128xf32>,
    %c1312 = arith.constant 1312 : index
    %c0_288 = arith.constant 0 : index
    %561 = vector.load %arg2[%c1312, %c0_288] : memref<1920x128xf32, #tpu.memory_space<vmem>>, vector<8x128xf32>
    tpu.vector_store %arg2[%c1312, %c0_288], %0 {strides = array<i32>} : memref<1920x128xf32, #tpu.memory_space<vmem>>, vector<8x128xf32>,
    %c1320 = arith.constant 1320 : index
    %c0_289 = arith.constant 0 : index
    %562 = vector.load %arg2[%c1320, %c0_289] : memref<1920x128xf32, #tpu.memory_space<vmem>>, vector<8x128xf32>
    tpu.vector_store %arg2[%c1320, %c0_289], %532 {strides = array<i32>} : memref<1920x128xf32, #tpu.memory_space<vmem>>, vector<8x128xf32>,
    %c1328 = arith.constant 1328 : index
    %c0_290 = arith.constant 0 : index
    %563 = vector.load %arg2[%c1328, %c0_290] : memref<1920x128xf32, #tpu.memory_space<vmem>>, vector<8x128xf32>
    tpu.vector_store %arg2[%c1328, %c0_290], %531 {strides = array<i32>} : memref<1920x128xf32, #tpu.memory_space<vmem>>, vector<8x128xf32>,
    %cst_291 = arith.constant 0.0974999964 : f32
    %564 = vector.broadcast %cst_291 : f32 to vector<8x128xf32>
    %c1336 = arith.constant 1336 : index
    %c0_292 = arith.constant 0 : index
    %565 = vector.load %arg2[%c1336, %c0_292] : memref<1920x128xf32, #tpu.memory_space<vmem>>, vector<8x128xf32>
    tpu.vector_store %arg2[%c1336, %c0_292], %564 {strides = array<i32>} : memref<1920x128xf32, #tpu.memory_space<vmem>>, vector<8x128xf32>,
    %cst_293 = arith.constant 1.045000e+00 : f32
    %566 = vector.broadcast %cst_293 : f32 to vector<8x128xf32>
    %567 = arith.mulf %9, %566 : vector<8x128xf32>
    %568 = math.cos %567 : vector<8x128xf32>
    %569 = math.sin %567 : vector<8x128xf32>
    %cst_294 = arith.constant 0.000000e+00 : f32
    %570 = vector.broadcast %cst_294 : f32 to vector<8x128xf32>
    %571 = arith.subf %570, %569 : vector<8x128xf32>
    %572 = arith.mulf %513, %568 : vector<8x128xf32>
    %573 = arith.mulf %536, %571 : vector<8x128xf32>
    %574 = arith.addf %572, %573 : vector<8x128xf32>
    %575 = arith.mulf %513, %569 : vector<8x128xf32>
    %576 = arith.mulf %536, %568 : vector<8x128xf32>
    %577 = arith.addf %575, %576 : vector<8x128xf32>
    %cst_295 = arith.constant 6.000000e-03 : f32
    %578 = vector.broadcast %cst_295 : f32 to vector<8x128xf32>
    %579 = arith.mulf %513, %578 : vector<8x128xf32>
    %cst_296 = arith.constant 0.00899999961 : f32
    %580 = vector.broadcast %cst_296 : f32 to vector<8x128xf32>
    %581 = arith.mulf %535, %580 : vector<8x128xf32>
    %582 = arith.addf %579, %581 : vector<8x128xf32>
    %cst_297 = arith.constant 5.100000e-02 : f32
    %583 = vector.broadcast %cst_297 : f32 to vector<8x128xf32>
    %584 = arith.mulf %536, %583 : vector<8x128xf32>
    %585 = arith.addf %582, %584 : vector<8x128xf32>
    %586 = arith.addf %585, %543 : vector<8x128xf32>
    %587 = arith.mulf %514, %568 : vector<8x128xf32>
    %588 = arith.mulf %545, %571 : vector<8x128xf32>
    %589 = arith.addf %587, %588 : vector<8x128xf32>
    %590 = arith.mulf %514, %569 : vector<8x128xf32>
    %591 = arith.mulf %545, %568 : vector<8x128xf32>
    %592 = arith.addf %590, %591 : vector<8x128xf32>
    %cst_298 = arith.constant 6.000000e-03 : f32
    %593 = vector.broadcast %cst_298 : f32 to vector<8x128xf32>
    %594 = arith.mulf %514, %593 : vector<8x128xf32>
    %cst_299 = arith.constant 0.00899999961 : f32
    %595 = vector.broadcast %cst_299 : f32 to vector<8x128xf32>
    %596 = arith.mulf %544, %595 : vector<8x128xf32>
    %597 = arith.addf %594, %596 : vector<8x128xf32>
    %cst_300 = arith.constant 5.100000e-02 : f32
    %598 = vector.broadcast %cst_300 : f32 to vector<8x128xf32>
    %599 = arith.mulf %545, %598 : vector<8x128xf32>
    %600 = arith.addf %597, %599 : vector<8x128xf32>
    %601 = arith.addf %600, %552 : vector<8x128xf32>
    %602 = arith.mulf %531, %571 : vector<8x128xf32>
    %603 = arith.mulf %531, %568 : vector<8x128xf32>
    %cst_301 = arith.constant 0.00899999961 : f32
    %604 = vector.broadcast %cst_301 : f32 to vector<8x128xf32>
    %605 = arith.mulf %532, %604 : vector<8x128xf32>
    %cst_302 = arith.constant 5.100000e-02 : f32
    %606 = vector.broadcast %cst_302 : f32 to vector<8x128xf32>
    %607 = arith.mulf %531, %606 : vector<8x128xf32>
    %608 = arith.addf %605, %607 : vector<8x128xf32>
    %cst_303 = arith.constant 0.0974999964 : f32
    %609 = vector.broadcast %cst_303 : f32 to vector<8x128xf32>
    %610 = arith.addf %608, %609 : vector<8x128xf32>
    %c1344 = arith.constant 1344 : index
    %c0_304 = arith.constant 0 : index
    %611 = vector.load %arg2[%c1344, %c0_304] : memref<1920x128xf32, #tpu.memory_space<vmem>>, vector<8x128xf32>
    tpu.vector_store %arg2[%c1344, %c0_304], %574 {strides = array<i32>} : memref<1920x128xf32, #tpu.memory_space<vmem>>, vector<8x128xf32>,
    %c1352 = arith.constant 1352 : index
    %c0_305 = arith.constant 0 : index
    %612 = vector.load %arg2[%c1352, %c0_305] : memref<1920x128xf32, #tpu.memory_space<vmem>>, vector<8x128xf32>
    tpu.vector_store %arg2[%c1352, %c0_305], %535 {strides = array<i32>} : memref<1920x128xf32, #tpu.memory_space<vmem>>, vector<8x128xf32>,
    %c1360 = arith.constant 1360 : index
    %c0_306 = arith.constant 0 : index
    %613 = vector.load %arg2[%c1360, %c0_306] : memref<1920x128xf32, #tpu.memory_space<vmem>>, vector<8x128xf32>
    tpu.vector_store %arg2[%c1360, %c0_306], %577 {strides = array<i32>} : memref<1920x128xf32, #tpu.memory_space<vmem>>, vector<8x128xf32>,
    %c1368 = arith.constant 1368 : index
    %c0_307 = arith.constant 0 : index
    %614 = vector.load %arg2[%c1368, %c0_307] : memref<1920x128xf32, #tpu.memory_space<vmem>>, vector<8x128xf32>
    tpu.vector_store %arg2[%c1368, %c0_307], %586 {strides = array<i32>} : memref<1920x128xf32, #tpu.memory_space<vmem>>, vector<8x128xf32>,
    %c1376 = arith.constant 1376 : index
    %c0_308 = arith.constant 0 : index
    %615 = vector.load %arg2[%c1376, %c0_308] : memref<1920x128xf32, #tpu.memory_space<vmem>>, vector<8x128xf32>
    tpu.vector_store %arg2[%c1376, %c0_308], %589 {strides = array<i32>} : memref<1920x128xf32, #tpu.memory_space<vmem>>, vector<8x128xf32>,
    %c1384 = arith.constant 1384 : index
    %c0_309 = arith.constant 0 : index
    %616 = vector.load %arg2[%c1384, %c0_309] : memref<1920x128xf32, #tpu.memory_space<vmem>>, vector<8x128xf32>
    tpu.vector_store %arg2[%c1384, %c0_309], %544 {strides = array<i32>} : memref<1920x128xf32, #tpu.memory_space<vmem>>, vector<8x128xf32>,
    %c1392 = arith.constant 1392 : index
    %c0_310 = arith.constant 0 : index
    %617 = vector.load %arg2[%c1392, %c0_310] : memref<1920x128xf32, #tpu.memory_space<vmem>>, vector<8x128xf32>
    tpu.vector_store %arg2[%c1392, %c0_310], %592 {strides = array<i32>} : memref<1920x128xf32, #tpu.memory_space<vmem>>, vector<8x128xf32>,
    %c1400 = arith.constant 1400 : index
    %c0_311 = arith.constant 0 : index
    %618 = vector.load %arg2[%c1400, %c0_311] : memref<1920x128xf32, #tpu.memory_space<vmem>>, vector<8x128xf32>
    tpu.vector_store %arg2[%c1400, %c0_311], %601 {strides = array<i32>} : memref<1920x128xf32, #tpu.memory_space<vmem>>, vector<8x128xf32>,
    %c1408 = arith.constant 1408 : index
    %c0_312 = arith.constant 0 : index
    %619 = vector.load %arg2[%c1408, %c0_312] : memref<1920x128xf32, #tpu.memory_space<vmem>>, vector<8x128xf32>
    tpu.vector_store %arg2[%c1408, %c0_312], %602 {strides = array<i32>} : memref<1920x128xf32, #tpu.memory_space<vmem>>, vector<8x128xf32>,
    %c1416 = arith.constant 1416 : index
    %c0_313 = arith.constant 0 : index
    %620 = vector.load %arg2[%c1416, %c0_313] : memref<1920x128xf32, #tpu.memory_space<vmem>>, vector<8x128xf32>
    tpu.vector_store %arg2[%c1416, %c0_313], %532 {strides = array<i32>} : memref<1920x128xf32, #tpu.memory_space<vmem>>, vector<8x128xf32>,
    %c1424 = arith.constant 1424 : index
    %c0_314 = arith.constant 0 : index
    %621 = vector.load %arg2[%c1424, %c0_314] : memref<1920x128xf32, #tpu.memory_space<vmem>>, vector<8x128xf32>
    tpu.vector_store %arg2[%c1424, %c0_314], %603 {strides = array<i32>} : memref<1920x128xf32, #tpu.memory_space<vmem>>, vector<8x128xf32>,
    %c1432 = arith.constant 1432 : index
    %c0_315 = arith.constant 0 : index
    %622 = vector.load %arg2[%c1432, %c0_315] : memref<1920x128xf32, #tpu.memory_space<vmem>>, vector<8x128xf32>
    tpu.vector_store %arg2[%c1432, %c0_315], %610 {strides = array<i32>} : memref<1920x128xf32, #tpu.memory_space<vmem>>, vector<8x128xf32>,
    %cst_316 = arith.constant 0.000000e+00 : f32
    %623 = vector.broadcast %cst_316 : f32 to vector<8x128xf32>
    %624 = arith.subf %623, %532 : vector<8x128xf32>
    %625 = arith.mulf %574, %531 : vector<8x128xf32>
    %626 = arith.mulf %535, %532 : vector<8x128xf32>
    %627 = arith.addf %625, %626 : vector<8x128xf32>
    %628 = arith.mulf %574, %624 : vector<8x128xf32>
    %629 = arith.mulf %535, %531 : vector<8x128xf32>
    %630 = arith.addf %628, %629 : vector<8x128xf32>
    %cst_317 = arith.constant 8.000000e-03 : f32
    %631 = vector.broadcast %cst_317 : f32 to vector<8x128xf32>
    %632 = arith.mulf %574, %631 : vector<8x128xf32>
    %cst_318 = arith.constant 0.00999999977 : f32
    %633 = vector.broadcast %cst_318 : f32 to vector<8x128xf32>
    %634 = arith.mulf %535, %633 : vector<8x128xf32>
    %635 = arith.addf %632, %634 : vector<8x128xf32>
    %cst_319 = arith.constant 5.250000e-02 : f32
    %636 = vector.broadcast %cst_319 : f32 to vector<8x128xf32>
    %637 = arith.mulf %577, %636 : vector<8x128xf32>
    %638 = arith.addf %635, %637 : vector<8x128xf32>
    %639 = arith.addf %638, %586 : vector<8x128xf32>
    %640 = arith.mulf %589, %531 : vector<8x128xf32>
    %641 = arith.mulf %544, %532 : vector<8x128xf32>
    %642 = arith.addf %640, %641 : vector<8x128xf32>
    %643 = arith.mulf %589, %624 : vector<8x128xf32>
    %644 = arith.mulf %544, %531 : vector<8x128xf32>
    %645 = arith.addf %643, %644 : vector<8x128xf32>
    %cst_320 = arith.constant 8.000000e-03 : f32
    %646 = vector.broadcast %cst_320 : f32 to vector<8x128xf32>
    %647 = arith.mulf %589, %646 : vector<8x128xf32>
    %cst_321 = arith.constant 0.00999999977 : f32
    %648 = vector.broadcast %cst_321 : f32 to vector<8x128xf32>
    %649 = arith.mulf %544, %648 : vector<8x128xf32>
    %650 = arith.addf %647, %649 : vector<8x128xf32>
    %cst_322 = arith.constant 5.250000e-02 : f32
    %651 = vector.broadcast %cst_322 : f32 to vector<8x128xf32>
    %652 = arith.mulf %592, %651 : vector<8x128xf32>
    %653 = arith.addf %650, %652 : vector<8x128xf32>
    %654 = arith.addf %653, %601 : vector<8x128xf32>
    %655 = arith.mulf %602, %531 : vector<8x128xf32>
    %656 = arith.mulf %532, %532 : vector<8x128xf32>
    %657 = arith.addf %655, %656 : vector<8x128xf32>
    %658 = arith.mulf %602, %624 : vector<8x128xf32>
    %659 = arith.mulf %532, %531 : vector<8x128xf32>
    %660 = arith.addf %658, %659 : vector<8x128xf32>
    %cst_323 = arith.constant 8.000000e-03 : f32
    %661 = vector.broadcast %cst_323 : f32 to vector<8x128xf32>
    %662 = arith.mulf %602, %661 : vector<8x128xf32>
    %cst_324 = arith.constant 0.00999999977 : f32
    %663 = vector.broadcast %cst_324 : f32 to vector<8x128xf32>
    %664 = arith.mulf %532, %663 : vector<8x128xf32>
    %665 = arith.addf %662, %664 : vector<8x128xf32>
    %cst_325 = arith.constant 5.250000e-02 : f32
    %666 = vector.broadcast %cst_325 : f32 to vector<8x128xf32>
    %667 = arith.mulf %603, %666 : vector<8x128xf32>
    %668 = arith.addf %665, %667 : vector<8x128xf32>
    %669 = arith.addf %668, %610 : vector<8x128xf32>
    %c1440 = arith.constant 1440 : index
    %c0_326 = arith.constant 0 : index
    %670 = vector.load %arg2[%c1440, %c0_326] : memref<1920x128xf32, #tpu.memory_space<vmem>>, vector<8x128xf32>
    tpu.vector_store %arg2[%c1440, %c0_326], %627 {strides = array<i32>} : memref<1920x128xf32, #tpu.memory_space<vmem>>, vector<8x128xf32>,
    %c1448 = arith.constant 1448 : index
    %c0_327 = arith.constant 0 : index
    %671 = vector.load %arg2[%c1448, %c0_327] : memref<1920x128xf32, #tpu.memory_space<vmem>>, vector<8x128xf32>
    tpu.vector_store %arg2[%c1448, %c0_327], %630 {strides = array<i32>} : memref<1920x128xf32, #tpu.memory_space<vmem>>, vector<8x128xf32>,
    %c1456 = arith.constant 1456 : index
    %c0_328 = arith.constant 0 : index
    %672 = vector.load %arg2[%c1456, %c0_328] : memref<1920x128xf32, #tpu.memory_space<vmem>>, vector<8x128xf32>
    tpu.vector_store %arg2[%c1456, %c0_328], %577 {strides = array<i32>} : memref<1920x128xf32, #tpu.memory_space<vmem>>, vector<8x128xf32>,
    %c1464 = arith.constant 1464 : index
    %c0_329 = arith.constant 0 : index
    %673 = vector.load %arg2[%c1464, %c0_329] : memref<1920x128xf32, #tpu.memory_space<vmem>>, vector<8x128xf32>
    tpu.vector_store %arg2[%c1464, %c0_329], %639 {strides = array<i32>} : memref<1920x128xf32, #tpu.memory_space<vmem>>, vector<8x128xf32>,
    %c1472 = arith.constant 1472 : index
    %c0_330 = arith.constant 0 : index
    %674 = vector.load %arg2[%c1472, %c0_330] : memref<1920x128xf32, #tpu.memory_space<vmem>>, vector<8x128xf32>
    tpu.vector_store %arg2[%c1472, %c0_330], %642 {strides = array<i32>} : memref<1920x128xf32, #tpu.memory_space<vmem>>, vector<8x128xf32>,
    %c1480 = arith.constant 1480 : index
    %c0_331 = arith.constant 0 : index
    %675 = vector.load %arg2[%c1480, %c0_331] : memref<1920x128xf32, #tpu.memory_space<vmem>>, vector<8x128xf32>
    tpu.vector_store %arg2[%c1480, %c0_331], %645 {strides = array<i32>} : memref<1920x128xf32, #tpu.memory_space<vmem>>, vector<8x128xf32>,
    %c1488 = arith.constant 1488 : index
    %c0_332 = arith.constant 0 : index
    %676 = vector.load %arg2[%c1488, %c0_332] : memref<1920x128xf32, #tpu.memory_space<vmem>>, vector<8x128xf32>
    tpu.vector_store %arg2[%c1488, %c0_332], %592 {strides = array<i32>} : memref<1920x128xf32, #tpu.memory_space<vmem>>, vector<8x128xf32>,
    %c1496 = arith.constant 1496 : index
    %c0_333 = arith.constant 0 : index
    %677 = vector.load %arg2[%c1496, %c0_333] : memref<1920x128xf32, #tpu.memory_space<vmem>>, vector<8x128xf32>
    tpu.vector_store %arg2[%c1496, %c0_333], %654 {strides = array<i32>} : memref<1920x128xf32, #tpu.memory_space<vmem>>, vector<8x128xf32>,
    %c1504 = arith.constant 1504 : index
    %c0_334 = arith.constant 0 : index
    %678 = vector.load %arg2[%c1504, %c0_334] : memref<1920x128xf32, #tpu.memory_space<vmem>>, vector<8x128xf32>
    tpu.vector_store %arg2[%c1504, %c0_334], %657 {strides = array<i32>} : memref<1920x128xf32, #tpu.memory_space<vmem>>, vector<8x128xf32>,
    %c1512 = arith.constant 1512 : index
    %c0_335 = arith.constant 0 : index
    %679 = vector.load %arg2[%c1512, %c0_335] : memref<1920x128xf32, #tpu.memory_space<vmem>>, vector<8x128xf32>
    tpu.vector_store %arg2[%c1512, %c0_335], %660 {strides = array<i32>} : memref<1920x128xf32, #tpu.memory_space<vmem>>, vector<8x128xf32>,
    %c1520 = arith.constant 1520 : index
    %c0_336 = arith.constant 0 : index
    %680 = vector.load %arg2[%c1520, %c0_336] : memref<1920x128xf32, #tpu.memory_space<vmem>>, vector<8x128xf32>
    tpu.vector_store %arg2[%c1520, %c0_336], %603 {strides = array<i32>} : memref<1920x128xf32, #tpu.memory_space<vmem>>, vector<8x128xf32>,
    %c1528 = arith.constant 1528 : index
    %c0_337 = arith.constant 0 : index
    %681 = vector.load %arg2[%c1528, %c0_337] : memref<1920x128xf32, #tpu.memory_space<vmem>>, vector<8x128xf32>
    tpu.vector_store %arg2[%c1528, %c0_337], %669 {strides = array<i32>} : memref<1920x128xf32, #tpu.memory_space<vmem>>, vector<8x128xf32>,
    %682 = math.cos %10 : vector<8x128xf32>
    %683 = math.sin %10 : vector<8x128xf32>
    %cst_338 = arith.constant 0.000000e+00 : f32
    %684 = vector.broadcast %cst_338 : f32 to vector<8x128xf32>
    %685 = arith.subf %684, %683 : vector<8x128xf32>
    %c1536 = arith.constant 1536 : index
    %c0_339 = arith.constant 0 : index
    %686 = vector.load %arg2[%c1536, %c0_339] : memref<1920x128xf32, #tpu.memory_space<vmem>>, vector<8x128xf32>
    tpu.vector_store %arg2[%c1536, %c0_339], %1 {strides = array<i32>} : memref<1920x128xf32, #tpu.memory_space<vmem>>, vector<8x128xf32>,
    %c1544 = arith.constant 1544 : index
    %c0_340 = arith.constant 0 : index
    %687 = vector.load %arg2[%c1544, %c0_340] : memref<1920x128xf32, #tpu.memory_space<vmem>>, vector<8x128xf32>
    tpu.vector_store %arg2[%c1544, %c0_340], %0 {strides = array<i32>} : memref<1920x128xf32, #tpu.memory_space<vmem>>, vector<8x128xf32>,
    %c1552 = arith.constant 1552 : index
    %c0_341 = arith.constant 0 : index
    %688 = vector.load %arg2[%c1552, %c0_341] : memref<1920x128xf32, #tpu.memory_space<vmem>>, vector<8x128xf32>
    tpu.vector_store %arg2[%c1552, %c0_341], %0 {strides = array<i32>} : memref<1920x128xf32, #tpu.memory_space<vmem>>, vector<8x128xf32>,
    %c1560 = arith.constant 1560 : index
    %c0_342 = arith.constant 0 : index
    %689 = vector.load %arg2[%c1560, %c0_342] : memref<1920x128xf32, #tpu.memory_space<vmem>>, vector<8x128xf32>
    tpu.vector_store %arg2[%c1560, %c0_342], %18 {strides = array<i32>} : memref<1920x128xf32, #tpu.memory_space<vmem>>, vector<8x128xf32>,
    %c1568 = arith.constant 1568 : index
    %c0_343 = arith.constant 0 : index
    %690 = vector.load %arg2[%c1568, %c0_343] : memref<1920x128xf32, #tpu.memory_space<vmem>>, vector<8x128xf32>
    tpu.vector_store %arg2[%c1568, %c0_343], %0 {strides = array<i32>} : memref<1920x128xf32, #tpu.memory_space<vmem>>, vector<8x128xf32>,
    %c1576 = arith.constant 1576 : index
    %c0_344 = arith.constant 0 : index
    %691 = vector.load %arg2[%c1576, %c0_344] : memref<1920x128xf32, #tpu.memory_space<vmem>>, vector<8x128xf32>
    tpu.vector_store %arg2[%c1576, %c0_344], %682 {strides = array<i32>} : memref<1920x128xf32, #tpu.memory_space<vmem>>, vector<8x128xf32>,
    %c1584 = arith.constant 1584 : index
    %c0_345 = arith.constant 0 : index
    %692 = vector.load %arg2[%c1584, %c0_345] : memref<1920x128xf32, #tpu.memory_space<vmem>>, vector<8x128xf32>
    tpu.vector_store %arg2[%c1584, %c0_345], %685 {strides = array<i32>} : memref<1920x128xf32, #tpu.memory_space<vmem>>, vector<8x128xf32>,
    %cst_346 = arith.constant 1.100000e-02 : f32
    %693 = vector.broadcast %cst_346 : f32 to vector<8x128xf32>
    %c1592 = arith.constant 1592 : index
    %c0_347 = arith.constant 0 : index
    %694 = vector.load %arg2[%c1592, %c0_347] : memref<1920x128xf32, #tpu.memory_space<vmem>>, vector<8x128xf32>
    tpu.vector_store %arg2[%c1592, %c0_347], %693 {strides = array<i32>} : memref<1920x128xf32, #tpu.memory_space<vmem>>, vector<8x128xf32>,
    %c1600 = arith.constant 1600 : index
    %c0_348 = arith.constant 0 : index
    %695 = vector.load %arg2[%c1600, %c0_348] : memref<1920x128xf32, #tpu.memory_space<vmem>>, vector<8x128xf32>
    tpu.vector_store %arg2[%c1600, %c0_348], %0 {strides = array<i32>} : memref<1920x128xf32, #tpu.memory_space<vmem>>, vector<8x128xf32>,
    %c1608 = arith.constant 1608 : index
    %c0_349 = arith.constant 0 : index
    %696 = vector.load %arg2[%c1608, %c0_349] : memref<1920x128xf32, #tpu.memory_space<vmem>>, vector<8x128xf32>
    tpu.vector_store %arg2[%c1608, %c0_349], %683 {strides = array<i32>} : memref<1920x128xf32, #tpu.memory_space<vmem>>, vector<8x128xf32>,
    %c1616 = arith.constant 1616 : index
    %c0_350 = arith.constant 0 : index
    %697 = vector.load %arg2[%c1616, %c0_350] : memref<1920x128xf32, #tpu.memory_space<vmem>>, vector<8x128xf32>
    tpu.vector_store %arg2[%c1616, %c0_350], %682 {strides = array<i32>} : memref<1920x128xf32, #tpu.memory_space<vmem>>, vector<8x128xf32>,
    %cst_351 = arith.constant 5.400000e-02 : f32
    %698 = vector.broadcast %cst_351 : f32 to vector<8x128xf32>
    %c1624 = arith.constant 1624 : index
    %c0_352 = arith.constant 0 : index
    %699 = vector.load %arg2[%c1624, %c0_352] : memref<1920x128xf32, #tpu.memory_space<vmem>>, vector<8x128xf32>
    tpu.vector_store %arg2[%c1624, %c0_352], %698 {strides = array<i32>} : memref<1920x128xf32, #tpu.memory_space<vmem>>, vector<8x128xf32>,
    %cst_353 = arith.constant 5.000000e-01 : f32
    %700 = vector.broadcast %cst_353 : f32 to vector<8x128xf32>
    %701 = arith.mulf %10, %700 : vector<8x128xf32>
    %702 = math.cos %701 : vector<8x128xf32>
    %703 = math.sin %701 : vector<8x128xf32>
    %cst_354 = arith.constant 0.000000e+00 : f32
    %704 = vector.broadcast %cst_354 : f32 to vector<8x128xf32>
    %705 = arith.subf %704, %703 : vector<8x128xf32>
    %706 = arith.mulf %685, %705 : vector<8x128xf32>
    %707 = arith.mulf %685, %702 : vector<8x128xf32>
    %cst_355 = arith.constant 1.200000e-02 : f32
    %708 = vector.broadcast %cst_355 : f32 to vector<8x128xf32>
    %709 = arith.mulf %682, %708 : vector<8x128xf32>
    %cst_356 = arith.constant 5.550000e-02 : f32
    %710 = vector.broadcast %cst_356 : f32 to vector<8x128xf32>
    %711 = arith.mulf %685, %710 : vector<8x128xf32>
    %712 = arith.addf %709, %711 : vector<8x128xf32>
    %cst_357 = arith.constant 1.100000e-02 : f32
    %713 = vector.broadcast %cst_357 : f32 to vector<8x128xf32>
    %714 = arith.addf %712, %713 : vector<8x128xf32>
    %715 = arith.mulf %682, %705 : vector<8x128xf32>
    %716 = arith.mulf %682, %702 : vector<8x128xf32>
    %cst_358 = arith.constant 1.200000e-02 : f32
    %717 = vector.broadcast %cst_358 : f32 to vector<8x128xf32>
    %718 = arith.mulf %683, %717 : vector<8x128xf32>
    %cst_359 = arith.constant 5.550000e-02 : f32
    %719 = vector.broadcast %cst_359 : f32 to vector<8x128xf32>
    %720 = arith.mulf %682, %719 : vector<8x128xf32>
    %721 = arith.addf %718, %720 : vector<8x128xf32>
    %cst_360 = arith.constant 5.400000e-02 : f32
    %722 = vector.broadcast %cst_360 : f32 to vector<8x128xf32>
    %723 = arith.addf %721, %722 : vector<8x128xf32>
    %c1632 = arith.constant 1632 : index
    %c0_361 = arith.constant 0 : index
    %724 = vector.load %arg2[%c1632, %c0_361] : memref<1920x128xf32, #tpu.memory_space<vmem>>, vector<8x128xf32>
    tpu.vector_store %arg2[%c1632, %c0_361], %702 {strides = array<i32>} : memref<1920x128xf32, #tpu.memory_space<vmem>>, vector<8x128xf32>,
    %c1640 = arith.constant 1640 : index
    %c0_362 = arith.constant 0 : index
    %725 = vector.load %arg2[%c1640, %c0_362] : memref<1920x128xf32, #tpu.memory_space<vmem>>, vector<8x128xf32>
    tpu.vector_store %arg2[%c1640, %c0_362], %0 {strides = array<i32>} : memref<1920x128xf32, #tpu.memory_space<vmem>>, vector<8x128xf32>,
    %c1648 = arith.constant 1648 : index
    %c0_363 = arith.constant 0 : index
    %726 = vector.load %arg2[%c1648, %c0_363] : memref<1920x128xf32, #tpu.memory_space<vmem>>, vector<8x128xf32>
    tpu.vector_store %arg2[%c1648, %c0_363], %703 {strides = array<i32>} : memref<1920x128xf32, #tpu.memory_space<vmem>>, vector<8x128xf32>,
    %c1656 = arith.constant 1656 : index
    %c0_364 = arith.constant 0 : index
    %727 = vector.load %arg2[%c1656, %c0_364] : memref<1920x128xf32, #tpu.memory_space<vmem>>, vector<8x128xf32>
    tpu.vector_store %arg2[%c1656, %c0_364], %218 {strides = array<i32>} : memref<1920x128xf32, #tpu.memory_space<vmem>>, vector<8x128xf32>,
    %c1664 = arith.constant 1664 : index
    %c0_365 = arith.constant 0 : index
    %728 = vector.load %arg2[%c1664, %c0_365] : memref<1920x128xf32, #tpu.memory_space<vmem>>, vector<8x128xf32>
    tpu.vector_store %arg2[%c1664, %c0_365], %706 {strides = array<i32>} : memref<1920x128xf32, #tpu.memory_space<vmem>>, vector<8x128xf32>,
    %c1672 = arith.constant 1672 : index
    %c0_366 = arith.constant 0 : index
    %729 = vector.load %arg2[%c1672, %c0_366] : memref<1920x128xf32, #tpu.memory_space<vmem>>, vector<8x128xf32>
    tpu.vector_store %arg2[%c1672, %c0_366], %682 {strides = array<i32>} : memref<1920x128xf32, #tpu.memory_space<vmem>>, vector<8x128xf32>,
    %c1680 = arith.constant 1680 : index
    %c0_367 = arith.constant 0 : index
    %730 = vector.load %arg2[%c1680, %c0_367] : memref<1920x128xf32, #tpu.memory_space<vmem>>, vector<8x128xf32>
    tpu.vector_store %arg2[%c1680, %c0_367], %707 {strides = array<i32>} : memref<1920x128xf32, #tpu.memory_space<vmem>>, vector<8x128xf32>,
    %c1688 = arith.constant 1688 : index
    %c0_368 = arith.constant 0 : index
    %731 = vector.load %arg2[%c1688, %c0_368] : memref<1920x128xf32, #tpu.memory_space<vmem>>, vector<8x128xf32>
    tpu.vector_store %arg2[%c1688, %c0_368], %714 {strides = array<i32>} : memref<1920x128xf32, #tpu.memory_space<vmem>>, vector<8x128xf32>,
    %c1696 = arith.constant 1696 : index
    %c0_369 = arith.constant 0 : index
    %732 = vector.load %arg2[%c1696, %c0_369] : memref<1920x128xf32, #tpu.memory_space<vmem>>, vector<8x128xf32>
    tpu.vector_store %arg2[%c1696, %c0_369], %715 {strides = array<i32>} : memref<1920x128xf32, #tpu.memory_space<vmem>>, vector<8x128xf32>,
    %c1704 = arith.constant 1704 : index
    %c0_370 = arith.constant 0 : index
    %733 = vector.load %arg2[%c1704, %c0_370] : memref<1920x128xf32, #tpu.memory_space<vmem>>, vector<8x128xf32>
    tpu.vector_store %arg2[%c1704, %c0_370], %683 {strides = array<i32>} : memref<1920x128xf32, #tpu.memory_space<vmem>>, vector<8x128xf32>,
    %c1712 = arith.constant 1712 : index
    %c0_371 = arith.constant 0 : index
    %734 = vector.load %arg2[%c1712, %c0_371] : memref<1920x128xf32, #tpu.memory_space<vmem>>, vector<8x128xf32>
    tpu.vector_store %arg2[%c1712, %c0_371], %716 {strides = array<i32>} : memref<1920x128xf32, #tpu.memory_space<vmem>>, vector<8x128xf32>,
    %c1720 = arith.constant 1720 : index
    %c0_372 = arith.constant 0 : index
    %735 = vector.load %arg2[%c1720, %c0_372] : memref<1920x128xf32, #tpu.memory_space<vmem>>, vector<8x128xf32>
    tpu.vector_store %arg2[%c1720, %c0_372], %723 {strides = array<i32>} : memref<1920x128xf32, #tpu.memory_space<vmem>>, vector<8x128xf32>,
    %cst_373 = arith.constant 0.000000e+00 : f32
    %736 = vector.broadcast %cst_373 : f32 to vector<8x128xf32>
    %737 = arith.subf %736, %683 : vector<8x128xf32>
    %738 = arith.mulf %702, %682 : vector<8x128xf32>
    %739 = arith.mulf %702, %737 : vector<8x128xf32>
    %cst_374 = arith.constant 6.000000e-03 : f32
    %740 = vector.broadcast %cst_374 : f32 to vector<8x128xf32>
    %741 = arith.mulf %702, %740 : vector<8x128xf32>
    %cst_375 = arith.constant 5.700000e-02 : f32
    %742 = vector.broadcast %cst_375 : f32 to vector<8x128xf32>
    %743 = arith.mulf %703, %742 : vector<8x128xf32>
    %744 = arith.addf %741, %743 : vector<8x128xf32>
    %cst_376 = arith.constant 6.000000e-03 : f32
    %745 = vector.broadcast %cst_376 : f32 to vector<8x128xf32>
    %746 = arith.addf %744, %745 : vector<8x128xf32>
    %747 = arith.mulf %706, %682 : vector<8x128xf32>
    %748 = arith.mulf %682, %683 : vector<8x128xf32>
    %749 = arith.addf %747, %748 : vector<8x128xf32>
    %750 = arith.mulf %706, %737 : vector<8x128xf32>
    %751 = arith.mulf %682, %682 : vector<8x128xf32>
    %752 = arith.addf %750, %751 : vector<8x128xf32>
    %cst_377 = arith.constant 6.000000e-03 : f32
    %753 = vector.broadcast %cst_377 : f32 to vector<8x128xf32>
    %754 = arith.mulf %706, %753 : vector<8x128xf32>
    %cst_378 = arith.constant 1.300000e-02 : f32
    %755 = vector.broadcast %cst_378 : f32 to vector<8x128xf32>
    %756 = arith.mulf %682, %755 : vector<8x128xf32>
    %757 = arith.addf %754, %756 : vector<8x128xf32>
    %cst_379 = arith.constant 5.700000e-02 : f32
    %758 = vector.broadcast %cst_379 : f32 to vector<8x128xf32>
    %759 = arith.mulf %707, %758 : vector<8x128xf32>
    %760 = arith.addf %757, %759 : vector<8x128xf32>
    %761 = arith.addf %760, %714 : vector<8x128xf32>
    %762 = arith.mulf %715, %682 : vector<8x128xf32>
    %763 = arith.mulf %683, %683 : vector<8x128xf32>
    %764 = arith.addf %762, %763 : vector<8x128xf32>
    %765 = arith.mulf %715, %737 : vector<8x128xf32>
    %766 = arith.mulf %683, %682 : vector<8x128xf32>
    %767 = arith.addf %765, %766 : vector<8x128xf32>
    %cst_380 = arith.constant 6.000000e-03 : f32
    %768 = vector.broadcast %cst_380 : f32 to vector<8x128xf32>
    %769 = arith.mulf %715, %768 : vector<8x128xf32>
    %cst_381 = arith.constant 1.300000e-02 : f32
    %770 = vector.broadcast %cst_381 : f32 to vector<8x128xf32>
    %771 = arith.mulf %683, %770 : vector<8x128xf32>
    %772 = arith.addf %769, %771 : vector<8x128xf32>
    %cst_382 = arith.constant 5.700000e-02 : f32
    %773 = vector.broadcast %cst_382 : f32 to vector<8x128xf32>
    %774 = arith.mulf %716, %773 : vector<8x128xf32>
    %775 = arith.addf %772, %774 : vector<8x128xf32>
    %776 = arith.addf %775, %723 : vector<8x128xf32>
    %c1728 = arith.constant 1728 : index
    %c0_383 = arith.constant 0 : index
    %777 = vector.load %arg2[%c1728, %c0_383] : memref<1920x128xf32, #tpu.memory_space<vmem>>, vector<8x128xf32>
    tpu.vector_store %arg2[%c1728, %c0_383], %738 {strides = array<i32>} : memref<1920x128xf32, #tpu.memory_space<vmem>>, vector<8x128xf32>,
    %c1736 = arith.constant 1736 : index
    %c0_384 = arith.constant 0 : index
    %778 = vector.load %arg2[%c1736, %c0_384] : memref<1920x128xf32, #tpu.memory_space<vmem>>, vector<8x128xf32>
    tpu.vector_store %arg2[%c1736, %c0_384], %739 {strides = array<i32>} : memref<1920x128xf32, #tpu.memory_space<vmem>>, vector<8x128xf32>,
    %c1744 = arith.constant 1744 : index
    %c0_385 = arith.constant 0 : index
    %779 = vector.load %arg2[%c1744, %c0_385] : memref<1920x128xf32, #tpu.memory_space<vmem>>, vector<8x128xf32>
    tpu.vector_store %arg2[%c1744, %c0_385], %703 {strides = array<i32>} : memref<1920x128xf32, #tpu.memory_space<vmem>>, vector<8x128xf32>,
    %c1752 = arith.constant 1752 : index
    %c0_386 = arith.constant 0 : index
    %780 = vector.load %arg2[%c1752, %c0_386] : memref<1920x128xf32, #tpu.memory_space<vmem>>, vector<8x128xf32>
    tpu.vector_store %arg2[%c1752, %c0_386], %746 {strides = array<i32>} : memref<1920x128xf32, #tpu.memory_space<vmem>>, vector<8x128xf32>,
    %c1760 = arith.constant 1760 : index
    %c0_387 = arith.constant 0 : index
    %781 = vector.load %arg2[%c1760, %c0_387] : memref<1920x128xf32, #tpu.memory_space<vmem>>, vector<8x128xf32>
    tpu.vector_store %arg2[%c1760, %c0_387], %749 {strides = array<i32>} : memref<1920x128xf32, #tpu.memory_space<vmem>>, vector<8x128xf32>,
    %c1768 = arith.constant 1768 : index
    %c0_388 = arith.constant 0 : index
    %782 = vector.load %arg2[%c1768, %c0_388] : memref<1920x128xf32, #tpu.memory_space<vmem>>, vector<8x128xf32>
    tpu.vector_store %arg2[%c1768, %c0_388], %752 {strides = array<i32>} : memref<1920x128xf32, #tpu.memory_space<vmem>>, vector<8x128xf32>,
    %c1776 = arith.constant 1776 : index
    %c0_389 = arith.constant 0 : index
    %783 = vector.load %arg2[%c1776, %c0_389] : memref<1920x128xf32, #tpu.memory_space<vmem>>, vector<8x128xf32>
    tpu.vector_store %arg2[%c1776, %c0_389], %707 {strides = array<i32>} : memref<1920x128xf32, #tpu.memory_space<vmem>>, vector<8x128xf32>,
    %c1784 = arith.constant 1784 : index
    %c0_390 = arith.constant 0 : index
    %784 = vector.load %arg2[%c1784, %c0_390] : memref<1920x128xf32, #tpu.memory_space<vmem>>, vector<8x128xf32>
    tpu.vector_store %arg2[%c1784, %c0_390], %761 {strides = array<i32>} : memref<1920x128xf32, #tpu.memory_space<vmem>>, vector<8x128xf32>,
    %c1792 = arith.constant 1792 : index
    %c0_391 = arith.constant 0 : index
    %785 = vector.load %arg2[%c1792, %c0_391] : memref<1920x128xf32, #tpu.memory_space<vmem>>, vector<8x128xf32>
    tpu.vector_store %arg2[%c1792, %c0_391], %764 {strides = array<i32>} : memref<1920x128xf32, #tpu.memory_space<vmem>>, vector<8x128xf32>,
    %c1800 = arith.constant 1800 : index
    %c0_392 = arith.constant 0 : index
    %786 = vector.load %arg2[%c1800, %c0_392] : memref<1920x128xf32, #tpu.memory_space<vmem>>, vector<8x128xf32>
    tpu.vector_store %arg2[%c1800, %c0_392], %767 {strides = array<i32>} : memref<1920x128xf32, #tpu.memory_space<vmem>>, vector<8x128xf32>,
    %c1808 = arith.constant 1808 : index
    %c0_393 = arith.constant 0 : index
    %787 = vector.load %arg2[%c1808, %c0_393] : memref<1920x128xf32, #tpu.memory_space<vmem>>, vector<8x128xf32>
    tpu.vector_store %arg2[%c1808, %c0_393], %716 {strides = array<i32>} : memref<1920x128xf32, #tpu.memory_space<vmem>>, vector<8x128xf32>,
    %c1816 = arith.constant 1816 : index
    %c0_394 = arith.constant 0 : index
    %788 = vector.load %arg2[%c1816, %c0_394] : memref<1920x128xf32, #tpu.memory_space<vmem>>, vector<8x128xf32>
    tpu.vector_store %arg2[%c1816, %c0_394], %776 {strides = array<i32>} : memref<1920x128xf32, #tpu.memory_space<vmem>>, vector<8x128xf32>,
    %cst_395 = arith.constant 0.000000e+00 : f32
    %789 = vector.broadcast %cst_395 : f32 to vector<8x128xf32>
    %790 = arith.subf %789, %683 : vector<8x128xf32>
    %791 = arith.mulf %739, %682 : vector<8x128xf32>
    %792 = arith.mulf %703, %683 : vector<8x128xf32>
    %793 = arith.addf %791, %792 : vector<8x128xf32>
    %794 = arith.mulf %739, %790 : vector<8x128xf32>
    %795 = arith.mulf %703, %682 : vector<8x128xf32>
    %796 = arith.addf %794, %795 : vector<8x128xf32>
    %cst_396 = arith.constant 8.000000e-03 : f32
    %797 = vector.broadcast %cst_396 : f32 to vector<8x128xf32>
    %798 = arith.mulf %738, %797 : vector<8x128xf32>
    %cst_397 = arith.constant 1.400000e-02 : f32
    %799 = vector.broadcast %cst_397 : f32 to vector<8x128xf32>
    %800 = arith.mulf %739, %799 : vector<8x128xf32>
    %801 = arith.addf %798, %800 : vector<8x128xf32>
    %cst_398 = arith.constant 5.850000e-02 : f32
    %802 = vector.broadcast %cst_398 : f32 to vector<8x128xf32>
    %803 = arith.mulf %703, %802 : vector<8x128xf32>
    %804 = arith.addf %801, %803 : vector<8x128xf32>
    %805 = arith.addf %804, %746 : vector<8x128xf32>
    %806 = arith.mulf %752, %682 : vector<8x128xf32>
    %807 = arith.mulf %707, %683 : vector<8x128xf32>
    %808 = arith.addf %806, %807 : vector<8x128xf32>
    %809 = arith.mulf %752, %790 : vector<8x128xf32>
    %810 = arith.mulf %707, %682 : vector<8x128xf32>
    %811 = arith.addf %809, %810 : vector<8x128xf32>
    %cst_399 = arith.constant 8.000000e-03 : f32
    %812 = vector.broadcast %cst_399 : f32 to vector<8x128xf32>
    %813 = arith.mulf %749, %812 : vector<8x128xf32>
    %cst_400 = arith.constant 1.400000e-02 : f32
    %814 = vector.broadcast %cst_400 : f32 to vector<8x128xf32>
    %815 = arith.mulf %752, %814 : vector<8x128xf32>
    %816 = arith.addf %813, %815 : vector<8x128xf32>
    %cst_401 = arith.constant 5.850000e-02 : f32
    %817 = vector.broadcast %cst_401 : f32 to vector<8x128xf32>
    %818 = arith.mulf %707, %817 : vector<8x128xf32>
    %819 = arith.addf %816, %818 : vector<8x128xf32>
    %820 = arith.addf %819, %761 : vector<8x128xf32>
    %821 = arith.mulf %767, %682 : vector<8x128xf32>
    %822 = arith.mulf %716, %683 : vector<8x128xf32>
    %823 = arith.addf %821, %822 : vector<8x128xf32>
    %824 = arith.mulf %767, %790 : vector<8x128xf32>
    %825 = arith.mulf %716, %682 : vector<8x128xf32>
    %826 = arith.addf %824, %825 : vector<8x128xf32>
    %cst_402 = arith.constant 8.000000e-03 : f32
    %827 = vector.broadcast %cst_402 : f32 to vector<8x128xf32>
    %828 = arith.mulf %764, %827 : vector<8x128xf32>
    %cst_403 = arith.constant 1.400000e-02 : f32
    %829 = vector.broadcast %cst_403 : f32 to vector<8x128xf32>
    %830 = arith.mulf %767, %829 : vector<8x128xf32>
    %831 = arith.addf %828, %830 : vector<8x128xf32>
    %cst_404 = arith.constant 5.850000e-02 : f32
    %832 = vector.broadcast %cst_404 : f32 to vector<8x128xf32>
    %833 = arith.mulf %716, %832 : vector<8x128xf32>
    %834 = arith.addf %831, %833 : vector<8x128xf32>
    %835 = arith.addf %834, %776 : vector<8x128xf32>
    %c1824 = arith.constant 1824 : index
    %c0_405 = arith.constant 0 : index
    %836 = vector.load %arg2[%c1824, %c0_405] : memref<1920x128xf32, #tpu.memory_space<vmem>>, vector<8x128xf32>
    tpu.vector_store %arg2[%c1824, %c0_405], %738 {strides = array<i32>} : memref<1920x128xf32, #tpu.memory_space<vmem>>, vector<8x128xf32>,
    %c1832 = arith.constant 1832 : index
    %c0_406 = arith.constant 0 : index
    %837 = vector.load %arg2[%c1832, %c0_406] : memref<1920x128xf32, #tpu.memory_space<vmem>>, vector<8x128xf32>
    tpu.vector_store %arg2[%c1832, %c0_406], %793 {strides = array<i32>} : memref<1920x128xf32, #tpu.memory_space<vmem>>, vector<8x128xf32>,
    %c1840 = arith.constant 1840 : index
    %c0_407 = arith.constant 0 : index
    %838 = vector.load %arg2[%c1840, %c0_407] : memref<1920x128xf32, #tpu.memory_space<vmem>>, vector<8x128xf32>
    tpu.vector_store %arg2[%c1840, %c0_407], %796 {strides = array<i32>} : memref<1920x128xf32, #tpu.memory_space<vmem>>, vector<8x128xf32>,
    %c1848 = arith.constant 1848 : index
    %c0_408 = arith.constant 0 : index
    %839 = vector.load %arg2[%c1848, %c0_408] : memref<1920x128xf32, #tpu.memory_space<vmem>>, vector<8x128xf32>
    tpu.vector_store %arg2[%c1848, %c0_408], %805 {strides = array<i32>} : memref<1920x128xf32, #tpu.memory_space<vmem>>, vector<8x128xf32>,
    %c1856 = arith.constant 1856 : index
    %c0_409 = arith.constant 0 : index
    %840 = vector.load %arg2[%c1856, %c0_409] : memref<1920x128xf32, #tpu.memory_space<vmem>>, vector<8x128xf32>
    tpu.vector_store %arg2[%c1856, %c0_409], %749 {strides = array<i32>} : memref<1920x128xf32, #tpu.memory_space<vmem>>, vector<8x128xf32>,
    %c1864 = arith.constant 1864 : index
    %c0_410 = arith.constant 0 : index
    %841 = vector.load %arg2[%c1864, %c0_410] : memref<1920x128xf32, #tpu.memory_space<vmem>>, vector<8x128xf32>
    tpu.vector_store %arg2[%c1864, %c0_410], %808 {strides = array<i32>} : memref<1920x128xf32, #tpu.memory_space<vmem>>, vector<8x128xf32>,
    %c1872 = arith.constant 1872 : index
    %c0_411 = arith.constant 0 : index
    %842 = vector.load %arg2[%c1872, %c0_411] : memref<1920x128xf32, #tpu.memory_space<vmem>>, vector<8x128xf32>
    tpu.vector_store %arg2[%c1872, %c0_411], %811 {strides = array<i32>} : memref<1920x128xf32, #tpu.memory_space<vmem>>, vector<8x128xf32>,
    %c1880 = arith.constant 1880 : index
    %c0_412 = arith.constant 0 : index
    %843 = vector.load %arg2[%c1880, %c0_412] : memref<1920x128xf32, #tpu.memory_space<vmem>>, vector<8x128xf32>
    tpu.vector_store %arg2[%c1880, %c0_412], %820 {strides = array<i32>} : memref<1920x128xf32, #tpu.memory_space<vmem>>, vector<8x128xf32>,
    %c1888 = arith.constant 1888 : index
    %c0_413 = arith.constant 0 : index
    %844 = vector.load %arg2[%c1888, %c0_413] : memref<1920x128xf32, #tpu.memory_space<vmem>>, vector<8x128xf32>
    tpu.vector_store %arg2[%c1888, %c0_413], %764 {strides = array<i32>} : memref<1920x128xf32, #tpu.memory_space<vmem>>, vector<8x128xf32>,
    %c1896 = arith.constant 1896 : index
    %c0_414 = arith.constant 0 : index
    %845 = vector.load %arg2[%c1896, %c0_414] : memref<1920x128xf32, #tpu.memory_space<vmem>>, vector<8x128xf32>
    tpu.vector_store %arg2[%c1896, %c0_414], %823 {strides = array<i32>} : memref<1920x128xf32, #tpu.memory_space<vmem>>, vector<8x128xf32>,
    %c1904 = arith.constant 1904 : index
    %c0_415 = arith.constant 0 : index
    %846 = vector.load %arg2[%c1904, %c0_415] : memref<1920x128xf32, #tpu.memory_space<vmem>>, vector<8x128xf32>
    tpu.vector_store %arg2[%c1904, %c0_415], %826 {strides = array<i32>} : memref<1920x128xf32, #tpu.memory_space<vmem>>, vector<8x128xf32>,
    %c1912 = arith.constant 1912 : index
    %c0_416 = arith.constant 0 : index
    %847 = vector.load %arg2[%c1912, %c0_416] : memref<1920x128xf32, #tpu.memory_space<vmem>>, vector<8x128xf32>
    tpu.vector_store %arg2[%c1912, %c0_416], %835 {strides = array<i32>} : memref<1920x128xf32, #tpu.memory_space<vmem>>, vector<8x128xf32>,
    return
  }
  func.func @transform_0(%arg0: i32) -> (i32, i32) {
    %c0_i32 = arith.constant 0 : i32
    %c0_i32_0 = arith.constant 0 : i32
    return %c0_i32, %arg0 : i32, i32
  }
  func.func @transform_1(%arg0: i32) -> (i32, i32) {
    %c0_i32 = arith.constant 0 : i32
    %c0_i32_0 = arith.constant 0 : i32
    return %c0_i32, %arg0 : i32, i32
  }
}

</mosaic_0001>

<bundles_post_ra>
// kernel: svh_hand_forward.1
= control target key start
LH: loop header
LB: loop body
LE: loop exit
PB: predicated region body
PF: predicated region fallthrough
CT: control target
= control target key end

     0   :  { %v3810_v14 = vmov 0.0   ;;  %v3811_v18 = vmov 0.002   ;;  %v3812_v21 = vmov -0.005   ;;  %v3813_v22 = vmov 1.0   ;;  %s6749_s0 = inlined_call_operand.vmem [shape: f32[72,128], index: 0, kind: input, shape index: {}]   ;;  %s6750_s1 = inlined_call_operand.vmem [shape: f32[1920,128], index: 1, kind: output, shape index: {}]  }
   0x1   :  { %v3845_v0 = vld [vmem:[%s6749_s0] sm:$0xff]  ;;  %v3858_v5 = vld [vmem:[%s6749_s0 + $0x8] sm:$0xff]  ;;  %227 = vst [vmem:[%s6750_s1 + $0x10] sm:$0xff] %v3810_v14  ;;  %231 = vst [vmem:[%s6750_s1 + $0x30] sm:$0xff] %v3810_v14  ;;  %v3814_v26 = vmov 0.03  }
   0x2   :  { %v3850_v1 = vld [vmem:[%s6749_s0 + $0x40] sm:$0xff]  ;;  %v17_v2 = vand.u32 2147483647, %v3845_v0  ;;  %v20_v3 = vand.u32 2139095040, %v3845_v0  ;;  %v240_v9 = vand.u32 2139095040, %v3858_v5  ;;  %233 = vst [vmem:[%s6750_s1 + $0x40] sm:$0xff] %v3810_v14 }
   0x3   :  { %v3019_v4 = vand.u32 2139095040, %v3850_v1  ;;  %234 = vst [vmem:[%s6750_s1 + $0x48] sm:$0xff] %v3810_v14  ;;  %465 = vst [vmem:[%s6750_s1 + $0xa0] sm:$0xff] %v3810_v14  ;;  %v6751_v16 = vand.u32 2147483647, %v3850_v1  ;;  %vm19_vm14 = vcmp.lt.s32.totalorder %v3845_v0, 0 }
   0x4   :  { %v21_v6 = vshrl.u32 %v20_v3, 23  ;;  %v24_v7 = vand.u32 8388607, %v17_v2  ;;  %v241_v12 = vshrl.u32 %v240_v9, 23  ;;  %976 = vst [vmem:[%s6750_s1 + $0x188] sm:$0xff] %v3810_v14  ;;  %977 = vst [vmem:[%s6750_s1 + $0x190] sm:$0xff] %v3810_v14 }
   0x5   :  { %v3020_v8 = vshrl.u32 %v3019_v4, 23  ;;  %979 = vst [vmem:[%s6750_s1 + $0x1a0] sm:$0xff] %v3810_v14  ;;  %983 = vst [vmem:[%s6750_s1 + $0x1c0] sm:$0xff] %v3810_v14  ;;  %v3979_v28 = vand.u32 8388607, %v6751_v16 }
   0x6   :  { %v3559_v10 = vadd.s32 4294967169, %v21_v6  ;;  %1204 = vst [vmem:[%s6750_s1 + $0x1e8] sm:$0xff] %v3810_v14  ;;  %1723 = vst [vmem:[%s6750_s1 + $0x308] sm:$0xff] %v3810_v14  ;;  %v25_v15 = vor.u32 8388608, %v24_v7  ;;  %v3567_v20 = vadd.s32 4294967169, %v241_v12 }
   0x7   :  { %v3655_v11 = vadd.s32 4294967169, %v3020_v8  ;;  %1726 = vst [vmem:[%s6750_s1 + $0x320] sm:$0xff] %v3810_v14  ;;  %1728 = vst [vmem:[%s6750_s1 + $0x330] sm:$0xff] %v3810_v14  ;;  %v3815_v31 = vmov 683565275  }
   0x8   :  { %v27_v13 = vadd.s32 1, %v3559_v10  ;;  %1731 = vst [vmem:[%s6750_s1 + $0x348] sm:$0xff] %v3810_v14  ;;  %1960 = vst [vmem:[%s6750_s1 + $0x390] sm:$0xff] %v3810_v14  ;;  %v3975_v27 = vshll.u32 %v25_v15, 8  ;;  %v3816_v33 = vmov 2475754826  }
   0x9   :  { %2475 = vst [vmem:[%s6750_s1 + $0x490] sm:$0xff] %v3810_v14  ;;  %2479 = vst [vmem:[%s6750_s1 + $0x4b0] sm:$0xff] %v3810_v14  ;;  %v3026_v17 = vadd.s32 1, %v3655_v11  ;;  %v3817_v35 = vmov 2131351028   ;;  %v3989_v42 = vadd.s32 1, %v3567_v20 }
   0xa   :  { %2481 = vst [vmem:[%s6750_s1 + $0x4c0] sm:$0xff] %v3810_v14  ;;  %2482 = vst [vmem:[%s6750_s1 + $0x4c8] sm:$0xff] %v3810_v14  ;;  %vm28_vm0 = vcmp.gt.s32.totalorder %v27_v13, 0  ;;  %v3818_v37 = vmov 0.0615  }
   0xb   :  { %2713 = vst [vmem:[%s6750_s1 + $0x520] sm:$0xff] %v3810_v14  ;;  %3225 = vst [vmem:[%s6750_s1 + $0x608] sm:$0xff] %v3810_v14  ;;  %v29_v19 = vsel %vm28_vm0, %v27_v13, 0  ;;  %vm3027_vm1 = vcmp.gt.s32.totalorder %v3026_v17, 0  ;;  %v3819_v38 = vmov 2102212464  }
   0xc   :  { %3226 = vst [vmem:[%s6750_s1 + $0x610] sm:$0xff] %v3810_v14  ;;  %3228 = vst [vmem:[%s6750_s1 + $0x620] sm:$0xff] %v3810_v14  ;;  %v30_v23 = vshrl.u32 %v29_v19, 5  ;;  %v31_v24 = vand.u32 31, %v29_v19  ;;  %v3028_v25 = vsel %vm3027_vm1, %v3026_v17, 0  ;;  %vm248_vm10 = vcmp.gt.s32.totalorder %v3989_v42, 0 }
   0xd   :  { %3232 = vst [vmem:[%s6750_s1 + $0x640] sm:$0xff] %v3810_v14  ;;  %3458 = vst [vmem:[%s6750_s1 + $0x668] sm:$0xff] %v3810_v14  ;;  %v3030_v29 = vand.u32 31, %v3028_v25  ;;  %v3820_v40 = vmov 920167782   ;;  %v4002_v7 = vshrl.u32 %v3028_v25, 5 }
   0xe   :  { %228 = vst [vmem:[%s6750_s1 + $0x18] sm:$0xff] %v3811_v18  ;;  %978 = vst [vmem:[%s6750_s1 + $0x198] sm:$0xff] %v3811_v18  ;;  %v32_v30 = vsub.s32 32, %v31_v24  ;;  %v34_v32 = vshll.u32 %v3815_v31, %v31_v24  ;;  %v37_v34 = vshll.u32 %v3816_v33, %v31_v24  ;;  %v40_v36 = vshll.u32 %v3817_v35, %v31_v24 }
   0xf   :  { %1725 = vst [vmem:[%s6750_s1 + $0x318] sm:$0xff] %v3811_v18  ;;  %2476 = vst [vmem:[%s6750_s1 + $0x498] sm:$0xff] %v3811_v18  ;;  %v43_v39 = vshll.u32 %v3819_v38, %v31_v24  ;;  %v46_v41 = vshll.u32 %v3820_v40, %v31_v24  ;;  %vm49_vm2 = vcmp.lt.s32.totalorder %v30_v23, 1  ;;  %v3821_v48 = vmov 1326507024  }
  0x10   :  { %3227 = vst [vmem:[%s6750_s1 + $0x618] sm:$0xff] %v3811_v18  ;;  %232 = vst [vmem:[%s6750_s1 + $0x38] sm:$0xff] %v3812_v21  ;;  %v33_v43 = vshrl.u32 %v3815_v31, %v32_v30  ;;  %v35_v44 = vshrl.u32 %v3816_v33, %v32_v30  ;;  %v38_v45 = vshrl.u32 %v3817_v35, %v32_v30  ;;  %vm50_vm3 = vcmp.lt.s32.totalorder %v30_v23, 2 }
  0x11   :  { %235 = vst [vmem:[%s6750_s1 + $0x50] sm:$0xff] %v3813_v22  ;;  %975 = vst [vmem:[%s6750_s1 + $0x180] sm:$0xff] %v3813_v22  ;;  %v41_v46 = vshrl.u32 %v3819_v38, %v32_v30  ;;  %v44_v47 = vshrl.u32 %v3820_v40, %v32_v30  ;;  %v47_v49 = vshrl.u32 %v3821_v48, %v32_v30  ;;  %vm52_vm4 = vcmp.lt.s32.totalorder %v30_v23, 4 }
  0x12   :  { %1727 = vst [vmem:[%s6750_s1 + $0x328] sm:$0xff] %v3813_v22  ;;  %2483 = vst [vmem:[%s6750_s1 + $0x4d0] sm:$0xff] %v3813_v22  ;;  %v36_v50 = vor.u32 %v35_v44, %v34_v32  ;;  %v39_v51 = vor.u32 %v38_v45, %v37_v34  ;;  %v3031_v53 = vsub.s32 32, %v3030_v29  ;;  %vm51_vm5 = vcmp.lt.s32.totalorder %v30_v23, 3 }
  0x13   :  { %3224 = vst [vmem:[%s6750_s1 + $0x600] sm:$0xff] %v3813_v22  ;;  %236 = vst [vmem:[%s6750_s1 + $0x58] sm:$0xff] %v3814_v26  ;;  %v42_v52 = vor.u32 %v41_v46, %v40_v36  ;;  %v45_v54 = vor.u32 %v44_v47, %v43_v39  ;;  %v48_v55 = vor.u32 %v47_v49, %v46_v41  ;;  %v3024_v30 = vor.u32 8388608, %v3979_v28 }
  0x14   :  { %468 = vst [vmem:[%s6750_s1 + $0xb8] sm:$0xff] %v3818_v37  ;;  %v3033_v56 = vshll.u32 %v3815_v31, %v3030_v29  ;;  %v53_v57 = vsel %vm49_vm2, %v33_v43, %v36_v50  ;;  %v57_v59 = vsel %vm49_vm2, %v36_v50, %v39_v51  ;;  %v3036_v3 = vshll.u32 %v3816_v33, %v3030_v29 }
  0x15   :  { %v54_v58 = vsel %vm52_vm4, %v42_v52, 2102212464  ;;  %v61_v60 = vsel %vm49_vm2, %v39_v51, %v42_v52  ;;  %v58_v62 = vsel %vm52_vm4, %v45_v54, 920167782  ;;  %v62_v63 = vsel %vm52_vm4, %v48_v55, 1326507024 }
  0x16   :  { %v55_v61 = vsel %vm51_vm5, %v39_v51, %v54_v58  ;;  %v59_v4 = vsel %vm51_vm5, %v42_v52, %v58_v62  ;;  %v63_v6 = vsel %vm51_vm5, %v45_v54, %v62_v63  ;;  %v3034_v8 = vshrl.u32 %v3816_v33, %v3031_v53 }
  0x17   :  { %v56_v9 = vsel %vm50_vm3, %v53_v57, %v55_v61  ;;  %v60_v10 = vsel %vm50_vm3, %v57_v59, %v59_v4  ;;  %v64_v11 = vsel %vm50_vm3, %v61_v60, %v63_v6  ;;  %v3037_v12 = vshrl.u32 %v3817_v35, %v3031_v53 }
  0x18   :  { %v4010_v13 = vmul.u32.u64.low %v3975_v27, %v64_v11  ;;  %v4011_v14 = vmul.u32.u64.high %v3975_v27, %v64_v11, %v4010_v13  ;;  %v4014_v15 = vmul.u32.u64.low %v3975_v27, %v60_v10  ;;  %v4015_v17 = vmul.u32.u64.high %v3975_v27, %v60_v10, %v4014_v15 }
  0x19   :  { %v3035_v18 = vor.u32 %v3034_v8, %v3033_v56  ;;  %v3038_v19 = vor.u32 %v3037_v12, %v3036_v3  ;;  %v3039_v20 = vshll.u32 %v3817_v35, %v3030_v29  ;;  %v3040_v21 = vshrl.u32 %v3819_v38, %v3031_v53 }
  0x1a   :  { %v3042_v22 = vshll.u32 %v3819_v38, %v3030_v29  ;;  %v3043_v23 = vshrl.u32 %v3820_v40, %v3031_v53  ;;  %v3045_v24 = vshll.u32 %v3820_v40, %v3030_v29  ;;  %v3046_v25 = vshrl.u32 %v3821_v48, %v3031_v53 }
  0x1b   :  { %v72_v26 = vmul.u32 %v3975_v27, %v56_v9  ;;  %v3041_v32 = vor.u32 %v3040_v21, %v3039_v20  ;;  %vm3048_vm6 = vcmp.lt.s32.totalorder %v4002_v7, 1  ;;  %vm74_vm7 = vc.u32 %v4011_v14, %v4014_v15 }
  0x1c   :  { %v75_v34 = vadd.s32 1, %v4015_v17  ;;  %v3044_v36 = vor.u32 %v3043_v23, %v3042_v22  ;;  %vm3050_vm8 = vcmp.lt.s32.totalorder %v4002_v7, 3  ;;  %v3047_v37 = vor.u32 %v3046_v25, %v3045_v24 }
  0x1d   :  { %vm3051_vm9 = vcmp.lt.s32.totalorder %v4002_v7, 4  ;;  %v237_v29 = vand.u32 2147483647, %v3858_v5  ;;  %vm3049_vm11 = vcmp.lt.s32.totalorder %v4002_v7, 2  ;;  %v3056_v28 = vsel %vm3048_vm6, %v3035_v18, %v3038_v19 }
  0x1e   :  { %v76_v27 = vsel %vm74_vm7, %v75_v34, %v4015_v17  ;;  %v3057_v39 = vsel %vm3051_vm9, %v3044_v36, 920167782  ;;  %v3061_v44 = vsel %vm3051_vm9, %v3047_v37, 1326507024  ;;  %v3060_v45 = vsel %vm3048_vm6, %v3038_v19, %v3041_v32 }
  0x1f   :  { %v77_v41 = vadd.s32 %v76_v27, %v72_v26  ;;  %v3058_v43 = vsel %vm3050_vm8, %v3041_v32, %v3057_v39  ;;  %v3062_v46 = vsel %vm3050_vm8, %v3044_v36, %v3061_v44  ;;  %v4046_v47 = vshll.u32 %v3024_v30, 8 }
  0x20   :  { %v249_v49 = vsel %vm248_vm10, %v3989_v42, 0  ;;  %v3059_v51 = vsel %vm3049_vm11, %v3056_v28, %v3058_v43  ;;  %v244_v52 = vand.u32 8388607, %v237_v29  ;;  %v3032_v55 = vshrl.u32 %v3815_v31, %v3031_v53 }
  0x21   :  { %v78_v50 = vadd.s32 536870912, %v77_v41  ;;  %v3063_v56 = vsel %vm3049_vm11, %v3060_v45, %v3062_v46  ;;  %v251_v57 = vand.u32 31, %v249_v49  ;;  %v3053_v58 = vsel %vm3051_vm9, %v3041_v32, 2102212464 }
  0x22   :  { %v4061_v42 = vmul.u32.u64.low %v4046_v47, %v3059_v51  ;;  %v4062_v59 = vmul.u32.u64.high %v4046_v47, %v3059_v51, %v4061_v42  ;;  %v4067_v62 = vmul.u32.u64.low %v4046_v47, %v3063_v56  ;;  %v4068_v63 = vmul.u32.u64.high %v4046_v47, %v3063_v56, %v4067_v62 }
  0x23   :  { %v4053_v54 = vshrl.u32 %v78_v50, 30  ;;  %v252_v61 = vsub.s32 32, %v251_v57  ;;  %v3052_v3 = vsel %vm3048_vm6, %v3032_v55, %v3035_v18  ;;  %v3054_v4 = vsel %vm3050_vm8, %v3038_v19, %v3053_v58 }
  0x24   :  { %v245_v6 = vor.u32 8388608, %v244_v52  ;;  %v254_v8 = vshll.u32 %v3815_v31, %v251_v57  ;;  %v257_v10 = vshll.u32 %v3816_v33, %v251_v57  ;;  %v250_v13 = vshrl.u32 %v249_v49, 5 }
  0x25   :  { %v80_v60 = vshll.u32 %v4053_v54, 30  ;;  %v255_v9 = vshrl.u32 %v3816_v33, %v252_v61  ;;  %v258_v11 = vshrl.u32 %v3817_v35, %v252_v61  ;;  %v260_v17 = vshll.u32 %v3817_v35, %v251_v57 }
  0x26   :  { %v261_v20 = vshrl.u32 %v3819_v38, %v252_v61  ;;  %v73_v18 = vadd.s32 %v4014_v15, %v4011_v14  ;;  %v3055_v21 = vsel %vm3049_vm11, %v3052_v3, %v3054_v4  ;;  %v4087_v22 = vshll.u32 %v245_v6, 8 }
  0x27   :  { %v4070_v53 = vsub.s32 %v77_v41, %v80_v60  ;;  %v3074_v23 = vadd.s32 1, %v4062_v59  ;;  %v256_v24 = vor.u32 %v255_v9, %v254_v8  ;;  %v259_v25 = vor.u32 %v258_v11, %v257_v10 }
  0x28   :  { %v263_v26 = vshll.u32 %v3819_v38, %v251_v57  ;;  %v264_v32 = vshrl.u32 %v3820_v40, %v252_v61  ;;  %v266_v34 = vshll.u32 %v3820_v40, %v251_v57  ;;  %v267_v14 = vshrl.u32 %v3821_v48, %v252_v61 }
  0x29   :  { %v83_v12 = vsub.s32 0, %v4070_v53  ;;  %vm3073_vm12 = vc.u32 %v4068_v63, %v4061_v42  ;;  %v253_v7 = vshrl.u32 %v3815_v31, %v252_v61  ;;  %v262_v15 = vor.u32 %v261_v20, %v260_v17 }
  0x2a   :  { %vm269_vm13 = vcmp.lt.s32.totalorder %v250_v13, 1  ;;  %v3071_v37 = vmul.u32 %v4046_v47, %v3055_v21  ;;  %v265_v27 = vor.u32 %v264_v32, %v263_v26  ;;  %vm272_vm15 = vcmp.lt.s32.totalorder %v250_v13, 4 }
  0x2b   :  { %v3560_v19 = vmin.u32 %v83_v12, %v4070_v53  ;;  %v268_v28 = vor.u32 %v267_v14, %v266_v34  ;;  %vm271_vm0 = vcmp.lt.s32.totalorder %v250_v13, 3  ;;  %v274_v39 = vsel %vm272_vm15, %v262_v15, 2102212464 }
  0x2c   :  { %v4101_v41 = vmul.f32 0.5, %v3858_v5  ;;  %v3075_v43 = vsel %vm3073_vm12, %v3074_v23, %v4062_v59  ;;  %vm270_vm2 = vcmp.lt.s32.totalorder %v250_v13, 2  ;;  %v277_v44 = vsel %vm269_vm13, %v256_v24, %v259_v25 }
  0x2d   :  { %v85_v30 = vclz %v3560_v19  ;;  %v273_v46 = vsel %vm269_vm13, %v253_v7, %v256_v24  ;;  %v275_v47 = vsel %vm271_vm0, %v259_v25, %v274_v39  ;;  %v278_v49 = vsel %vm272_vm15, %v265_v27, 920167782  ;;  %v4151_v39 = vld [vmem:[%s6749_s0 + $0x10] sm:$0xff] }
  0x2e   :  { %v279_v55 = vsel %vm271_vm0, %v262_v15, %v278_v49  ;;  %v103_v56 = vsub.s32 4, %v4053_v54  ;;  %v281_v58 = vsel %vm269_vm13, %v259_v25, %v262_v15  ;;  %v282_v59 = vsel %vm272_vm15, %v268_v28, 1326507024 }
  0x2f   :  { %v3561_v36 = vadd.s32 4294967294, %v85_v30  ;;  %v280_v57 = vsel %vm270_vm2, %v277_v44, %v279_v55  ;;  %v3076_v62 = vadd.s32 %v3075_v43, %v3071_v37  ;;  %v283_v3 = vsel %vm271_vm0, %v265_v27, %v282_v59 }
  0x30   :  { %v276_v4 = vsel %vm270_vm2, %v273_v46, %v275_v47  ;;  %v4118_v6 = vmul.u32.u64.low %v4087_v22, %v280_v57  ;;  %v4119_v8 = vmul.u32.u64.high %v4087_v22, %v280_v57, %v4118_v6  ;;  %v104_v17 = vsel %vm19_vm14, %v103_v56, %v4053_v54 }
  0x31   :  { %vm3562_vm1 = vcmp.lt.s32.totalorder %v3561_v36, 0  ;;  %v514_v20 = vand.u32 2139095040, %v4101_v41  ;;  %v292_v19 = vmul.u32 %v4087_v22, %v276_v4  ;;  %vm4133_vm3 = vcmp.le.f32.partialorder %v17_v2, 0.7853982 }
  0x32   :  { %v88_v45 = vsel %vm3562_vm1, 0, %v3561_v36  ;;  %v295_v23 = vadd.s32 1, %v4119_v8  ;;  %v106_v26 = vsel %vm4133_vm3, 0, %v104_v17  ;;  %v3077_v54 = vadd.s32 536870912, %v3076_v62 }
  0x33   :  { %v89_v50 = vsub.s32 32, %v88_v45  ;;  %v90_v51 = vshll.u32 %v4070_v53, %v88_v45  ;;  %v93_v52 = vsub.s32 4294967266, %v88_v45  ;;  %v284_v53 = vsel %vm270_vm2, %v281_v58, %v283_v3 }
  0x34   :  { %v4123_v11 = vmul.u32.u64.low %v4087_v22, %v284_v53  ;;  %v4124_v12 = vmul.u32.u64.high %v4087_v22, %v284_v53, %v4123_v11  ;;  %v515_v24 = vshrl.u32 %v514_v20, 23  ;;  %v213_v2 = vadd.s32 3, %v106_v26 }
  0x35   :  { %v91_v60 = vshrl.u32 %v73_v18, %v89_v50  ;;  %v94_v61 = vadd.s32 127, %v93_v52  ;;  %v4143_v7 = vshrl.u32 %v3077_v54, 30  ;;  %v511_v37 = vand.u32 2147483647, %v4101_v41 }
  0x36   :  { %vm294_vm4 = vc.u32 %v4124_v12, %v4118_v6  ;;  %v3575_v34 = vadd.s32 4294967169, %v515_v24  ;;  %v4156_v44 = vand.u32 3, %v106_v26  ;;  %v4159_v47 = vand.u32 3, %v213_v2 }
  0x37   :  { %v92_v9 = vor.u32 %v91_v60, %v90_v51  ;;  %v95_v10 = vshll.u32 %v94_v61, 23  ;;  %v296_v30 = vsel %vm294_vm4, %v295_v23, %v4119_v8  ;;  %v3079_v46 = vshll.u32 %v4143_v7, 30 }
  0x38   :  { %v297_v32 = vadd.s32 %v296_v30, %v292_v19  ;;  %v521_v36 = vadd.s32 1, %v3575_v34  ;;  %v518_v50 = vand.u32 8388607, %v511_v37  ;;  %v770_v52 = vand.u32 2139095040, %v4151_v39 }
  0x39   :  { %v96_v18 = vor.u32 4788187, %v95_v10  ;;  %v99_v13 = vcvt.s32.f32 %v92_v9  ;;  %vm239_vm6 = vcmp.lt.s32.totalorder %v3858_v5, 0  ;;  %v767_v57 = vand.u32 2147483647, %v4151_v39 }
  0x3a   :  { %v298_v15 = vadd.s32 536870912, %v297_v32  ;;  %vm522_vm5 = vcmp.gt.s32.totalorder %v521_v36, 0  ;;  %vm111_vm7 = vcmp.lt.s32.totalorder %v4156_v44, 2  ;;  %vm112_vm8 = vcmp.eq.s32.totalorder %v4156_v44, 0 }
  0x3b   :  { %v97_v25 = vand.u32 2147483647, %v96_v18  ;;  %v523_v45 = vsel %vm522_vm5, %v521_v36, 0  ;;  %vm115_vm9 = vcmp.eq.s32.totalorder %v4156_v44, 2  ;;  %v4171_v58 = vsub.s32 %v3076_v62, %v3079_v46 }
  0x3c   :  { %v299_v28 = vshrl.u32 %v298_v15, 30  ;;  %v525_v51 = vand.u32 31, %v523_v45  ;;  %vm109_vm10 = vweird.f32 %v3845_v0  ;;  %vm215_vm11 = vcmp.lt.s32.totalorder %v4159_v47, 2 }
  0x3d   :  { %v100_v22 = vmul.f32 %v99_v13, %v97_v25  ;;  %v519_v61 = vor.u32 8388608, %v518_v50  ;;  %v771_v3 = vshrl.u32 %v770_v52, 23  ;;  %v4177_v53 = vshrl.u32 %v523_v45, 5 }
  0x3e   :  { %v300_v49 = vshll.u32 %v299_v28, 30  ;;  %v526_v56 = vsub.s32 32, %v525_v51  ;;  %v323_v60 = vsub.s32 4, %v299_v28  ;;  %v528_v8 = vshll.u32 %v3815_v31, %v525_v51 }
  0x3f   :  { %v101_v14 = vxor.u32 2147483648, %v100_v22  ;;  %vm216_vm12 = vcmp.eq.s32.totalorder %v4159_v47, 0  ;;  %vm219_vm13 = vcmp.eq.s32.totalorder %v4159_v47, 2  ;;  %v531_v62 = vshll.u32 %v3816_v33, %v525_v51 }
  0x40   :  { %v4164_v55 = vsub.s32 %v297_v32, %v300_v49  ;;  %v529_v9 = vshrl.u32 %v3816_v33, %v526_v56  ;;  %v532_v10 = vshrl.u32 %v3817_v35, %v526_v56  ;;  %v3082_v11 = vsub.s32 0, %v4171_v58 }
  0x41   :  { %v102_v27 = vsel %vm19_vm14, %v101_v14, %v100_v22  ;;  %v534_v20 = vshll.u32 %v3817_v35, %v525_v51  ;;  %v535_v18 = vshrl.u32 %v3819_v38, %v526_v56  ;;  %v293_v13 = vadd.s32 %v4118_v6, %v4124_v12 }
  0x42   :  { %v105_v43 = vsel %vm4133_vm3, %v3845_v0, %v102_v27  ;;  %v303_v59 = vsub.s32 0, %v4164_v55  ;;  %v4192_v19 = vsel %vm239_vm6, %v323_v60, %v299_v28  ;;  %v4194_v21 = vshll.u32 %v519_v61, 8 }
  0x43   :  { %3749 = vcosq.f32 %v105_v43  ;;  %v4196_v23 = vadd.s32 4294967169, %v771_v3  ;;  %v527_v26 = vshrl.u32 %v3815_v31, %v526_v56  ;;  %v530_v54 = vor.u32 %v529_v9, %v528_v8 }
  0x44   :  { %3751 = vsinq.f32 %v105_v43  ;;  %v3568_v4 = vmin.u32 %v303_v59, %v4164_v55  ;;  %vm543_vm14 = vcmp.lt.s32.totalorder %v4177_v53, 1  ;;  %v533_v32 = vor.u32 %v532_v10, %v531_v62 }
  0x45   :  { %v536_v34 = vor.u32 %v535_v18, %v534_v20  ;;  %v537_v6 = vshll.u32 %v3819_v38, %v525_v51  ;;  %vm544_vm15 = vcmp.lt.s32.totalorder %v4177_v53, 2  ;;  %v538_v2 = vshrl.u32 %v3820_v40, %v526_v56 }
  0x46   :  { %v305_v17 = vclz %v3568_v4  ;;  %v540_v14 = vshll.u32 %v3820_v40, %v525_v51  ;;  %v541_v28 = vshrl.u32 %v3821_v48, %v526_v56  ;;  %vm4215_vm1 = vcmp.le.f32.partialorder %v237_v29, 0.7853982 }
  0x47   :  { %vm546_vm2 = vcmp.lt.s32.totalorder %v4177_v53, 4  ;;  %v539_v61 = vor.u32 %v538_v2, %v537_v6  ;;  %vm545_vm3 = vcmp.lt.s32.totalorder %v4177_v53, 3  ;;  %v4317_v53 = vmin.u32 %v3082_v11, %v4171_v58 }
  0x48   :  { %v3569_v25 = vadd.s32 4294967294, %v305_v17  ;;  %v542_v8 = vor.u32 %v541_v28, %v540_v14  ;;  %v548_v10 = vsel %vm546_vm2, %v536_v34, 2102212464  ;;  %v551_v17 = vsel %vm543_vm14, %v530_v54, %v533_v32 }
  0x49   :  { %v555_v14 = vsel %vm543_vm14, %v533_v32, %v536_v34 }
  0x4a   :  { %vm3570_vm0 = vcmp.lt.s32.totalorder %v3569_v25, 0 }
  0x4b   :  { %v308_v27 = vsel %vm3570_vm0, 0, %v3569_v25 }
  0x4c   :  { %v309_v49 = vsub.s32 32, %v308_v27  ;;  %v310_v50 = vshll.u32 %v4164_v55, %v308_v27  ;;  %v313_v56 = vsub.s32 4294967266, %v308_v27 }
  0x4d   :  { %v3750_v24 = vpop.eup %3749 }
  0x4e   :  { %v3752_v30 = vpop.eup %3751  ;;  %v116_v22 = vxor.u32 2147483648, %v3750_v24  ;;  %v311_v60 = vshrl.u32 %v293_v13, %v309_v49  ;;  %v314_v44 = vadd.s32 127, %v313_v56  ;;  %v547_v13 = vsel %vm543_vm14, %v527_v26, %v530_v54 }
  0x4f   :  { %v113_v12 = vxor.u32 2147483648, %v3752_v30  ;;  %v556_v26 = vsel %vm546_vm2, %v542_v8, 1326507024  ;;  %vm4363_vm14 = vcmp.le.f32.partialorder %v511_v37, 0.7853982 }
  0x50   :  { %v117_v15 = vsel %vm115_vm9, %v116_v22, %v3752_v30  ;;  %v221_v36 = vsel %vm219_vm13, %v116_v22, %v3752_v30  ;;  %v312_v3 = vor.u32 %v311_v60, %v310_v50  ;;  %v315_v9 = vshll.u32 %v314_v44, 23 }
  0x51   :  { %v114_v43 = vsel %vm112_vm8, %v3750_v24, %v113_v12  ;;  %v218_v45 = vsel %vm216_vm12, %v3750_v24, %v113_v12  ;;  %v552_v24 = vsel %vm546_vm2, %v539_v61, 920167782  ;;  %v549_v22 = vsel %vm545_vm3, %v533_v32, %v548_v10 }
  0x52   :  { %v118_v51 = vsel %vm111_vm7, %v114_v43, %v117_v15  ;;  %v222_v52 = vsel %vm215_vm11, %v218_v45, %v221_v36  ;;  %v319_v20 = vcvt.s32.f32 %v312_v3  ;;  %v316_v25 = vor.u32 4788187, %v315_v9 }
  0x53   :  { %v4227_v59 = vsel %vm109_vm10, nan, %v118_v51  ;;  %v4231_v29 = vsel %vm109_vm10, nan, %v222_v52  ;;  %v553_v6 = vsel %vm545_vm3, %v536_v34, %v552_v24  ;;  %v326_v15 = vsel %vm4215_vm1, 0, %v4192_v19 }
  0x54   :  { %225 = vst [vmem:[%s6750_s1] sm:$0xff] %v4227_v59  ;;  %230 = vst [vmem:[%s6750_s1 + $0x28] sm:$0xff] %v4227_v59  ;;  %v4246_v0 = vsub.f32 0.0, %v4231_v29  ;;  %v447_v47 = vmul.f32 0.004, %v4227_v59  ;;  %v453_v55 = vmul.f32 0.004, %v4231_v29  ;;  %v554_v2 = vsel %vm544_vm15, %v551_v17, %v553_v6 }
  0x55   :  { %457 = vst [vmem:[%s6750_s1 + $0x60] sm:$0xff] %v4227_v59  ;;  %229 = vst [vmem:[%s6750_s1 + $0x20] sm:$0xff] %v4231_v29  ;;  %v454_v4 = vmul.f32 -0.004, %v4227_v59  ;;  %v317_v54 = vand.u32 2147483647, %v316_v25  ;;  %v557_v27 = vsel %vm545_vm3, %v539_v61, %v556_v26  ;;  %v550_v32 = vsel %vm544_vm15, %v547_v13, %v549_v22 }
  0x56   :  { %461 = vst [vmem:[%s6750_s1 + $0x80] sm:$0xff] %v4231_v29  ;;  %226 = vst [vmem:[%s6750_s1 + $0x8] sm:$0xff] %v4246_v0  ;;  %v448_v62 = vmul.f32 -0.004, %v4246_v0  ;;  %v558_v34 = vsel %vm544_vm15, %v555_v14, %v557_v27  ;;  %v4301_v28 = vmul.u32.u64.low %v4194_v21, %v554_v2  ;;  %v4302_v43 = vmul.u32.u64.high %v4194_v21, %v554_v2, %v4301_v28  ;;  %v4358_v26 = vld [vmem:[%s6749_s0 + $0x18] sm:$0xff] }
  0x57   :  { %v455_v18 = vadd.f32 %v454_v4, %v453_v55  ;;  %v320_v19 = vmul.f32 %v319_v20, %v317_v54  ;;  %v4310_v45 = vmul.u32.u64.low %v4194_v21, %v558_v34  ;;  %v4311_v49 = vmul.u32.u64.high %v4194_v21, %v558_v34, %v4310_v45 }
  0x58   :  { %v449_v30 = vadd.f32 %v448_v62, %v447_v47  ;;  %v777_v50 = vadd.s32 1, %v4196_v23  ;;  %v433_v51 = vadd.s32 3, %v326_v15  ;;  %v566_v56 = vmul.u32 %v4194_v21, %v550_v32 }
  0x59   :  { %v4277_v12 = vadd.f32 -0.005, %v455_v18  ;;  %v321_v52 = vxor.u32 2147483648, %v320_v19  ;;  %v569_v60 = vadd.s32 1, %v4302_v43  ;;  %v4323_v47 = vand.u32 3, %v326_v15 }
  0x5a   :  { %v4288_v36 = vadd.f32 0.002, %v449_v30  ;;  %vm778_vm4 = vcmp.gt.s32.totalorder %v777_v50, 0  ;;  %vm568_vm5 = vc.u32 %v4311_v49, %v4301_v28  ;;  %v774_v23 = vand.u32 8388607, %v767_v57 }
  0x5b   :  { %464 = vst [vmem:[%s6750_s1 + $0x98] sm:$0xff] %v4277_v12  ;;  %v779_v61 = vsel %vm778_vm4, %v777_v50, 0  ;;  %v322_v44 = vsel %vm239_vm6, %v321_v52, %v320_v19  ;;  %v4332_v21 = vand.u32 3, %v433_v51  ;;  %v570_v55 = vsel %vm568_vm5, %v569_v60, %v4302_v43 }
  0x5c   :  { %460 = vst [vmem:[%s6750_s1 + $0x78] sm:$0xff] %v4288_v36  ;;  %v325_v11 = vsel %vm4215_vm1, %v3858_v5, %v322_v44  ;;  %v781_v3 = vand.u32 31, %v779_v61  ;;  %v3084_v4 = vclz %v4317_v53  ;;  %v571_v8 = vadd.s32 %v570_v55, %v566_v56 }
  0x5d   :  { %3753 = vcosq.f32 %v325_v11  ;;  %v4336_v9 = vshrl.u32 %v779_v61, 5  ;;  %vm335_vm6 = vcmp.eq.s32.totalorder %v4323_v47, 2  ;;  %vm513_vm7 = vcmp.lt.s32.totalorder %v4101_v41, 0 }
  0x5e   :  { %3755 = vsinq.f32 %v325_v11  ;;  %v782_v62 = vsub.s32 32, %v781_v3  ;;  %v784_v10 = vshll.u32 %v3815_v31, %v781_v3  ;;  %v787_v17 = vshll.u32 %v3816_v33, %v781_v3 }
  0x5f   :  { %v572_v46 = vadd.s32 536870912, %v571_v8  ;;  %v790_v20 = vshll.u32 %v3817_v35, %v781_v3  ;;  %v793_v18 = vshll.u32 %v3819_v38, %v781_v3  ;;  %v796_v13 = vshll.u32 %v3820_v40, %v781_v3 }
  0x60   :  { %vm332_vm8 = vcmp.eq.s32.totalorder %v4323_v47, 0  ;;  %vm436_vm9 = vcmp.eq.s32.totalorder %v4332_v21, 0  ;;  %v775_v24 = vor.u32 8388608, %v774_v23  ;;  %v785_v25 = vshrl.u32 %v3816_v33, %v782_v62 }
  0x61   :  { %v788_v30 = vshrl.u32 %v3817_v35, %v782_v62  ;;  %v791_v22 = vshrl.u32 %v3819_v38, %v782_v62  ;;  %vm331_vm10 = vcmp.lt.s32.totalorder %v4323_v47, 2  ;;  %vm435_vm11 = vcmp.lt.s32.totalorder %v4332_v21, 2 }
  0x62   :  { %v573_v6 = vshrl.u32 %v572_v46, 30  ;;  %v794_v2 = vshrl.u32 %v3820_v40, %v782_v62  ;;  %v797_v14 = vshrl.u32 %v3821_v48, %v782_v62  ;;  %vm799_vm12 = vcmp.lt.s32.totalorder %v4336_v9, 1 }
  0x63   :  { %vm329_vm13 = vweird.f32 %v3858_v5  ;;  %v786_v15 = vor.u32 %v785_v25, %v784_v10  ;;  %v789_v27 = vor.u32 %v788_v30, %v787_v17  ;;  %v792_v32 = vor.u32 %v791_v22, %v790_v20 }
  0x64   :  { %vm802_vm15 = vcmp.lt.s32.totalorder %v4336_v9, 4  ;;  %v574_v34 = vshll.u32 %v573_v6, 30  ;;  %v795_v43 = vor.u32 %v794_v2, %v793_v18  ;;  %v798_v19 = vor.u32 %v797_v14, %v796_v13 }
  0x65   :  { %vm801_vm0 = vcmp.lt.s32.totalorder %v4336_v9, 3  ;;  %vm439_vm1 = vcmp.eq.s32.totalorder %v4332_v21, 2  ;;  %v597_v45 = vsub.s32 4, %v573_v6  ;;  %v783_v50 = vshrl.u32 %v3815_v31, %v782_v62 }
  0x66   :  { %v990_v37 = vand.u32 2139095040, %v4358_v26  ;;  %v4373_v51 = vmul.f32 0.006, %v4227_v59  ;;  %v4376_v52 = vmul.f32 0.006, %v4231_v29  ;;  %v4378_v56 = vsub.s32 %v571_v8, %v574_v34 }
  0x67   :  { %v808_v60 = vsel %vm802_vm15, %v795_v43, 920167782  ;;  %vm800_vm2 = vcmp.lt.s32.totalorder %v4336_v9, 2  ;;  %v807_v61 = vsel %vm799_vm12, %v786_v15, %v789_v27  ;;  %v4387_v23 = vshll.u32 %v775_v24, 8  ;;  %v3754_v11 = vpop.eup %3753 }
  0x68   :  { %v809_v44 = vsel %vm801_vm0, %v792_v32, %v808_v60  ;;  %v4391_v55 = vadd.s32 %v4301_v28, %v4311_v49  ;;  %v577_v3 = vsub.s32 0, %v4378_v56  ;;  %v804_v8 = vsel %vm802_vm15, %v792_v32, 2102212464  ;;  %v3756_v10 = vpop.eup %3755 }
  0x69   :  { %v812_v62 = vsel %vm802_vm15, %v798_v19, 1326507024  ;;  %v336_v17 = vxor.u32 2147483648, %v3754_v11  ;;  %v598_v46 = vsel %vm513_vm7, %v597_v45, %v573_v6  ;;  %v4402_v20 = vsel %vm799_vm12, %v783_v50, %v786_v15 }
  0x6a   :  { %v4404_v18 = vshrl.u32 %v990_v37, 23  ;;  %v333_v28 = vxor.u32 2147483648, %v3756_v10  ;;  %v3576_v49 = vmin.u32 %v577_v3, %v4378_v56  ;;  %v4409_v13 = vsel %vm800_vm2, %v807_v61, %v809_v44 }
  0x6b   :  { %v811_v24 = vsel %vm799_vm12, %v789_v27, %v792_v32  ;;  %v337_v25 = vsel %vm335_vm6, %v336_v17, %v3756_v10  ;;  %v441_v30 = vsel %vm439_vm1, %v336_v17, %v3756_v10  ;;  %v4419_v22 = vsel %vm801_vm0, %v789_v27, %v804_v8 }
  0x6c   :  { %v813_v6 = vsel %vm801_vm0, %v795_v43, %v812_v62  ;;  %v334_v2 = vsel %vm332_vm8, %v3754_v11, %v333_v28  ;;  %v438_v14 = vsel %vm436_vm9, %v3754_v11, %v333_v28  ;;  %v579_v15 = vclz %v3576_v49 }
  0x6d   :  { %v4429_v32 = vsel %vm4363_vm14, 0, %v598_v46  ;;  %v338_v34 = vsel %vm331_vm10, %v334_v2, %v337_v25  ;;  %v442_v27 = vsel %vm435_vm11, %v438_v14, %v441_v30  ;;  %v4449_v47 = vsel %vm800_vm2, %v811_v24, %v813_v6 }
  0x6e   :  { %v4437_v43 = vmul.u32.u64.low %v4387_v23, %v4409_v13  ;;  %v4438_v19 = vmul.u32.u64.high %v4387_v23, %v4409_v13, %v4437_v43  ;;  %v339_v45 = vsel %vm329_vm13, nan, %v338_v34  ;;  %v4445_v50 = vsel %vm329_vm13, nan, %v442_v27 }
  0x6f   :  { %v3577_v37 = vadd.s32 4294967294, %v579_v15  ;;  %v4452_v21 = vmul.f32 %v339_v45, %v4246_v0  ;;  %466 = vst [vmem:[%s6750_s1 + $0xa8] sm:$0xff] %v4445_v50  ;;  %467 = vst [vmem:[%s6750_s1 + $0xb0] sm:$0xff] %v339_v45  ;;  %v444_v5 = vsub.f32 0.0, %v4445_v50  ;;  %v4467_v60 = vmul.f32 %v339_v45, %v4227_v59 }
  0x70   :  { %507 = vst [vmem:[%s6750_s1 + $0x108] sm:$0xff] %v4445_v50  ;;  %v471_v61 = vmul.f32 %v4445_v50, %v4227_v59  ;;  %v480_v44 = vmul.f32 %v339_v45, %v4231_v29  ;;  %v483_v11 = vmul.f32 %v4445_v50, %v4231_v29  ;;  %v4474_v3 = vmul.f32 %v339_v45, %v339_v45 }
  0x71   :  { %v494_v8 = vmul.f32 -0.003, %v4445_v50  ;;  %458 = vst [vmem:[%s6750_s1 + $0x68] sm:$0xff] %v4452_v21  ;;  %499 = vst [vmem:[%s6750_s1 + $0xc8] sm:$0xff] %v4452_v21  ;;  %v446_v62 = vmul.f32 %v444_v5, %v4246_v0  ;;  %v452_v29 = vmul.f32 %v444_v5, %v4227_v59  ;;  %v475_v10 = vmul.f32 -0.003, %v4452_v21 }
  0x72   :  { %462 = vst [vmem:[%s6750_s1 + $0x88] sm:$0xff] %v4467_v60  ;;  %503 = vst [vmem:[%s6750_s1 + $0xe8] sm:$0xff] %v4467_v60  ;;  %v487_v17 = vmul.f32 -0.003, %v4467_v60  ;;  %v4497_v46 = vmul.f32 %v444_v5, %v339_v45  ;;  %v495_v0 = vmul.f32 0.033, %v339_v45  ;;  %vm603_vm11 = vweird.f32 %v4101_v41 }
  0x73   :  { %508 = vst [vmem:[%s6750_s1 + $0x110] sm:$0xff] %v4474_v3  ;;  %765 = vst [vmem:[%s6750_s1 + $0x170] sm:$0xff] %v4474_v3  ;;  %vm3578_vm3 = vcmp.lt.s32.totalorder %v3577_v37, 0  ;;  %v726_v59 = vmul.f32 -0.002, %v4452_v21  ;;  %v469_v28 = vmul.f32 %v446_v62, %v444_v5  ;;  %v472_v49 = vmul.f32 %v446_v62, %v339_v45 }
  0x74   :  { %459 = vst [vmem:[%s6750_s1 + $0x70] sm:$0xff] %v446_v62  ;;  %463 = vst [vmem:[%s6750_s1 + $0x90] sm:$0xff] %v452_v29  ;;  %v476_v13 = vadd.f32 %v475_v10, %v4373_v51  ;;  %v477_v24 = vmul.f32 0.033, %v446_v62  ;;  %v481_v25 = vmul.f32 %v452_v29, %v444_v5  ;;  %v484_v30 = vmul.f32 %v452_v29, %v339_v45 }
  0x75   :  { %v488_v6 = vadd.f32 %v487_v17, %v4376_v52  ;;  %v489_v2 = vmul.f32 0.033, %v452_v29  ;;  %506 = vst [vmem:[%s6750_s1 + $0x100] sm:$0xff] %v4497_v46  ;;  %v4521_v14 = vadd.f32 %v469_v28, %v4467_v60  ;;  %v473_v15 = vadd.f32 %v472_v49, %v471_v61 }
  0x76   :  { %v478_v34 = vadd.f32 %v477_v24, %v476_v13  ;;  %v496_v27 = vadd.f32 %v495_v0, %v494_v8  ;;  %v4523_v16 = vadd.f32 %v481_v25, %v480_v44  ;;  %v485_v51 = vadd.f32 %v484_v30, %v483_v11 }
  0x77   :  { %v490_v62 = vadd.f32 %v489_v2, %v488_v6  ;;  %v582_v45 = vsel %vm3578_vm3, 0, %v3577_v37  ;;  %498 = vst [vmem:[%s6750_s1 + $0xc0] sm:$0xff] %v4521_v14  ;;  %500 = vst [vmem:[%s6750_s1 + $0xd0] sm:$0xff] %v473_v15  ;;  %v725_v11 = vmul.f32 0.008, %v4521_v14  ;;  %vm769_vm3 = vcmp.lt.s32.totalorder %v4151_v39, 0 }
  0x78   :  { %757 = vst [vmem:[%s6750_s1 + $0x130] sm:$0xff] %v473_v15  ;;  %v479_v52 = vadd.f32 %v478_v34, %v4288_v36  ;;  %v497_v5 = vadd.f32 0.0615, %v496_v27  ;;  %v583_v61 = vsub.s32 32, %v582_v45  ;;  %v584_v44 = vshll.u32 %v4378_v56, %v582_v45  ;;  %502 = vst [vmem:[%s6750_s1 + $0xe0] sm:$0xff] %v4523_v16 }
  0x79   :  { %504 = vst [vmem:[%s6750_s1 + $0xf0] sm:$0xff] %v485_v51  ;;  %761 = vst [vmem:[%s6750_s1 + $0x150] sm:$0xff] %v485_v51  ;;  %v491_v37 = vadd.f32 %v490_v62, %v4277_v12  ;;  %v587_v36 = vsub.s32 4294967266, %v582_v45  ;;  %v728_v8 = vmul.f32 0.0345, %v473_v15  ;;  %v727_v0 = vadd.f32 %v726_v59, %v725_v11 }
  0x7a   :  { %501 = vst [vmem:[%s6750_s1 + $0xd8] sm:$0xff] %v479_v52  ;;  %509 = vst [vmem:[%s6750_s1 + $0x118] sm:$0xff] %v497_v5  ;;  %v585_v56 = vshrl.u32 %v4391_v55, %v583_v61  ;;  %v737_v29 = vmul.f32 0.008, %v4523_v16  ;;  %v738_v10 = vmul.f32 -0.002, %v4467_v60  ;;  %v806_v55 = vsel %vm800_vm2, %v4402_v20, %v4419_v22 }
  0x7b   :  { %v740_v17 = vmul.f32 0.0345, %v485_v51  ;;  %505 = vst [vmem:[%s6750_s1 + $0xf8] sm:$0xff] %v491_v37  ;;  %v588_v12 = vadd.s32 127, %v587_v36  ;;  %v749_v28 = vmul.f32 0.008, %v4497_v46  ;;  %v729_v6 = vadd.f32 %v728_v8, %v727_v0 }
  0x7c   :  { %v750_v49 = vmul.f32 -0.002, %v4445_v50  ;;  %v586_v13 = vor.u32 %v585_v56, %v584_v44  ;;  %v739_v24 = vadd.f32 %v738_v10, %v737_v29  ;;  %v752_v25 = vmul.f32 0.0345, %v4474_v3 }
  0x7d   :  { %v589_v30 = vshll.u32 %v588_v12, 23  ;;  %v825_v15 = vadd.s32 1, %v4438_v19  ;;  %v4572_v27 = vmul.u32.u64.low %v4387_v23, %v4449_v47  ;;  %v4573_v51 = vmul.u32.u64.high %v4387_v23, %v4449_v47, %v4572_v27 }
  0x7e   :  { %v751_v2 = vadd.f32 %v750_v49, %v749_v28  ;;  %v593_v34 = vcvt.s32.f32 %v586_v13  ;;  %v741_v59 = vadd.f32 %v740_v17, %v739_v24  ;;  %v730_v45 = vadd.f32 %v729_v6, %v479_v52 }
  0x7f   :  { %v590_v62 = vor.u32 4788187, %v589_v30  ;;  %v3591_v61 = vadd.s32 4294967169, %v4404_v18  ;;  %v822_v9 = vmul.u32 %v4387_v23, %v806_v55  ;;  %v3822_v11 = vmov -0.001  }
  0x80   :  { %v753_v3 = vadd.f32 %v752_v25, %v751_v2  ;;  %v742_v44 = vadd.f32 %v741_v59, %v491_v37  ;;  %758 = vst [vmem:[%s6750_s1 + $0x138] sm:$0xff] %v730_v45  ;;  %982 = vst [vmem:[%s6750_s1 + $0x1b8] sm:$0xff] %v3822_v11  ;;  %v3823_v47 = vmov 0.036   ;;  %v3657_v23 = vadd.s32 4294967294, %v3084_v4 }
  0x81   :  { %v591_v20 = vand.u32 2147483647, %v590_v62  ;;  %v997_v36 = vadd.s32 1, %v3591_v61  ;;  %986 = vst [vmem:[%s6750_s1 + $0x1d8] sm:$0xff] %v3823_v47  ;;  %vm824_vm4 = vc.u32 %v4573_v51, %v4437_v43  ;;  %v987_v18 = vand.u32 2147483647, %v4358_v26 }
  0x82   :  { %v754_v22 = vadd.f32 %v753_v3, %v497_v5  ;;  %762 = vst [vmem:[%s6750_s1 + $0x158] sm:$0xff] %v742_v44  ;;  %v3824_v52 = vmov 0.006   ;;  %v707_v4 = vadd.s32 3, %v4429_v32  ;;  %v826_v5 = vsel %vm824_vm4, %v825_v15, %v4438_v19 }
  0x83   :  { %1206 = vst [vmem:[%s6750_s1 + $0x1f8] sm:$0xff] %v3824_v52  ;;  %3460 = vst [vmem:[%s6750_s1 + $0x678] sm:$0xff] %v3824_v52  ;;  %v594_v53 = vmul.f32 %v593_v34, %v591_v20  ;;  %vm998_vm5 = vcmp.gt.s32.totalorder %v997_v36, 0  ;;  %v827_v37 = vadd.s32 %v826_v5, %v822_v9  ;;  %vm3658_vm6 = vcmp.lt.s32.totalorder %v3657_v23, 0 }
  0x84   :  { %766 = vst [vmem:[%s6750_s1 + $0x178] sm:$0xff] %v754_v22  ;;  %v999_v8 = vsel %vm998_vm5, %v997_v36, 0  ;;  %v4606_v10 = vand.u32 3, %v4429_v32  ;;  %v994_v12 = vand.u32 8388607, %v987_v18  ;;  %v4612_v28 = vand.u32 3, %v707_v4 }
  0x85   :  { %v595_v56 = vxor.u32 2147483648, %v594_v53  ;;  %v1001_v29 = vand.u32 31, %v999_v8  ;;  %v828_v17 = vadd.s32 536870912, %v827_v37  ;;  %v4614_v49 = vshrl.u32 %v999_v8, 5 }
  0x86   :  { %v4630_v34 = vsel %vm3658_vm6, 0, %v3657_v23  ;;  %vm609_vm8 = vcmp.eq.s32.totalorder %v4606_v10, 2  ;;  %v995_v45 = vor.u32 8388608, %v994_v12  ;;  %vm605_vm9 = vcmp.lt.s32.totalorder %v4606_v10, 2 }
  0x87   :  { %v596_v0 = vsel %vm513_vm7, %v595_v56, %v594_v53  ;;  %v1002_v19 = vsub.s32 32, %v1001_v29  ;;  %v4619_v24 = vshrl.u32 %v828_v17, 30  ;;  %v1004_v32 = vshll.u32 %v3815_v31, %v1001_v29 }
  0x88   :  { %v599_v13 = vsel %vm4363_vm14, %v4101_v41, %v596_v0  ;;  %v1007_v25 = vshll.u32 %v3816_v33, %v1001_v29  ;;  %v1013_v6 = vshll.u32 %v3819_v38, %v1001_v29  ;;  %v1010_v15 = vshll.u32 %v3817_v35, %v1001_v29 }
  0x89   :  { %3757 = vcosq.f32 %v599_v13  ;;  %v1005_v55 = vshrl.u32 %v3816_v33, %v1002_v19  ;;  %v1008_v30 = vshrl.u32 %v3817_v35, %v1002_v19  ;;  %v830_v2 = vshll.u32 %v4619_v24, 30 }
  0x8a   :  { %3759 = vsinq.f32 %v599_v13  ;;  %v1011_v54 = vshrl.u32 %v3819_v38, %v1002_v19  ;;  %v1014_v59 = vshrl.u32 %v3820_v40, %v1002_v19  ;;  %v1016_v27 = vshll.u32 %v3820_v40, %v1001_v29 }
  0x8b   :  { %vm606_vm7 = vcmp.eq.s32.totalorder %v4606_v10, 0  ;;  %v4636_v62 = vsub.s32 %v827_v37, %v830_v2  ;;  %v1017_v3 = vshrl.u32 %v3821_v48, %v1002_v19  ;;  %vm709_vm10 = vcmp.lt.s32.totalorder %v4612_v28, 2 }
  0x8c   :  { %v1006_v61 = vor.u32 %v1005_v55, %v1004_v32  ;;  %v1009_v44 = vor.u32 %v1008_v30, %v1007_v25  ;;  %v1015_v9 = vor.u32 %v1014_v59, %v1013_v6  ;;  %v1012_v22 = vor.u32 %v1011_v54, %v1010_v15 }
  0x8d   :  { %v833_v20 = vsub.s32 0, %v4636_v62  ;;  %v1018_v36 = vor.u32 %v1017_v3, %v1016_v27  ;;  %vm1019_vm12 = vcmp.lt.s32.totalorder %v4614_v49, 1  ;;  %v1003_v11 = vshrl.u32 %v3815_v31, %v1002_v19 }
  0x8e   :  { %vm1021_vm13 = vcmp.lt.s32.totalorder %v4614_v49, 3  ;;  %vm1022_vm14 = vcmp.lt.s32.totalorder %v4614_v49, 4  ;;  %v4648_v47 = vmul.f32 1.045, %v4358_v26  ;;  %vm710_vm15 = vcmp.eq.s32.totalorder %v4612_v28, 0 }
  0x8f   :  { %vm713_vm0 = vcmp.eq.s32.totalorder %v4612_v28, 2  ;;  %v3584_v23 = vmin.u32 %v833_v20, %v4636_v62  ;;  %v4653_v52 = vshll.u32 %v995_v45, 8  ;;  %vm1020_vm1 = vcmp.lt.s32.totalorder %v4614_v49, 2 }
  0x90   :  { %v1024_v53 = vsel %vm1022_vm14, %v1012_v22, 2102212464  ;;  %v1027_v4 = vsel %vm1019_vm12, %v1006_v61, %v1009_v44  ;;  %v1028_v5 = vsel %vm1022_vm14, %v1015_v9, 920167782  ;;  %v823_v37 = vadd.s32 %v4437_v43, %v4573_v51 }
  0x91   :  { %v835_v8 = vclz %v3584_v23  ;;  %v1029_v56 = vsel %vm1021_vm13, %v1012_v22, %v1028_v5  ;;  %v1032_v29 = vsel %vm1022_vm14, %v1018_v36, 1326507024  ;;  %v1023_v12 = vsel %vm1019_vm12, %v1003_v11, %v1006_v61 }
  0x92   :  { %v1025_v0 = vsel %vm1021_vm13, %v1009_v44, %v1024_v53  ;;  %v1031_v19 = vsel %vm1019_vm12, %v1009_v44, %v1012_v22  ;;  %v1219_v13 = vand.u32 2139095040, %v4648_v47  ;;  %v1030_v51 = vsel %vm1020_vm1, %v1027_v4, %v1029_v56 }
  0x93   :  { %v3758_v17 = vpop.eup %3757  ;;  %v3585_v43 = vadd.s32 4294967294, %v835_v8  ;;  %v1033_v55 = vsel %vm1021_vm13, %v1015_v9, %v1032_v29  ;;  %v853_v6 = vsub.s32 4, %v4619_v24  ;;  %v4685_v27 = vsel %vm1020_vm1, %v1023_v12, %v1025_v0 }
  0x94   :  { %v3760_v32 = vpop.eup %3759  ;;  %v610_v25 = vxor.u32 2147483648, %v3758_v17  ;;  %v4675_v2 = vmul.u32.u64.low %v4653_v52, %v1030_v51  ;;  %v4676_v15 = vmul.u32.u64.high %v4653_v52, %v1030_v51, %v4675_v2  ;;  %v1034_v44 = vsel %vm1020_vm1, %v1031_v19, %v1033_v55 }
  0x95   :  { %v607_v30 = vxor.u32 2147483648, %v3760_v32  ;;  %vm3586_vm2 = vcmp.lt.s32.totalorder %v3585_v43, 0  ;;  %v1220_v36 = vshrl.u32 %v1219_v13, 23  ;;  %vm4754_vm4 = vcmp.le.f32.partialorder %v767_v57, 0.7853982 }
  0x96   :  { %v611_v54 = vsel %vm609_vm8, %v610_v25, %v3760_v32  ;;  %v715_v59 = vsel %vm713_vm0, %v610_v25, %v3760_v32  ;;  %v838_v61 = vsel %vm3586_vm2, 0, %v3585_v43 }
  0x97   :  { %v608_v45 = vsel %vm606_vm7, %v3758_v17, %v607_v30  ;;  %v712_v3 = vsel %vm710_vm15, %v3758_v17, %v607_v30  ;;  %v839_v22 = vsub.s32 32, %v838_v61  ;;  %v840_v53 = vshll.u32 %v4636_v62, %v838_v61 }
  0x98   :  { %v612_v9 = vsel %vm605_vm9, %v608_v45, %v611_v54  ;;  %v716_v20 = vsel %vm709_vm10, %v712_v3, %v715_v59  ;;  %v843_v4 = vsub.s32 4294967266, %v838_v61  ;;  %v1045_v30 = vadd.s32 1, %v4676_v15 }
  0x99   :  { %v613_v11 = vsel %vm603_vm11, nan, %v612_v9  ;;  %v717_v23 = vsel %vm603_vm11, nan, %v716_v20  ;;  %v841_v32 = vshrl.u32 %v823_v37, %v839_v22  ;;  %v3599_v54 = vadd.s32 4294967169, %v1220_v36  ;;  %v3805_v20 = vld [vmem:[%s6749_s0 + $0x10] sm:$0xff] }
  0x9a   :  { %v719_v49 = vmul.f32 %v613_v11, %v4521_v14  ;;  %v720_v5 = vmul.f32 %v717_v23, %v4452_v21  ;;  %v718_v10 = vsub.f32 0.0, %v717_v23  ;;  %v723_v8 = vmul.f32 %v613_v11, %v4452_v21 }
  0x9b   :  { %v731_v28 = vmul.f32 %v613_v11, %v4523_v16  ;;  %v732_v56 = vmul.f32 %v717_v23, %v4467_v60  ;;  %v735_v29 = vmul.f32 %v613_v11, %v4467_v60  ;;  %v743_v17 = vmul.f32 %v613_v11, %v4497_v46 }
  0x9c   :  { %v721_v41 = vadd.f32 %v720_v5, %v719_v49  ;;  %v722_v12 = vmul.f32 %v718_v10, %v4521_v14  ;;  %v734_v62 = vmul.f32 %v718_v10, %v4523_v16  ;;  %v744_v0 = vmul.f32 %v717_v23, %v4445_v50 }
  0x9d   :  { %v733_v19 = vadd.f32 %v732_v56, %v731_v28  ;;  %v746_v13 = vmul.f32 %v718_v10, %v4497_v46  ;;  %v747_v21 = vmul.f32 %v613_v11, %v4445_v50  ;;  %v844_v51 = vadd.s32 127, %v843_v4 }
  0x9e   :  { %755 = vst [vmem:[%s6750_s1 + $0x120] sm:$0xff] %v721_v41  ;;  %v724_v60 = vadd.f32 %v723_v8, %v722_v12  ;;  %v736_v25 = vadd.f32 %v735_v29, %v734_v62  ;;  %v745_v43 = vadd.f32 %v744_v0, %v743_v17  ;;  %v842_v14 = vor.u32 %v841_v32, %v840_v53 }
  0x9f   :  { %759 = vst [vmem:[%s6750_s1 + $0x140] sm:$0xff] %v733_v19  ;;  %v748_v16 = vadd.f32 %v747_v21, %v746_v13  ;;  %v4721_v55 = vmul.u32.u64.low %v4653_v52, %v1034_v44  ;;  %v4722_v46 = vmul.u32.u64.high %v4653_v52, %v1034_v44, %v4721_v55  ;;  %v3072_v50 = vadd.s32 %v4061_v42, %v4068_v63  ;;  %v4739_v42 = vld [vmem:[%s6749_s0 + $0x20] sm:$0xff] }
  0xa0   :  { %756 = vst [vmem:[%s6750_s1 + $0x128] sm:$0xff] %v724_v60  ;;  %760 = vst [vmem:[%s6750_s1 + $0x148] sm:$0xff] %v736_v25  ;;  %v845_v37 = vshll.u32 %v844_v51, 23  ;;  %v3088_v63 = vsub.s32 32, %v4630_v34  ;;  %v3092_v59 = vsub.s32 4294967266, %v4630_v34  ;;  %v1042_v45 = vmul.u32 %v4653_v52, %v4685_v27 }
  0xa1   :  { %763 = vst [vmem:[%s6750_s1 + $0x160] sm:$0xff] %v745_v43  ;;  %764 = vst [vmem:[%s6750_s1 + $0x168] sm:$0xff] %v748_v16  ;;  %v849_v61 = vcvt.s32.f32 %v842_v14  ;;  %v854_v44 = vsel %vm769_vm3, %v853_v6, %v4619_v24  ;;  %v1226_v9 = vadd.s32 1, %v3599_v54  ;;  %vm1044_vm5 = vc.u32 %v4722_v46, %v4675_v2 }
  0xa2   :  { %v846_v3 = vor.u32 4788187, %v845_v37  ;;  %v1216_v22 = vand.u32 2147483647, %v4648_v47  ;;  %v1517_v52 = vand.u32 2139095040, %v4739_v42  ;;  %v1046_v36 = vsel %vm1044_vm5, %v1045_v30, %v4676_v15 }
  0xa3   :  { %vm1227_vm6 = vcmp.gt.s32.totalorder %v1226_v9, 0  ;;  %v3089_v24 = vshll.u32 %v4171_v58, %v4630_v34  ;;  %v856_v57 = vsel %vm4754_vm4, 0, %v854_v44  ;;  %v1047_v6 = vadd.s32 %v1046_v36, %v1042_v45 }
  0xa4   :  { %v847_v27 = vand.u32 2147483647, %v846_v3  ;;  %v1228_v11 = vsel %vm1227_vm6, %v1226_v9, 0  ;;  %v3825_v23 = vmov 0.003   ;;  %v4770_v53 = vshrl.u32 %v3072_v50, %v3088_v63 }
  0xa5   :  { %1729 = vst [vmem:[%s6750_s1 + $0x338] sm:$0xff] %v3825_v23  ;;  %v4772_v4 = vadd.s32 127, %v3092_v59  ;;  %v1230_v15 = vand.u32 31, %v1228_v11  ;;  %v4774_v5 = vand.u32 3, %v856_v57  ;;  %v1048_v10 = vadd.s32 536870912, %v1047_v6 }
  0xa6   :  { %v850_v49 = vmul.f32 %v849_v61, %v847_v27  ;;  %v1223_v8 = vand.u32 8388607, %v1216_v22  ;;  %v1514_v28 = vand.u32 2147483647, %v4739_v42  ;;  %v963_v29 = vadd.s32 3, %v856_v57 }
  0xa7   :  { %v1231_v17 = vsub.s32 32, %v1230_v15  ;;  %v1518_v41 = vshrl.u32 %v1517_v52, 23  ;;  %v1049_v12 = vshrl.u32 %v1048_v10, 30  ;;  %v4779_v62 = vshrl.u32 %v1228_v11, 5 }
  0xa8   :  { %v851_v56 = vxor.u32 2147483648, %v850_v49  ;;  %v1233_v0 = vshll.u32 %v3815_v31, %v1230_v15  ;;  %v1236_v19 = vshll.u32 %v3816_v33, %v1230_v15  ;;  %v1242_v60 = vshll.u32 %v3819_v38, %v1230_v15 }
  0xa9   :  { %v1234_v21 = vshrl.u32 %v3816_v33, %v1231_v17  ;;  %v1237_v32 = vshrl.u32 %v3817_v35, %v1231_v17  ;;  %v1050_v43 = vshll.u32 %v1049_v12, 30  ;;  %v1239_v51 = vshll.u32 %v3817_v35, %v1230_v15 }
  0xaa   :  { %v852_v13 = vsel %vm769_vm3, %v851_v56, %v850_v49  ;;  %v1240_v16 = vshrl.u32 %v3819_v38, %v1231_v17  ;;  %v4793_v14 = vand.u32 3, %v963_v29  ;;  %vm989_vm7 = vcmp.lt.s32.totalorder %v4358_v26, 0 }
  0xab   :  { %v855_v25 = vsel %vm4754_vm4, %v4151_v39, %v852_v13  ;;  %v1224_v55 = vor.u32 8388608, %v1223_v8  ;;  %v1243_v50 = vshrl.u32 %v3820_v40, %v1231_v17  ;;  %v4797_v37 = vsub.s32 %v1047_v6, %v1050_v43 }
  0xac   :  { %3761 = vcosq.f32 %v855_v25  ;;  %v1245_v30 = vshll.u32 %v3820_v40, %v1230_v15  ;;  %v3607_v54 = vadd.s32 4294967169, %v1518_v41  ;;  %vm865_vm8 = vcmp.eq.s32.totalorder %v4774_v5, 2 }
  0xad   :  { %3763 = vsinq.f32 %v855_v25  ;;  %v1235_v39 = vor.u32 %v1234_v21, %v1233_v0  ;;  %v1238_v63 = vor.u32 %v1237_v32, %v1236_v19  ;;  %v1244_v59 = vor.u32 %v1243_v50, %v1242_v60 }
  0xae   :  { %v1246_v45 = vshrl.u32 %v3821_v48, %v1231_v17  ;;  %vm862_vm9 = vcmp.eq.s32.totalorder %v4774_v5, 0  ;;  %v1053_v3 = vsub.s32 0, %v4797_v37  ;;  %v1232_v61 = vshrl.u32 %v3815_v31, %v1231_v17 }
  0xaf   :  { %v1241_v44 = vor.u32 %v1240_v16, %v1239_v51  ;;  %vm1248_vm10 = vcmp.lt.s32.totalorder %v4779_v62, 1  ;;  %vm861_vm11 = vcmp.lt.s32.totalorder %v4774_v5, 2  ;;  %vm965_vm12 = vcmp.lt.s32.totalorder %v4793_v14, 2 }
  0xb0   :  { %vm966_vm13 = vcmp.eq.s32.totalorder %v4793_v14, 0  ;;  %vm1250_vm14 = vcmp.lt.s32.totalorder %v4779_v62, 3  ;;  %vm1251_vm15 = vcmp.lt.s32.totalorder %v4779_v62, 4  ;;  %v4811_v9 = vshll.u32 %v1224_v55, 8 }
  0xb1   :  { %vm859_vm0 = vweird.f32 %v3805_v20  ;;  %v3592_v52 = vmin.u32 %v1053_v3, %v4797_v37  ;;  %v1073_v27 = vsub.s32 4, %v1049_v12  ;;  %v1247_v36 = vor.u32 %v1246_v45, %v1245_v30 }
  0xb2   :  { %v1524_v57 = vadd.s32 1, %v3607_v54  ;;  %vm1249_vm1 = vcmp.lt.s32.totalorder %v4779_v62, 2  ;;  %v1253_v6 = vsel %vm1251_vm15, %v1241_v44, 2102212464  ;;  %v1256_v11 = vsel %vm1248_vm10, %v1235_v39, %v1238_v63 }
  0xb3   :  { %v1257_v23 = vsel %vm1251_vm15, %v1244_v59, 920167782  ;;  %v1055_v49 = vclz %v3592_v52  ;;  %v1252_v15 = vsel %vm1248_vm10, %v1232_v61, %v1235_v39  ;;  %v1254_v10 = vsel %vm1250_vm14, %v1238_v63, %v1253_v6 }
  0xb4   :  { %v1258_v8 = vsel %vm1250_vm14, %v1241_v44, %v1257_v23  ;;  %vm969_vm2 = vcmp.eq.s32.totalorder %v4793_v14, 2  ;;  %v1043_v56 = vadd.s32 %v4675_v2, %v4722_v46  ;;  %v1260_v29 = vsel %vm1248_vm10, %v1238_v63, %v1241_v44 }
  0xb5   :  { %v4837_v17 = vand.u32 8388607, %v1514_v28  ;;  %v3593_v41 = vadd.s32 4294967294, %v1055_v49  ;;  %v1074_v0 = vsel %vm989_vm7, %v1073_v27, %v1049_v12  ;;  %v1259_v19 = vsel %vm1249_vm1, %v1256_v11, %v1258_v8 }
  0xb6   :  { %v1261_v13 = vsel %vm1251_vm15, %v1247_v36, 1326507024  ;;  %v3762_v21 = vpop.eup %3761  ;;  %v1255_v2 = vsel %vm1249_vm1, %v1252_v15, %v1254_v10  ;;  %v4850_v32 = vmul.u32.u64.low %v4811_v9, %v1259_v19  ;;  %v4851_v60 = vmul.u32.u64.high %v4811_v9, %v1259_v19, %v4850_v32 }
  0xb7   :  { %v1262_v46 = vsel %vm1250_vm14, %v1244_v59, %v1261_v13  ;;  %v3764_v25 = vpop.eup %3763  ;;  %v866_v12 = vxor.u32 2147483648, %v3762_v21  ;;  %vm3594_vm3 = vcmp.lt.s32.totalorder %v3593_v41, 0  ;;  %vm1525_vm4 = vcmp.gt.s32.totalorder %v1524_v57, 0 }
  0xb8   :  { %v1263_v43 = vsel %vm1249_vm1, %v1260_v29, %v1262_v46  ;;  %v863_v51 = vxor.u32 2147483648, %v3764_v25  ;;  %v1058_v16 = vsel %vm3594_vm3, 0, %v3593_v41  ;;  %v1274_v3 = vadd.s32 1, %v4851_v60 }
  0xb9   :  { %v4857_v55 = vmul.u32.u64.low %v4811_v9, %v1263_v43  ;;  %v4858_v50 = vmul.u32.u64.high %v4811_v9, %v1263_v43, %v4857_v55  ;;  %v867_v30 = vsel %vm865_vm8, %v866_v12, %v3764_v25  ;;  %v971_v54 = vsel %vm969_vm2, %v866_v12, %v3764_v25 }
  0xba   :  { %v1059_v39 = vsub.s32 32, %v1058_v16  ;;  %v1060_v63 = vshll.u32 %v4797_v37, %v1058_v16  ;;  %v864_v62 = vsel %vm862_vm9, %v3762_v21, %v863_v51  ;;  %v968_v59 = vsel %vm966_vm13, %v3762_v21, %v863_v51 }
  0xbb   :  { %v1063_v45 = vsub.s32 4294967266, %v1058_v16  ;;  %v868_v61 = vsel %vm861_vm11, %v864_v62, %v867_v30  ;;  %v972_v44 = vsel %vm965_vm12, %v968_v59, %v971_v54  ;;  %v1271_v27 = vmul.u32 %v4811_v9, %v1255_v2 }
  0xbc   :  { %v1061_v52 = vshrl.u32 %v1043_v56, %v1059_v39  ;;  %v4876_v37 = vsel %vm859_vm0, nan, %v868_v61  ;;  %v4879_v36 = vsel %vm859_vm0, nan, %v972_v44  ;;  %v1526_v11 = vsel %vm1525_vm4, %v1524_v57, 0 }
  0xbd   :  { %v1064_v6 = vadd.s32 127, %v1063_v45  ;;  %980 = vst [vmem:[%s6750_s1 + $0x1a8] sm:$0xff] %v4876_v37  ;;  %985 = vst [vmem:[%s6750_s1 + $0x1d0] sm:$0xff] %v4876_v37  ;;  %v4895_v5 = vsub.f32 0.0, %v4879_v36  ;;  %v1201_v9 = vmul.f32 0.0375, %v4876_v37  ;;  %vm1273_vm5 = vc.u32 %v4858_v50, %v4850_v32 }
  0xbe   :  { %1208 = vst [vmem:[%s6750_s1 + $0x208] sm:$0xff] %v4876_v37  ;;  %v1062_v14 = vor.u32 %v1061_v52, %v1060_v63  ;;  %984 = vst [vmem:[%s6750_s1 + $0x1c8] sm:$0xff] %v4879_v36  ;;  %v4912_v20 = vor.u32 %v4770_v53, %v3089_v24  ;;  %v1275_v23 = vsel %vm1273_vm5, %v1274_v3, %v4851_v60  ;;  %vm4921_vm6 = vcmp.le.f32.partialorder %v987_v18, 0.7853982 }
  0xbf   :  { %1212 = vst [vmem:[%s6750_s1 + $0x228] sm:$0xff] %v4879_v36  ;;  %v1065_v57 = vshll.u32 %v1064_v6, 23  ;;  %981 = vst [vmem:[%s6750_s1 + $0x1b0] sm:$0xff] %v4895_v5  ;;  %v1197_v15 = vmul.f32 0.0375, %v4895_v5  ;;  %v1276_v34 = vadd.s32 %v1275_v23, %v1271_v27  ;;  %v1076_v10 = vsel %vm4921_vm6, 0, %v1074_v0 }
  0xc0   :  { %v4926_v58 = vadd.f32 0.036, %v1201_v9  ;;  %v1069_v53 = vcvt.s32.f32 %v1062_v14  ;;  %v1528_v8 = vand.u32 31, %v1526_v11  ;;  %v3094_v56 = vshll.u32 %v4772_v4, 23  ;;  %v4976_v14 = vld [vmem:[%s6749_s0 + $0x28] sm:$0xff] }
  0xc1   :  { %v1066_v24 = vor.u32 4788187, %v1065_v57  ;;  %v4931_v29 = vadd.f32 -0.001, %v1197_v15  ;;  %v1277_v18 = vadd.s32 536870912, %v1276_v34  ;;  %v1522_v41 = vor.u32 8388608, %v4837_v17 }
  0xc2   :  { %1214 = vst [vmem:[%s6750_s1 + $0x238] sm:$0xff] %v4926_v58  ;;  %v1529_v13 = vsub.s32 32, %v1528_v8  ;;  %v1531_v21 = vshll.u32 %v3815_v31, %v1528_v8  ;;  %v1534_v2 = vshll.u32 %v3816_v33, %v1528_v8  ;;  %v1183_v0 = vadd.s32 3, %v1076_v10 }
  0xc3   :  { %v1067_v19 = vand.u32 2147483647, %v1066_v24  ;;  %1210 = vst [vmem:[%s6750_s1 + $0x218] sm:$0xff] %v4931_v29  ;;  %v4944_v46 = vshrl.u32 %v1277_v18, 30  ;;  %v4946_v60 = vshrl.u32 %v1526_v11, 5  ;;  %v1540_v25 = vshll.u32 %v3819_v38, %v1528_v8 }
  0xc4   :  { %v1532_v17 = vshrl.u32 %v3816_v33, %v1529_v13  ;;  %v1535_v43 = vshrl.u32 %v3817_v35, %v1529_v13  ;;  %v1537_v51 = vshll.u32 %v3817_v35, %v1528_v8  ;;  %v1538_v55 = vshrl.u32 %v3819_v38, %v1529_v13 }
  0xc5   :  { %v1070_v12 = vmul.f32 %v1069_v53, %v1067_v19  ;;  %v1279_v16 = vshll.u32 %v4944_v46, 30  ;;  %v1541_v30 = vshrl.u32 %v3820_v40, %v1529_v13  ;;  %v1543_v54 = vshll.u32 %v3820_v40, %v1528_v8 }
  0xc6   :  { %v1533_v63 = vor.u32 %v1532_v17, %v1531_v21  ;;  %v1536_v62 = vor.u32 %v1535_v43, %v1534_v2  ;;  %v1544_v59 = vshrl.u32 %v3821_v48, %v1529_v13  ;;  %vm1546_vm8 = vcmp.lt.s32.totalorder %v4946_v60, 1 }
  0xc7   :  { %v1071_v39 = vxor.u32 2147483648, %v1070_v12  ;;  %v4957_v45 = vsub.s32 %v1276_v34, %v1279_v16  ;;  %v1542_v3 = vor.u32 %v1541_v30, %v1540_v25  ;;  %vm1549_vm9 = vcmp.lt.s32.totalorder %v4946_v60, 4 }
  0xc8   :  { %v4963_v44 = vand.u32 3, %v1076_v10  ;;  %v4965_v52 = vand.u32 3, %v1183_v0  ;;  %v1539_v27 = vor.u32 %v1538_v55, %v1537_v51  ;;  %vm1547_vm10 = vcmp.lt.s32.totalorder %v4946_v60, 2 }
  0xc9   :  { %v1072_v61 = vsel %vm989_vm7, %v1071_v39, %v1070_v12  ;;  %v1282_v11 = vsub.s32 0, %v4957_v45  ;;  %vm1548_vm11 = vcmp.lt.s32.totalorder %v4946_v60, 3  ;;  %v1545_v9 = vor.u32 %v1544_v59, %v1543_v54 }
  0xca   :  { %v1075_v6 = vsel %vm4921_vm6, %v4358_v26, %v1072_v61  ;;  %v1554_v57 = vsel %vm1546_vm8, %v1533_v63, %v1536_v62  ;;  %v1555_v23 = vsel %vm1549_vm9, %v1542_v3, 920167782  ;;  %vm1218_vm7 = vcmp.lt.s32.totalorder %v4648_v47, 0 }
  0xcb   :  { %3765 = vcosq.f32 %v1075_v6  ;;  %v3600_v49 = vmin.u32 %v1282_v11, %v4957_v45  ;;  %v4984_v15 = vshll.u32 %v1522_v41, 8  ;;  %vm4988_vm12 = vcmp.le.f32.partialorder %v1216_v22, 0.7853982 }
  0xcc   :  { %3767 = vsinq.f32 %v1075_v6  ;;  %v1556_v24 = vsel %vm1548_vm11, %v1539_v27, %v1555_v23  ;;  %v1734_v53 = vand.u32 2147483647, %v4976_v14  ;;  %v1737_v10 = vand.u32 2139095040, %v4976_v14 }
  0xcd   :  { %vm1082_vm13 = vcmp.eq.s32.totalorder %v4963_v44, 0  ;;  %vm1085_vm14 = vcmp.eq.s32.totalorder %v4963_v44, 2  ;;  %v1284_v8 = vclz %v3600_v49  ;;  %v1557_v18 = vsel %vm1547_vm10, %v1554_v57, %v1556_v24 }
  0xce   :  { %v1558_v22 = vsel %vm1546_vm8, %v1536_v62, %v1539_v27  ;;  %vm1081_vm15 = vcmp.lt.s32.totalorder %v4963_v44, 2  ;;  %vm1185_vm0 = vcmp.lt.s32.totalorder %v4965_v52, 2  ;;  %vm1186_vm1 = vcmp.eq.s32.totalorder %v4965_v52, 0 }
  0xcf   :  { %v1302_v41 = vsub.s32 4, %v4944_v46  ;;  %v1530_v19 = vshrl.u32 %v3815_v31, %v1529_v13  ;;  %v1559_v21 = vsel %vm1549_vm9, %v1545_v9, 1326507024  ;;  %vm1079_vm2 = vweird.f32 %v4358_v26 }
  0xd0   :  { %v3601_v2 = vadd.s32 4294967294, %v1284_v8  ;;  %v1560_v0 = vsel %vm1548_vm11, %v1542_v3, %v1559_v21  ;;  %v5013_v25 = vmul.u32.u64.low %v4984_v15, %v1557_v18  ;;  %v5014_v12 = vmul.u32.u64.high %v4984_v15, %v1557_v18, %v5013_v25 }
  0xd1   :  { %v1272_v17 = vadd.s32 %v4850_v32, %v4858_v50  ;;  %v1551_v13 = vsel %vm1549_vm9, %v1539_v27, 2102212464  ;;  %v1561_v43 = vsel %vm1547_vm10, %v1558_v22, %v1560_v0  ;;  %v1738_v51 = vshrl.u32 %v1737_v10, 23 }
  0xd2   :  { %vm3602_vm3 = vcmp.lt.s32.totalorder %v3601_v2, 0  ;;  %v5024_v16 = vmul.f32 0.001, %v4876_v37  ;;  %v5027_v55 = vmul.u32.u64.low %v4984_v15, %v1561_v43  ;;  %v5028_v30 = vmul.u32.u64.high %v4984_v15, %v1561_v43, %v5027_v55 }
  0xd3   :  { %v1287_v54 = vsel %vm3602_vm3, 0, %v3601_v2  ;;  %v1303_v32 = vsel %vm1218_vm7, %v1302_v41, %v4944_v46  ;;  %v1550_v50 = vsel %vm1546_vm8, %v1530_v19, %v1533_v63  ;;  %v1552_v61 = vsel %vm1548_vm11, %v1536_v62, %v1551_v13 }
  0xd4   :  { %v1288_v39 = vsub.s32 32, %v1287_v54  ;;  %v1289_v59 = vshll.u32 %v4957_v45, %v1287_v54  ;;  %v1292_v3 = vsub.s32 4294967266, %v1287_v54  ;;  %v3826_v27 = vmov 0.042  }
  0xd5   :  { %1733 = vst [vmem:[%s6750_s1 + $0x358] sm:$0xff] %v3826_v27  ;;  %v3766_v6 = vpop.eup %3765  ;;  %vm1189_vm4 = vcmp.eq.s32.totalorder %v4965_v52, 2  ;;  %v5043_v46 = vmul.f32 0.001, %v4879_v36  ;;  %v3615_v11 = vadd.s32 4294967169, %v1738_v51  ;;  %v1305_v23 = vsel %vm4988_vm12, 0, %v1303_v32 }
  0xd6   :  { %v3768_v63 = vpop.eup %3767  ;;  %v1086_v9 = vxor.u32 2147483648, %v3766_v6  ;;  %v1290_v57 = vshrl.u32 %v1272_v17, %v1288_v39  ;;  %v1293_v45 = vadd.s32 127, %v1292_v3  ;;  %v3827_v62 = vmov 0.007  }
  0xd7   :  { %1961 = vst [vmem:[%s6750_s1 + $0x398] sm:$0xff] %v3827_v62  ;;  %2480 = vst [vmem:[%s6750_s1 + $0x4b8] sm:$0xff] %v3827_v62  ;;  %v1083_v49 = vxor.u32 2147483648, %v3768_v63  ;;  %v1553_v24 = vsel %vm1547_vm10, %v1550_v50, %v1552_v61  ;;  %vm1571_vm5 = vc.u32 %v5028_v30, %v5013_v25  ;;  %v1572_v10 = vadd.s32 1, %v5014_v12 }
  0xd8   :  { %v1087_v8 = vsel %vm1085_vm14, %v1086_v9, %v3768_v63  ;;  %v1191_v18 = vsel %vm1189_vm4, %v1086_v9, %v3768_v63  ;;  %v1291_v22 = vor.u32 %v1290_v57, %v1289_v59  ;;  %v1294_v41 = vshll.u32 %v1293_v45, 23 }
  0xd9   :  { %v1084_v19 = vsel %vm1082_vm13, %v3766_v6, %v1083_v49  ;;  %v1188_v60 = vsel %vm1186_vm1, %v3766_v6, %v1083_v49  ;;  %v1741_v21 = vand.u32 8388607, %v1734_v53  ;;  %v1744_v2 = vadd.s32 1, %v3615_v11 }
  0xda   :  { %v1088_v0 = vsel %vm1081_vm15, %v1084_v19, %v1087_v8  ;;  %v1192_v17 = vsel %vm1185_vm0, %v1188_v60, %v1191_v18  ;;  %v1295_v13 = vor.u32 4788187, %v1294_v41  ;;  %v1298_v43 = vcvt.s32.f32 %v1291_v22 }
  0xdb   :  { %v5074_v51 = vsel %vm1079_vm2, nan, %v1088_v0  ;;  %v5078_v55 = vsel %vm1079_vm2, nan, %v1192_v17  ;;  %v1569_v54 = vmul.u32 %v4984_v15, %v1553_v24  ;;  %v1573_v44 = vsel %vm1571_vm5, %v1572_v10, %v5014_v12 }
  0xdc   :  { %v5087_v52 = vmul.f32 %v5074_v51, %v4895_v5  ;;  %1203 = vst [vmem:[%s6750_s1 + $0x1e0] sm:$0xff] %v5074_v51  ;;  %1205 = vst [vmem:[%s6750_s1 + $0x1f0] sm:$0xff] %v5078_v55  ;;  %v5102_v26 = vsub.f32 0.0, %v5078_v55  ;;  %v5106_v15 = vmul.f32 %v5074_v51, %v4876_v37  ;;  %v1296_v12 = vand.u32 2147483647, %v1295_v13 }
  0xdd   :  { %1456 = vst [vmem:[%s6750_s1 + $0x250] sm:$0xff] %v5078_v55  ;;  %v1412_v32 = vadd.s32 3, %v1305_v23  ;;  %v1426_v50 = vmul.f32 0.006, %v5074_v51  ;;  %v1427_v39 = vmul.f32 0.039, %v5078_v55  ;;  %v1574_v63 = vadd.s32 %v1573_v44, %v1569_v54 }
  0xde   :  { %vm1745_vm6 = vcmp.gt.s32.totalorder %v1744_v2, 0  ;;  %1209 = vst [vmem:[%s6750_s1 + $0x210] sm:$0xff] %v5087_v52  ;;  %1460 = vst [vmem:[%s6750_s1 + $0x270] sm:$0xff] %v5087_v52  ;;  %v5120_v59 = vmul.f32 %v5102_v26, %v4895_v5  ;;  %v5124_v3 = vmul.f32 %v5102_v26, %v4876_v37  ;;  %v1299_v61 = vmul.f32 %v1298_v43, %v1296_v12 }
  0xdf   :  { %1213 = vst [vmem:[%s6750_s1 + $0x230] sm:$0xff] %v5106_v15  ;;  %1464 = vst [vmem:[%s6750_s1 + $0x290] sm:$0xff] %v5106_v15  ;;  %v1742_v27 = vor.u32 8388608, %v1741_v21  ;;  %v1428_v6 = vadd.f32 %v1427_v39, %v1426_v50  ;;  %v1439_v5 = vmul.f32 0.039, %v5087_v52  ;;  %v1746_v62 = vsel %vm1745_vm6, %v1744_v2, 0 }
  0xe0   :  { %v1451_v11 = vmul.f32 0.039, %v5106_v15  ;;  %1207 = vst [vmem:[%s6750_s1 + $0x200] sm:$0xff] %v5120_v59  ;;  %1211 = vst [vmem:[%s6750_s1 + $0x220] sm:$0xff] %v5124_v3  ;;  %v1300_v9 = vxor.u32 2147483648, %v1299_v61  ;;  %v5151_v24 = vand.u32 3, %v1305_v23  ;;  %v5191_v17 = vmul.f32 %v5078_v55, %v5078_v55 }
  0xe1   :  { %v1436_v57 = vmul.f32 0.006, %v5120_v59  ;;  %v1448_v45 = vmul.f32 0.006, %v5124_v3  ;;  %v5149_v49 = vor.u32 4788187, %v3094_v56  ;;  %v5173_v56 = vadd.s32 %v5013_v25, %v5028_v30 }
  0xe2   :  { %v5153_v10 = vand.u32 3, %v1412_v32  ;;  %v5155_v8 = vadd.f32 0.006, %v1428_v6  ;;  %v1301_v18 = vsel %vm1218_vm7, %v1300_v9, %v1299_v61  ;;  %v5162_v19 = vmul.f32 1.0434, %v4976_v14 }
  0xe3   :  { %v1438_v22 = vadd.f32 %v5024_v16, %v1436_v57  ;;  %v1450_v41 = vadd.f32 %v5043_v46, %v1448_v45  ;;  %v1304_v4 = vsel %vm4988_vm12, %v4648_v47, %v1301_v18  ;;  %v1575_v23 = vadd.s32 536870912, %v1574_v63 }
  0xe4   :  { %1457 = vst [vmem:[%s6750_s1 + $0x258] sm:$0xff] %v5155_v8  ;;  %v1748_v16 = vand.u32 31, %v1746_v62  ;;  %3769 = vcosq.f32 %v1304_v4  ;;  %v5175_v21 = vshll.u32 %v1742_v27, 8  ;;  %v5179_v34 = vshrl.u32 %v1746_v62, 5 }
  0xe5   :  { %v1440_v46 = vadd.f32 %v1439_v5, %v1438_v22  ;;  %v1452_v60 = vadd.f32 %v1451_v11, %v1450_v41  ;;  %3771 = vsinq.f32 %v1304_v4  ;;  %v5177_v2 = vshrl.u32 %v1575_v23, 30 }
  0xe6   :  { %v1749_v0 = vsub.s32 32, %v1748_v16  ;;  %vm1314_vm8 = vcmp.eq.s32.totalorder %v5151_v24, 2  ;;  %vm1418_vm9 = vcmp.eq.s32.totalorder %v5153_v10, 2  ;;  %v1751_v13 = vshll.u32 %v3815_v31, %v1748_v16 }
  0xe7   :  { %v5184_v25 = vadd.f32 %v1440_v46, %v4931_v29  ;;  %v5187_v30 = vadd.f32 %v1452_v60, %v4926_v58  ;;  %vm1311_vm10 = vcmp.eq.s32.totalorder %v5151_v24, 0  ;;  %vm1415_vm11 = vcmp.eq.s32.totalorder %v5153_v10, 0 }
  0xe8   :  { %v1577_v43 = vshll.u32 %v5177_v2, 30  ;;  %v1752_v54 = vshrl.u32 %v3816_v33, %v1749_v0  ;;  %v1754_v29 = vshll.u32 %v3816_v33, %v1748_v16  ;;  %v1757_v44 = vshll.u32 %v3817_v35, %v1748_v16 }
  0xe9   :  { %vm1310_vm7 = vcmp.lt.s32.totalorder %v5151_v24, 2  ;;  %vm1414_vm12 = vcmp.lt.s32.totalorder %v5153_v10, 2  ;;  %1461 = vst [vmem:[%s6750_s1 + $0x278] sm:$0xff] %v5184_v25  ;;  %1465 = vst [vmem:[%s6750_s1 + $0x298] sm:$0xff] %v5187_v30  ;;  %v1755_v58 = vshrl.u32 %v3817_v35, %v1749_v0  ;;  %v1758_v12 = vshrl.u32 %v3819_v38, %v1749_v0 }
  0xea   :  { %v1760_v32 = vshll.u32 %v3819_v38, %v1748_v16  ;;  %v1761_v50 = vshrl.u32 %v3820_v40, %v1749_v0  ;;  %vm1308_vm13 = vweird.f32 %v4648_v47  ;;  %v5217_v39 = vmul.f32 %v5078_v55, %v5074_v51 }
  0xeb   :  { %v5220_v61 = vmul.f32 0.0405, %v5078_v55  ;;  %v5224_v27 = vmul.f32 %v5087_v52, %v5078_v55  ;;  %v5226_v6 = vsub.s32 %v1574_v63, %v1577_v43  ;;  %v5230_v5 = vmul.f32 %v5087_v52, %v5074_v51 }
  0xec   :  { %v5233_v11 = vmul.f32 0.0405, %v5087_v52  ;;  %v1750_v9 = vshrl.u32 %v3815_v31, %v1749_v0  ;;  %v1762_v57 = vor.u32 %v1761_v50, %v1760_v32  ;;  %v5238_v45 = vmul.f32 %v5106_v15, %v5078_v55 }
  0xed   :  { %v1580_v62 = vsub.s32 0, %v5226_v6  ;;  %v1763_v18 = vshll.u32 %v3820_v40, %v1748_v16  ;;  %v1764_v63 = vshrl.u32 %v3821_v48, %v1749_v0  ;;  %v1753_v22 = vor.u32 %v1752_v54, %v1751_v13 }
  0xee   :  { %v1756_v41 = vor.u32 %v1755_v58, %v1754_v29  ;;  %v1759_v4 = vor.u32 %v1758_v12, %v1757_v44  ;;  %vm1769_vm14 = vcmp.lt.s32.totalorder %v5179_v34, 4  ;;  %v5246_v52 = vmul.f32 %v5106_v15, %v5074_v51  ;;  %v3770_v46 = vpop.eup %3769 }
  0xef   :  { %v5249_v23 = vmul.f32 0.0405, %v5106_v15  ;;  %v3608_v55 = vmin.u32 %v1580_v62, %v5226_v6  ;;  %vm1766_vm15 = vcmp.lt.s32.totalorder %v5179_v34, 1  ;;  %vm1768_vm0 = vcmp.lt.s32.totalorder %v5179_v34, 3  ;;  %v3772_v13 = vpop.eup %3771 }
  0xf0   :  { %v1770_v16 = vsel %vm1766_vm15, %v1750_v9, %v1753_v22  ;;  %v1771_v60 = vsel %vm1769_vm14, %v1759_v4, 2102212464  ;;  %v1775_v0 = vsel %vm1769_vm14, %v1762_v57, 920167782  ;;  %v1315_v43 = vxor.u32 2147483648, %v3770_v46 }
  0xf1   :  { %v1582_v15 = vclz %v3608_v55  ;;  %v1765_v54 = vor.u32 %v1764_v63, %v1763_v18  ;;  %v1772_v29 = vsel %vm1768_vm0, %v1756_v41, %v1771_v60  ;;  %v1312_v44 = vxor.u32 2147483648, %v3772_v13 }
  0xf2   :  { %v1600_v58 = vsub.s32 4, %v5177_v2  ;;  %vm1767_vm1 = vcmp.lt.s32.totalorder %v5179_v34, 2  ;;  %v5266_v12 = vsel %vm1766_vm15, %v1753_v22, %v1756_v41  ;;  %v1316_v32 = vsel %vm1314_vm8, %v1315_v43, %v3772_v13 }
  0xf3   :  { %v1420_v50 = vsel %vm1418_vm9, %v1315_v43, %v3772_v13  ;;  %v3609_v9 = vadd.s32 4294967294, %v1582_v15  ;;  %v1776_v62 = vsel %vm1768_vm0, %v1759_v4, %v1775_v0  ;;  %v1313_v18 = vsel %vm1311_vm10, %v3770_v46, %v1312_v44 }
  0xf4   :  { %v1417_v63 = vsel %vm1415_vm11, %v3770_v46, %v1312_v44  ;;  %v5280_v22 = vsel %vm1767_vm1, %v1770_v16, %v1772_v29  ;;  %v5284_v55 = vsel %vm1766_vm15, %v1756_v41, %v1759_v4  ;;  %v1317_v60 = vsel %vm1310_vm7, %v1313_v18, %v1316_v32 }
  0xf5   :  { %v1421_v0 = vsel %vm1414_vm12, %v1417_v63, %v1420_v50  ;;  %vm3610_vm2 = vcmp.lt.s32.totalorder %v3609_v9, 0  ;;  %v1779_v13 = vsel %vm1769_vm14, %v1765_v54, 1326507024  ;;  %v1318_v46 = vsel %vm1308_vm13, nan, %v1317_v60 }
  0xf6   :  { %v1422_v16 = vsel %vm1308_vm13, nan, %v1421_v0  ;;  %v5296_v43 = vsel %vm3610_vm2, 0, %v3609_v9  ;;  %v1780_v41 = vsel %vm1768_vm0, %v1762_v57, %v1779_v13  ;;  %v1424_v24 = vmul.f32 %v1318_v46, %v5074_v51 }
  0xf7   :  { %v1423_v4 = vsub.f32 0.0, %v1422_v16  ;;  %v1430_v10 = vmul.f32 %v1318_v46, %v5120_v59  ;;  %v1431_v15 = vmul.f32 %v1422_v16, %v4876_v37  ;;  %v1434_v54 = vmul.f32 %v1318_v46, %v4876_v37 }
  0xf8   :  { %v1442_v29 = vmul.f32 %v1318_v46, %v5124_v3  ;;  %v1443_v44 = vmul.f32 %v1422_v16, %v4879_v36  ;;  %v1446_v47 = vmul.f32 %v1318_v46, %v4879_v36  ;;  %1454 = vst [vmem:[%s6750_s1 + $0x240] sm:$0xff] %v1424_v24  ;;  %1502 = vst [vmem:[%s6750_s1 + $0x2a0] sm:$0xff] %v1424_v24  ;;  %v1472_v18 = vmul.f32 0.008, %v1424_v24 }
  0xf9   :  { %v1425_v57 = vmul.f32 %v1423_v4, %v5074_v51  ;;  %v1432_v32 = vadd.f32 %v1431_v15, %v1430_v10  ;;  %v1433_v50 = vmul.f32 %v1423_v4, %v5120_v59  ;;  %v1445_v37 = vmul.f32 %v1423_v4, %v5124_v3 }
  0xfa   :  { %v1444_v9 = vadd.f32 %v1443_v44, %v1442_v29  ;;  %v1586_v63 = vsub.s32 32, %v5296_v43  ;;  %v1587_v36 = vshll.u32 %v5226_v6, %v5296_v43  ;;  %vm1516_vm3 = vcmp.lt.s32.totalorder %v4739_v42, 0 }
  0xfb   :  { %1455 = vst [vmem:[%s6750_s1 + $0x248] sm:$0xff] %v1425_v57  ;;  %1458 = vst [vmem:[%s6750_s1 + $0x260] sm:$0xff] %v1432_v32  ;;  %v1435_v59 = vadd.f32 %v1434_v54, %v1433_v50  ;;  %v1447_v3 = vadd.f32 %v1446_v47, %v1445_v37  ;;  %v1466_v60 = vmul.f32 %v1425_v57, %v5074_v51  ;;  %v1473_v6 = vmul.f32 0.002, %v1425_v57 }
  0xfc   :  { %1506 = vst [vmem:[%s6750_s1 + $0x2c0] sm:$0xff] %v1432_v32  ;;  %v1469_v0 = vmul.f32 %v1425_v57, %v5102_v26  ;;  %1462 = vst [vmem:[%s6750_s1 + $0x280] sm:$0xff] %v1444_v9  ;;  %v1484_v13 = vmul.f32 0.008, %v1432_v32  ;;  %v1496_v46 = vmul.f32 0.008, %v1444_v9  ;;  %v1588_v16 = vshrl.u32 %v5173_v56, %v1586_v63 }
  0xfd   :  { %1510 = vst [vmem:[%s6750_s1 + $0x2e0] sm:$0xff] %v1444_v9  ;;  %1459 = vst [vmem:[%s6750_s1 + $0x268] sm:$0xff] %v1435_v59  ;;  %v1468_v24 = vadd.f32 %v5191_v17, %v1466_v60  ;;  %v1478_v10 = vmul.f32 %v1435_v59, %v5074_v51  ;;  %v1481_v15 = vmul.f32 %v1435_v59, %v5102_v26  ;;  %v1485_v29 = vmul.f32 0.002, %v1435_v59 }
  0xfe   :  { %1463 = vst [vmem:[%s6750_s1 + $0x288] sm:$0xff] %v1447_v3  ;;  %v1471_v4 = vadd.f32 %v5217_v39, %v1469_v0  ;;  %v1474_v54 = vadd.f32 %v1473_v6, %v1472_v18  ;;  %v1490_v56 = vmul.f32 %v1447_v3, %v5074_v51  ;;  %v1493_v44 = vmul.f32 %v1447_v3, %v5102_v26 }
  0xff   :  { %1503 = vst [vmem:[%s6750_s1 + $0x2a8] sm:$0xff] %v1468_v24  ;;  %v1480_v17 = vadd.f32 %v5224_v27, %v1478_v10  ;;  %v1483_v39 = vadd.f32 %v5230_v5, %v1481_v15  ;;  %v1497_v47 = vmul.f32 0.002, %v1447_v3  ;;  %v1777_v57 = vsel %vm1767_vm1, %v5266_v12, %v1776_v62  ;;  %v5434_v10 = vld [vmem:[%s6749_s0 + $0x40] sm:$0xff] }
 0x100   :  { %1504 = vst [vmem:[%s6750_s1 + $0x2b0] sm:$0xff] %v1471_v4  ;;  %v1476_v51 = vadd.f32 %v5220_v61, %v1474_v54  ;;  %v1486_v26 = vadd.f32 %v1485_v29, %v1484_v13  ;;  %v1492_v32 = vadd.f32 %v5238_v45, %v1490_v56  ;;  %v1495_v50 = vadd.f32 %v5246_v52, %v1493_v44 }
 0x101   :  { %1507 = vst [vmem:[%s6750_s1 + $0x2c8] sm:$0xff] %v1480_v17  ;;  %1508 = vst [vmem:[%s6750_s1 + $0x2d0] sm:$0xff] %v1483_v39  ;;  %v1498_v27 = vadd.f32 %v1497_v47, %v1496_v46  ;;  %v1589_v5 = vor.u32 %v1588_v16, %v1587_v36  ;;  %v1590_v37 = vsub.s32 4294967266, %v5296_v43  ;;  %v1781_v61 = vsel %vm1767_vm1, %v5284_v55, %v1780_v41 }
 0x102   :  { %v1477_v45 = vadd.f32 %v1476_v51, %v5155_v8  ;;  %v1488_v52 = vadd.f32 %v5233_v11, %v1486_v26  ;;  %1511 = vst [vmem:[%s6750_s1 + $0x2e8] sm:$0xff] %v1492_v32  ;;  %1512 = vst [vmem:[%s6750_s1 + $0x2f0] sm:$0xff] %v1495_v50  ;;  %v5382_v12 = vmul.u32.u64.low %v5175_v21, %v1781_v61  ;;  %v5383_v62 = vmul.u32.u64.high %v5175_v21, %v1781_v61, %v5382_v12 }
 0x103   :  { %v1500_v43 = vadd.f32 %v5249_v23, %v1498_v27  ;;  %v1591_v34 = vadd.s32 127, %v1590_v37  ;;  %v5387_v55 = vmul.u32.u64.low %v5175_v21, %v1777_v57  ;;  %v5388_v8 = vmul.u32.u64.high %v5175_v21, %v1777_v57, %v5387_v55 }
 0x104   :  { %v3096_v11 = vand.u32 2147483647, %v5149_v49  ;;  %v3098_v41 = vcvt.s32.f32 %v4912_v20  ;;  %1505 = vst [vmem:[%s6750_s1 + $0x2b8] sm:$0xff] %v1477_v45  ;;  %v1489_v9 = vadd.f32 %v1488_v52, %v5184_v25  ;;  %v1601_v63 = vsel %vm1516_vm3, %v1600_v58, %v5177_v2 }
 0x105   :  { %v1501_v23 = vadd.f32 %v1500_v43, %v5187_v30  ;;  %v1592_v18 = vshll.u32 %v1591_v34, 23  ;;  %v1970_v49 = vand.u32 2139095040, %v5162_v19  ;;  %vm5410_vm4 = vcmp.le.f32.partialorder %v1514_v28, 0.7853982  ;;  %v5425_v28 = vld [vmem:[%s6749_s0 + $0x30] sm:$0xff] }
 0x106   :  { %1509 = vst [vmem:[%s6750_s1 + $0x2d8] sm:$0xff] %v1489_v9  ;;  %v1789_v25 = vmul.u32 %v5175_v21, %v5280_v22  ;;  %vm1791_vm5 = vc.u32 %v5383_v62, %v5387_v55  ;;  %v1596_v30 = vcvt.s32.f32 %v1589_v5  ;;  %v1792_v58 = vadd.s32 1, %v5388_v8 }
 0x107   :  { %1513 = vst [vmem:[%s6750_s1 + $0x2f8] sm:$0xff] %v1501_v23  ;;  %v1593_v2 = vor.u32 4788187, %v1592_v18  ;;  %v1971_v36 = vshrl.u32 %v1970_v49, 23  ;;  %v3099_v59 = vmul.f32 %v3098_v41, %v3096_v11  ;;  %v1603_v21 = vsel %vm5410_vm4, 0, %v1601_v63  ;;  %v3807_v63 = vld [vmem:[%s6749_s0 + $0x20] sm:$0xff] }
 0x108   :  { %v1793_v3 = vsel %vm1791_vm5, %v1792_v58, %v5388_v8  ;;  %v2268_v6 = vand.u32 2139095040, %v5425_v28  ;;  %v1710_v46 = vadd.s32 3, %v1603_v21  ;;  %vm3018_vm6 = vcmp.lt.s32.totalorder %v5434_v10, 0 }
 0x109   :  { %v1594_v22 = vand.u32 2147483647, %v1593_v2  ;;  %v3623_v60 = vadd.s32 4294967169, %v1971_v36  ;;  %v1794_v0 = vadd.s32 %v1793_v3, %v1789_v25  ;;  %v3100_v24 = vxor.u32 2147483648, %v3099_v59 }
 0x10a   :  { %v1967_v54 = vand.u32 2147483647, %v5162_v19  ;;  %v2269_v44 = vshrl.u32 %v2268_v6, 23  ;;  %v5440_v39 = vand.u32 3, %v1603_v21  ;;  %v5442_v47 = vand.u32 3, %v1710_v46 }
 0x10b   :  { %v1597_v13 = vmul.f32 %v1596_v30, %v1594_v22  ;;  %v1977_v16 = vadd.s32 1, %v3623_v60  ;;  %v1795_v4 = vadd.s32 536870912, %v1794_v0  ;;  %v5446_v51 = vsel %vm3018_vm6, %v3100_v24, %v3099_v59 }
 0x10c   :  { %vm1736_vm9 = vcmp.lt.s32.totalorder %v4976_v14, 0  ;;  %v1974_v50 = vand.u32 8388607, %v1967_v54  ;;  %v2265_v37 = vand.u32 2147483647, %v5425_v28  ;;  %v3631_v61 = vadd.s32 4294967169, %v2269_v44 }
 0x10d   :  { %v1598_v15 = vxor.u32 2147483648, %v1597_v13  ;;  %vm1978_vm8 = vcmp.gt.s32.totalorder %v1977_v16, 0  ;;  %v1796_v29 = vshrl.u32 %v1795_v4, 30  ;;  %vm1612_vm10 = vcmp.eq.s32.totalorder %v5440_v39, 2 }
 0x10e   :  { %v1979_v56 = vsel %vm1978_vm8, %v1977_v16, 0  ;;  %vm1716_vm11 = vcmp.eq.s32.totalorder %v5442_v47, 2  ;;  %vm1609_vm7 = vcmp.eq.s32.totalorder %v5440_v39, 0  ;;  %vm1713_vm12 = vcmp.eq.s32.totalorder %v5442_v47, 0 }
 0x10f   :  { %v1599_v17 = vsel %vm1516_vm3, %v1598_v15, %v1597_v13  ;;  %v1981_v57 = vand.u32 31, %v1979_v56  ;;  %v1797_v32 = vshll.u32 %v1796_v29, 30  ;;  %v5466_v34 = vshrl.u32 %v1979_v56, 5 }
 0x110   :  { %v1602_v26 = vsel %vm5410_vm4, %v4739_v42, %v1599_v17  ;;  %vm1608_vm13 = vcmp.lt.s32.totalorder %v5440_v39, 2  ;;  %vm1712_vm14 = vcmp.lt.s32.totalorder %v5442_v47, 2  ;;  %v1820_v41 = vsub.s32 4, %v1796_v29 }
 0x111   :  { %3773 = vcosq.f32 %v1602_v26  ;;  %v1982_v27 = vsub.s32 32, %v1981_v57  ;;  %v5454_v5 = vsub.s32 %v1794_v0, %v1797_v32  ;;  %v1984_v42 = vshll.u32 %v3815_v31, %v1981_v57 }
 0x112   :  { %3775 = vsinq.f32 %v1602_v26  ;;  %v1987_v52 = vshll.u32 %v3816_v33, %v1981_v57  ;;  %v1990_v8 = vshll.u32 %v3817_v35, %v1981_v57  ;;  %v1975_v9 = vor.u32 8388608, %v1974_v50 }
 0x113   :  { %v1985_v45 = vshrl.u32 %v3816_v33, %v1982_v27  ;;  %v1988_v12 = vshrl.u32 %v3817_v35, %v1982_v27  ;;  %v1800_v43 = vsub.s32 0, %v5454_v5  ;;  %v1991_v11 = vshrl.u32 %v3819_v38, %v1982_v27 }
 0x114   :  { %v1993_v23 = vshll.u32 %v3819_v38, %v1981_v57  ;;  %v1994_v18 = vshrl.u32 %v3820_v40, %v1982_v27  ;;  %vm1606_vm15 = vweird.f32 %v3807_v63  ;;  %v1790_v49 = vadd.s32 %v5387_v55, %v5383_v62 }
 0x115   :  { %v3616_v20 = vmin.u32 %v1800_v43, %v5454_v5  ;;  %v1983_v25 = vshrl.u32 %v3815_v31, %v1982_v27  ;;  %v5481_v2 = vadd.s32 1, %v3631_v61  ;;  %v1986_v30 = vor.u32 %v1985_v45, %v1984_v42 }
 0x116   :  { %v1989_v58 = vor.u32 %v1988_v12, %v1987_v52  ;;  %v1995_v36 = vor.u32 %v1994_v18, %v1993_v23  ;;  %v1996_v59 = vshll.u32 %v3820_v40, %v1981_v57  ;;  %v1992_v22 = vor.u32 %v1991_v11, %v1990_v8 }
 0x117   :  { %v1802_v21 = vclz %v3616_v20  ;;  %v1997_v3 = vshrl.u32 %v3821_v48, %v1982_v27  ;;  %vm1999_vm0 = vcmp.lt.s32.totalorder %v5466_v34, 1  ;;  %v1821_v62 = vsel %vm1736_vm9, %v1820_v41, %v1796_v29 }
 0x118   :  { %vm2001_vm1 = vcmp.lt.s32.totalorder %v5466_v34, 3  ;;  %v5489_v55 = vshll.u32 %v1975_v9, 8  ;;  %v5493_v60 = vand.u32 8388607, %v2265_v37  ;;  %vm2000_vm2 = vcmp.lt.s32.totalorder %v5466_v34, 2 }
 0x119   :  { %v3617_v0 = vadd.s32 4294967294, %v1802_v21  ;;  %v1998_v6 = vor.u32 %v1997_v3, %v1996_v59  ;;  %vm2002_vm3 = vcmp.lt.s32.totalorder %v5466_v34, 4  ;;  %v2003_v46 = vsel %vm1999_vm0, %v1983_v25, %v1986_v30  ;;  %v5578_v59 = vld [vmem:[%s6749_s0 + $0x38] sm:$0xff] }
 0x11a   :  { %v2004_v16 = vsel %vm2002_vm3, %v1992_v22, 2102212464  ;;  %v2007_v24 = vsel %vm1999_vm0, %v1986_v30, %v1989_v58  ;;  %v2008_v4 = vsel %vm2002_vm3, %v1995_v36, 920167782  ;;  %vm2276_vm4 = vcmp.gt.s32.totalorder %v5481_v2, 0 }
 0x11b   :  { %v3774_v13 = vpop.eup %3773  ;;  %vm3618_vm5 = vcmp.lt.s32.totalorder %v3617_v0, 0  ;;  %v2009_v56 = vsel %vm2001_vm1, %v1992_v22, %v2008_v4  ;;  %v2011_v44 = vsel %vm1999_vm0, %v1989_v58, %v1992_v22  ;;  %vm5512_vm8 = vcmp.le.f32.partialorder %v1734_v53, 0.7853982 }
 0x11c   :  { %v3776_v15 = vpop.eup %3775  ;;  %v1613_v29 = vxor.u32 2147483648, %v3774_v13  ;;  %v1805_v26 = vsel %vm3618_vm5, 0, %v3617_v0  ;;  %v2005_v32 = vsel %vm2001_vm1, %v1989_v58, %v2004_v16  ;;  %v2010_v50 = vsel %vm2000_vm2, %v2007_v24, %v2009_v56 }
 0x11d   :  { %v1610_v17 = vxor.u32 2147483648, %v3776_v15  ;;  %v1806_v42 = vsub.s32 32, %v1805_v26  ;;  %v1807_v45 = vshll.u32 %v5454_v5, %v1805_v26  ;;  %v1810_v12 = vsub.s32 4294967266, %v1805_v26 }
 0x11e   :  { %v1614_v27 = vsel %vm1612_vm10, %v1613_v29, %v3776_v15  ;;  %v1718_v61 = vsel %vm1716_vm11, %v1613_v29, %v3776_v15  ;;  %v2012_v43 = vsel %vm2002_vm3, %v1998_v6, 1326507024  ;;  %v2006_v3 = vsel %vm2000_vm2, %v2003_v46, %v2005_v32 }
 0x11f   :  { %v1611_v53 = vsel %vm1609_vm7, %v3774_v13, %v1610_v17  ;;  %v1715_v52 = vsel %vm1713_vm12, %v3774_v13, %v1610_v17  ;;  %v1808_v41 = vshrl.u32 %v1790_v49, %v1806_v42  ;;  %v2013_v5 = vsel %vm2001_vm1, %v1995_v36, %v2012_v43 }
 0x120   :  { %v1615_v8 = vsel %vm1608_vm13, %v1611_v53, %v1614_v27  ;;  %v1719_v11 = vsel %vm1712_vm14, %v1715_v52, %v1718_v61  ;;  %v1811_v18 = vadd.s32 127, %v1810_v12  ;;  %v2014_v20 = vsel %vm2000_vm2, %v2011_v44, %v2013_v5 }
 0x121   :  { %v5538_v9 = vsel %vm1606_vm15, nan, %v1615_v8  ;;  %v5541_v23 = vsel %vm1606_vm15, nan, %v1719_v11  ;;  %v1809_v47 = vor.u32 %v1808_v41, %v1807_v45  ;;  %v2485_v0 = vand.u32 2147483647, %v5578_v59 }
 0x122   :  { %1722 = vst [vmem:[%s6750_s1 + $0x300] sm:$0xff] %v5538_v9  ;;  %1732 = vst [vmem:[%s6750_s1 + $0x350] sm:$0xff] %v5538_v9  ;;  %v5566_v39 = vsub.f32 0.0, %v5541_v23  ;;  %v1944_v63 = vmul.f32 0.004, %v5538_v9  ;;  %v1812_v25 = vshll.u32 %v1811_v18, 23  ;;  %v2022_v26 = vmul.u32 %v5489_v55, %v2006_v3 }
 0x123   :  { %1964 = vst [vmem:[%s6750_s1 + $0x3b0] sm:$0xff] %v5538_v9  ;;  %1724 = vst [vmem:[%s6750_s1 + $0x310] sm:$0xff] %v5541_v23  ;;  %v1945_v49 = vmul.f32 0.0435, %v5541_v23  ;;  %v1951_v30 = vmul.f32 0.0435, %v5538_v9  ;;  %v5572_v58 = vmul.u32.u64.low %v5489_v55, %v2014_v20  ;;  %v5573_v36 = vmul.u32.u64.high %v5489_v55, %v2014_v20, %v5572_v58 }
 0x124   :  { %1956 = vst [vmem:[%s6750_s1 + $0x370] sm:$0xff] %v5541_v23  ;;  %1730 = vst [vmem:[%s6750_s1 + $0x340] sm:$0xff] %v5566_v39  ;;  %v1950_v22 = vmul.f32 0.004, %v5566_v39  ;;  %v1813_v6 = vor.u32 4788187, %v1812_v25  ;;  %v1816_v13 = vcvt.s32.f32 %v1809_v47  ;;  %vm1826_vm14 = vweird.f32 %v4976_v14 }
 0x125   :  { %v1946_v21 = vadd.f32 %v1945_v49, %v1944_v63  ;;  %v5589_v16 = vmul.u32.u64.low %v5489_v55, %v2010_v50  ;;  %v5590_v24 = vmul.u32.u64.high %v5489_v55, %v2010_v50, %v5589_v16  ;;  %v1823_v4 = vsel %vm5512_vm8, 0, %v1821_v62 }
 0x126   :  { %v1952_v29 = vadd.f32 %v1951_v30, %v1950_v22  ;;  %v2277_v34 = vsel %vm2276_vm4, %v5481_v2, 0  ;;  %v1814_v46 = vand.u32 2147483647, %v1813_v6  ;;  %v2273_v56 = vor.u32 8388608, %v5493_v60 }
 0x127   :  { %v5595_v15 = vadd.f32 0.002, %v1946_v21  ;;  %v5601_v44 = vshrl.u32 %v2277_v34, 5  ;;  %v2488_v17 = vand.u32 2139095040, %v5578_v59  ;;  %vm2024_vm10 = vc.u32 %v5573_v36, %v5589_v16 }
 0x128   :  { %v5608_v62 = vadd.f32 0.042, %v1952_v29  ;;  %v2279_v2 = vand.u32 31, %v2277_v34  ;;  %v1817_v32 = vmul.f32 %v1816_v13, %v1814_v46  ;;  %v1930_v50 = vadd.s32 3, %v1823_v4 }
 0x129   :  { %1957 = vst [vmem:[%s6750_s1 + $0x378] sm:$0xff] %v5595_v15  ;;  %v2025_v60 = vadd.s32 1, %v5590_v24  ;;  %vm2297_vm11 = vcmp.lt.s32.totalorder %v5601_v44, 1  ;;  %vm2298_vm7 = vcmp.lt.s32.totalorder %v5601_v44, 2  ;;  %vm2300_vm12 = vcmp.lt.s32.totalorder %v5601_v44, 4 }
 0x12a   :  { %1965 = vst [vmem:[%s6750_s1 + $0x3b8] sm:$0xff] %v5608_v62  ;;  %v2280_v27 = vsub.s32 32, %v2279_v2  ;;  %v2282_v61 = vshll.u32 %v3815_v31, %v2279_v2  ;;  %v2285_v55 = vshll.u32 %v3816_v33, %v2279_v2  ;;  %v2288_v42 = vshll.u32 %v3817_v35, %v2279_v2 }
 0x12b   :  { %v1818_v45 = vxor.u32 2147483648, %v1817_v32  ;;  %v2026_v53 = vsel %vm2024_vm10, %v2025_v60, %v5590_v24  ;;  %v2291_v52 = vshll.u32 %v3819_v38, %v2279_v2  ;;  %v2294_v12 = vshll.u32 %v3820_v40, %v2279_v2 }
 0x12c   :  { %v2027_v43 = vadd.s32 %v2026_v53, %v2022_v26  ;;  %v2283_v8 = vshrl.u32 %v3816_v33, %v2280_v27  ;;  %v2286_v11 = vshrl.u32 %v3817_v35, %v2280_v27  ;;  %v2289_v5 = vshrl.u32 %v3819_v38, %v2280_v27 }
 0x12d   :  { %v1819_v41 = vsel %vm1736_vm9, %v1818_v45, %v1817_v32  ;;  %v2292_v18 = vshrl.u32 %v3820_v40, %v2280_v27  ;;  %v2295_v20 = vshrl.u32 %v3821_v48, %v2280_v27  ;;  %vm2299_vm9 = vcmp.lt.s32.totalorder %v5601_v44, 3 }
 0x12e   :  { %v1822_v47 = vsel %vm5512_vm8, %v4976_v14, %v1819_v41  ;;  %v2028_v63 = vadd.s32 536870912, %v2027_v43  ;;  %v2284_v49 = vor.u32 %v2283_v8, %v2282_v61  ;;  %v2287_v25 = vor.u32 %v2286_v11, %v2285_v55 }
 0x12f   :  { %3777 = vcosq.f32 %v1822_v47  ;;  %v2290_v30 = vor.u32 %v2289_v5, %v2288_v42  ;;  %v2293_v58 = vor.u32 %v2292_v18, %v2291_v52  ;;  %v2296_v21 = vor.u32 %v2295_v20, %v2294_v12 }
 0x130   :  { %3779 = vsinq.f32 %v1822_v47  ;;  %v2029_v22 = vshrl.u32 %v2028_v63, 30  ;;  %v1827_v3 = vand.u32 3, %v1823_v4  ;;  %vm1969_vm13 = vcmp.lt.s32.totalorder %v5162_v19, 0 }
 0x131   :  { %v2305_v57 = vsel %vm2297_vm11, %v2284_v49, %v2287_v25  ;;  %v2306_v6 = vsel %vm2300_vm12, %v2293_v58, 920167782  ;;  %v5641_v13 = vshll.u32 %v2273_v56, 8  ;;  %v2281_v29 = vshrl.u32 %v3815_v31, %v2280_v27 }
 0x132   :  { %v2030_v24 = vshll.u32 %v2029_v22, 30  ;;  %v2307_v34 = vsel %vm2299_vm9, %v2290_v30, %v2306_v6  ;;  %v5648_v46 = vand.u32 8388607, %v2485_v0  ;;  %v2302_v26 = vsel %vm2300_vm12, %v2290_v30, 2102212464 }
 0x133   :  { %v2308_v4 = vsel %vm2298_vm7, %v2305_v57, %v2307_v34  ;;  %v2309_v2 = vsel %vm2297_vm11, %v2287_v25, %v2290_v30  ;;  %v2310_v32 = vsel %vm2300_vm12, %v2296_v21, 1326507024  ;;  %v1931_v56 = vand.u32 3, %v1930_v50 }
 0x134   :  { %vm5657_vm15 = vcmp.le.f32.partialorder %v1967_v54, 0.7853982  ;;  %v5661_v27 = vsub.s32 %v2027_v43, %v2030_v24  ;;  %v2311_v61 = vsel %vm2299_vm9, %v2293_v58, %v2310_v32  ;;  %v2489_v55 = vshrl.u32 %v2488_v17, 23 }
 0x135   :  { %vm1828_vm0 = vcmp.lt.s32.totalorder %v1827_v3, 2  ;;  %v2312_v42 = vsel %vm2298_vm7, %v2309_v2, %v2311_v61  ;;  %v5668_v45 = vmul.u32.u64.low %v5641_v13, %v2308_v4  ;;  %v5669_v53 = vmul.u32.u64.high %v5641_v13, %v2308_v4, %v5668_v45 }
 0x136   :  { %v2033_v54 = vsub.s32 0, %v5661_v27  ;;  %v2053_v50 = vsub.s32 4, %v2029_v22  ;;  %v2301_v52 = vsel %vm2297_vm11, %v2281_v29, %v2284_v49  ;;  %v2303_v12 = vsel %vm2299_vm9, %v2287_v25, %v2302_v26 }
 0x137   :  { %vm1829_vm1 = vcmp.eq.s32.totalorder %v1827_v3, 0  ;;  %vm1832_vm2 = vcmp.eq.s32.totalorder %v1827_v3, 2  ;;  %v5678_v17 = vmul.u32.u64.low %v5641_v13, %v2312_v42  ;;  %v5679_v43 = vmul.u32.u64.high %v5641_v13, %v2312_v42, %v5678_v17 }
 0x138   :  { %vm1932_vm3 = vcmp.lt.s32.totalorder %v1931_v56, 2  ;;  %vm1933_vm4 = vcmp.eq.s32.totalorder %v1931_v56, 0  ;;  %vm1936_vm5 = vcmp.eq.s32.totalorder %v1931_v56, 2  ;;  %v3624_v8 = vmin.u32 %v2033_v54, %v5661_v27 }
 0x139   :  { %v3778_v11 = vpop.eup %3777  ;;  %v5683_v41 = vmul.f32 0.045, %v5541_v23  ;;  %v2304_v5 = vsel %vm2298_vm7, %v2301_v52, %v2303_v12  ;;  %v3639_v18 = vadd.s32 4294967169, %v2489_v55  ;;  %v6770_v47 = vand.u32 2147483647, %v3850_v1 }
 0x13a   :  { %v3780_v20 = vpop.eup %3779  ;;  %v1833_v49 = vxor.u32 2147483648, %v3778_v11  ;;  %v2035_v25 = vclz %v3624_v8  ;;  %v2054_v30 = vsel %vm1969_vm13, %v2053_v50, %v2029_v22  ;;  %v3828_v58 = vmov 0.048  }
 0x13b   :  { %vm5689_vm8 = vcmp.le.f32.partialorder %v6770_v47, 0.7853982  ;;  %2484 = vst [vmem:[%s6750_s1 + $0x4d8] sm:$0xff] %v3828_v58  ;;  %v1830_v44 = vxor.u32 2147483648, %v3780_v20  ;;  %v2023_v21 = vadd.s32 %v5589_v16, %v5573_v36  ;;  %v5701_v1 = vmul.f32 0.045, %v5538_v9 }
 0x13c   :  { %v2323_v57 = vadd.s32 1, %v5669_v53  ;;  %v3829_v6 = vmov 0.0975   ;;  %v1834_v22 = vsel %vm1832_vm2, %v1833_v49, %v3780_v20  ;;  %v1938_v24 = vsel %vm1936_vm5, %v1833_v49, %v3780_v20 }
 0x13d   :  { %2716 = vst [vmem:[%s6750_s1 + $0x538] sm:$0xff] %v3829_v6  ;;  %v3625_v29 = vadd.s32 4294967294, %v2035_v25  ;;  %v2320_v34 = vmul.u32 %v5641_v13, %v2304_v5  ;;  %v1831_v26 = vsel %vm1829_vm1, %v3778_v11, %v1830_v44  ;;  %v1935_v36 = vsel %vm1933_vm4, %v3778_v11, %v1830_v44 }
 0x13e   :  { %v2056_v16 = vsel %vm5657_vm15, 0, %v2054_v30  ;;  %vm2322_vm10 = vc.u32 %v5679_v43, %v5668_v45  ;;  %v1835_v4 = vsel %vm1828_vm0, %v1831_v26, %v1834_v22  ;;  %v1939_v2 = vsel %vm1932_vm3, %v1935_v36, %v1938_v24 }
 0x13f   :  { %vm3626_vm11 = vcmp.lt.s32.totalorder %v3625_v29, 0  ;;  %v2495_v32 = vadd.s32 1, %v3639_v18  ;;  %v5720_v61 = vsel %vm1826_vm14, nan, %v1835_v4  ;;  %v5724_v13 = vsel %vm1826_vm14, nan, %v1939_v2 }
 0x140   :  { %v2038_v55 = vsel %vm3626_vm11, 0, %v3625_v29  ;;  %v2324_v42 = vsel %vm2322_vm10, %v2323_v57, %v5669_v53  ;;  %v5729_v54 = vmul.f32 %v5720_v61, %v5566_v39  ;;  %1959 = vst [vmem:[%s6750_s1 + $0x388] sm:$0xff] %v5720_v61  ;;  %v5737_v3 = vmul.f32 %v5720_v61, %v5538_v9  ;;  %1958 = vst [vmem:[%s6750_s1 + $0x380] sm:$0xff] %v5724_v13 }
 0x141   :  { %v5740_v14 = vsub.f32 0.0, %v5724_v13  ;;  %2209 = vst [vmem:[%s6750_s1 + $0x3e0] sm:$0xff] %v5724_v13  ;;  %v2039_v56 = vsub.s32 32, %v2038_v55  ;;  %v2040_v53 = vshll.u32 %v5661_v27, %v2038_v55  ;;  %v2043_v50 = vsub.s32 4294967266, %v2038_v55 }
 0x142   :  { %v2189_v52 = vmul.f32 0.006, %v5724_v13  ;;  %v2190_v12 = vmul.f32 0.005, %v5720_v61  ;;  %1962 = vst [vmem:[%s6750_s1 + $0x3a0] sm:$0xff] %v5729_v54  ;;  %2213 = vst [vmem:[%s6750_s1 + $0x400] sm:$0xff] %v5729_v54  ;;  %v2325_v25 = vadd.s32 %v2324_v42, %v2320_v34  ;;  %v5793_v30 = vsel %vm5689_vm8, %v5434_v10, %v5446_v51 }
 0x143   :  { %1954 = vst [vmem:[%s6750_s1 + $0x360] sm:$0xff] %v5737_v3  ;;  %2205 = vst [vmem:[%s6750_s1 + $0x3c0] sm:$0xff] %v5737_v3  ;;  %v5771_v27 = vmul.f32 %v5740_v14, %v5538_v9  ;;  %v5775_v17 = vmul.f32 %v5740_v14, %v5566_v39  ;;  %v2041_v8 = vshrl.u32 %v2023_v21, %v2039_v56  ;;  %v2181_v11 = vmul.f32 0.006, %v5737_v3 }
 0x144   :  { %v2044_v5 = vadd.s32 127, %v2043_v50  ;;  %v2191_v18 = vadd.f32 %v2190_v12, %v2189_v52  ;;  %v2199_v20 = vmul.f32 0.006, %v5729_v54  ;;  %vm2496_vm7 = vcmp.gt.s32.totalorder %v2495_v32, 0 }
 0x145   :  { %1955 = vst [vmem:[%s6750_s1 + $0x368] sm:$0xff] %v5771_v27  ;;  %1963 = vst [vmem:[%s6750_s1 + $0x3a8] sm:$0xff] %v5775_v17  ;;  %v2042_v39 = vor.u32 %v2041_v8, %v2040_v53  ;;  %v2182_v47 = vmul.f32 0.005, %v5771_v27  ;;  %v2200_v49 = vmul.f32 0.005, %v5775_v17  ;;  %3781 = vsinq.f32 %v5793_v30 }
 0x146   :  { %v2045_v58 = vshll.u32 %v2044_v5, 23  ;;  %v5795_v44 = vadd.f32 0.007, %v2191_v18  ;;  %v2493_v21 = vor.u32 8388608, %v5648_v46  ;;  %v2163_v57 = vadd.s32 3, %v2056_v16 }
 0x147   :  { %v2183_v6 = vadd.f32 %v2182_v47, %v2181_v11  ;;  %v2201_v22 = vadd.f32 %v2200_v49, %v2199_v20  ;;  %v2497_v24 = vsel %vm2496_vm7, %v2495_v32, 0  ;;  %v3102_v29 = vsub.s32 4, %v4143_v7 }
 0x148   :  { %v2046_v26 = vor.u32 4788187, %v2045_v58  ;;  %v2049_v36 = vcvt.s32.f32 %v2042_v39  ;;  %2212 = vst [vmem:[%s6750_s1 + $0x3f8] sm:$0xff] %v5795_v44  ;;  %v2326_v46 = vadd.s32 536870912, %v2325_v25  ;;  %v5806_v2 = vand.u32 3, %v2056_v16 }
 0x149   :  { %v2185_v51 = vadd.f32 %v5683_v41, %v2183_v6  ;;  %v2203_v34 = vadd.f32 %v5701_v1, %v2201_v22  ;;  %v2499_v32 = vand.u32 31, %v2497_v24  ;;  %v5808_v55 = vshll.u32 %v2493_v21, 8 }
 0x14a   :  { %v2047_v4 = vand.u32 2147483647, %v2046_v26  ;;  %v5810_v42 = vand.u32 3, %v2163_v57  ;;  %v5818_v50 = vshrl.u32 %v2326_v46, 30  ;;  %v5822_v1 = vadd.s32 %v5668_v45, %v5679_v43 }
 0x14b   :  { %v5813_v56 = vadd.f32 %v2185_v51, %v5595_v15  ;;  %v5816_v53 = vadd.f32 %v2203_v34, %v5608_v62  ;;  %v5824_v16 = vshrl.u32 %v2497_v24, 5  ;;  %v2500_v52 = vsub.s32 32, %v2499_v32 }
 0x14c   :  { %v2050_v41 = vmul.f32 %v2049_v36, %v2047_v4  ;;  %v5836_v15 = vmul.f32 %v5737_v3, %v5720_v61  ;;  %v2328_v62 = vshll.u32 %v5818_v50, 30  ;;  %v2502_v45 = vshll.u32 %v3815_v31, %v2499_v32 }
 0x14d   :  { %2208 = vst [vmem:[%s6750_s1 + $0x3d8] sm:$0xff] %v5813_v56  ;;  %2216 = vst [vmem:[%s6750_s1 + $0x418] sm:$0xff] %v5816_v53  ;;  %v2505_v43 = vshll.u32 %v3816_v33, %v2499_v32  ;;  %v2503_v8 = vshrl.u32 %v3816_v33, %v2500_v52  ;;  %v2506_v11 = vshrl.u32 %v3817_v35, %v2500_v52  ;;  %v5856_v21 = vmul.f32 0.008, %v5737_v3 }
 0x14e   :  { %v2051_v12 = vxor.u32 2147483648, %v2050_v41  ;;  %v2508_v5 = vshll.u32 %v3817_v35, %v2499_v32  ;;  %v5844_v18 = vsub.s32 %v2325_v25, %v2328_v62  ;;  %v2509_v20 = vshrl.u32 %v3819_v38, %v2500_v52 }
 0x14f   :  { %v2511_v39 = vshll.u32 %v3819_v38, %v2499_v32  ;;  %v2512_v47 = vshrl.u32 %v3820_v40, %v2500_v52  ;;  %v5853_v58 = vmul.f32 %v5737_v3, %v5724_v13  ;;  %v5860_v25 = vmul.f32 %v5724_v13, %v5720_v61  ;;  %v5873_v36 = vpop.eup %3781 }
 0x150   :  { %v2052_v49 = vsel %vm1969_vm13, %v2051_v12, %v2050_v41  ;;  %v5867_v6 = vmul.f32 %v5724_v13, %v5724_v13  ;;  %v2331_v22 = vsub.s32 0, %v5844_v18  ;;  %vm2517_vm9 = vcmp.lt.s32.totalorder %v5824_v16, 1 }
 0x151   :  { %v2055_v57 = vsel %vm5657_vm15, %v5162_v19, %v2052_v49  ;;  %vm2267_vm12 = vcmp.lt.s32.totalorder %v5425_v28, 0  ;;  %v2504_v3 = vor.u32 %v2503_v8, %v2502_v45  ;;  %v2507_v24 = vor.u32 %v2506_v11, %v2505_v43 }
 0x152   :  { %3783 = vcosq.f32 %v2055_v57  ;;  %v2514_v26 = vshll.u32 %v3820_v40, %v2499_v32  ;;  %v3632_v60 = vmin.u32 %v2331_v22, %v5844_v18  ;;  %v2510_v51 = vor.u32 %v2509_v20, %v2508_v5 }
 0x153   :  { %3785 = vsinq.f32 %v2055_v57  ;;  %v2513_v34 = vor.u32 %v2512_v47, %v2511_v39  ;;  %vm2065_vm13 = vcmp.eq.s32.totalorder %v5806_v2, 2  ;;  %vm2169_vm14 = vcmp.eq.s32.totalorder %v5810_v42, 2 }
 0x154   :  { %v5879_v46 = vmul.f32 0.008, %v5724_v13  ;;  %v2501_v4 = vshrl.u32 %v3815_v31, %v2500_v52  ;;  %v2515_v41 = vshrl.u32 %v3821_v48, %v2500_v52  ;;  %vm2520_vm15 = vcmp.lt.s32.totalorder %v5824_v16, 4 }
 0x155   :  { %vm2062_vm0 = vcmp.eq.s32.totalorder %v5806_v2, 0  ;;  %vm2166_vm1 = vcmp.eq.s32.totalorder %v5810_v42, 0  ;;  %v5888_v32 = vmul.f32 %v5729_v54, %v5720_v61  ;;  %v5892_v62 = vmul.f32 %v5729_v54, %v5724_v13 }
 0x156   :  { %vm5896_vm2 = vcmp.le.f32.partialorder %v2265_v37, 0.7853982  ;;  %v2333_v52 = vclz %v3632_v60  ;;  %vm2519_vm3 = vcmp.lt.s32.totalorder %v5824_v16, 3  ;;  %vm2061_vm4 = vcmp.lt.s32.totalorder %v5806_v2, 2 }
 0x157   :  { %vm2165_vm5 = vcmp.lt.s32.totalorder %v5810_v42, 2  ;;  %v2516_v43 = vor.u32 %v2515_v41, %v2514_v26  ;;  %vm2518_vm10 = vcmp.lt.s32.totalorder %v5824_v16, 2  ;;  %v2522_v13 = vsel %vm2520_vm15, %v2510_v51, 2102212464 }
 0x158   :  { %v2525_v12 = vsel %vm2517_vm9, %v2504_v3, %v2507_v24  ;;  %vm2059_vm11 = vweird.f32 %v5162_v19  ;;  %v3633_v37 = vadd.s32 4294967294, %v2333_v52  ;;  %v2351_v8 = vsub.s32 4, %v5818_v50 }
 0x159   :  { %v2526_v11 = vsel %vm2520_vm15, %v2513_v34, 920167782  ;;  %v2529_v5 = vsel %vm2517_vm9, %v2507_v24, %v2510_v51  ;;  %v2521_v20 = vsel %vm2517_vm9, %v2501_v4, %v2504_v3  ;;  %v2530_v47 = vsel %vm2520_vm15, %v2516_v43, 1326507024 }
 0x15a   :  { %v2527_v39 = vsel %vm2519_vm3, %v2510_v51, %v2526_v11  ;;  %v5921_v49 = vmul.f32 1.045, %v5578_v59  ;;  %vm3634_vm7 = vcmp.lt.s32.totalorder %v3633_v37, 0  ;;  %v2523_v57 = vsel %vm2519_vm3, %v2507_v24, %v2522_v13 }
 0x15b   :  { %v2528_v22 = vsel %vm2518_vm10, %v2525_v12, %v2527_v39  ;;  %v2531_v26 = vsel %vm2519_vm3, %v2513_v34, %v2530_v47  ;;  %v2336_v3 = vsel %vm3634_vm7, 0, %v3633_v37  ;;  %v2352_v24 = vsel %vm2267_vm12, %v2351_v8, %v5818_v50 }
 0x15c   :  { %v2532_v60 = vsel %vm2518_vm10, %v2529_v5, %v2531_v26  ;;  %v5932_v51 = vmul.u32.u64.low %v5808_v55, %v2528_v22  ;;  %v5933_v4 = vmul.u32.u64.high %v5808_v55, %v2528_v22, %v5932_v51  ;;  %v2337_v41 = vsub.s32 32, %v2336_v3  ;;  %v3784_v13 = vpop.eup %3783 }
 0x15d   :  { %v2338_v52 = vshll.u32 %v5844_v18, %v2336_v3  ;;  %v2341_v43 = vsub.s32 4294967266, %v2336_v3  ;;  %v5941_v34 = vmul.f32 0.008, %v5729_v54  ;;  %v2721_v11 = vand.u32 2139095040, %v5921_v49  ;;  %v3786_v5 = vpop.eup %3785 }
 0x15e   :  { %v5944_v12 = vmul.u32.u64.low %v5808_v55, %v2532_v60  ;;  %v5945_v37 = vmul.u32.u64.high %v5808_v55, %v2532_v60, %v5944_v12  ;;  %v2066_v39 = vxor.u32 2147483648, %v3784_v13  ;;  %v2339_v47 = vshrl.u32 %v5822_v1, %v2337_v41 }
 0x15f   :  { %v2342_v18 = vadd.s32 127, %v2341_v43  ;;  %v2524_v22 = vsel %vm2518_vm10, %v2521_v20, %v2523_v57  ;;  %v2063_v26 = vxor.u32 2147483648, %v3786_v5  ;;  %v5953_v50 = vsel %vm5896_vm2, 0, %v2352_v24 }
 0x160   :  { %v2543_v54 = vadd.s32 1, %v5933_v4  ;;  %v2722_v8 = vshrl.u32 %v2721_v11, 23  ;;  %v2067_v3 = vsel %vm2065_vm13, %v2066_v39, %v3786_v5  ;;  %v2171_v60 = vsel %vm2169_vm14, %v2066_v39, %v3786_v5 }
 0x161   :  { %v5960_v12 = vor.u32 %v2339_v47, %v2338_v52  ;;  %v2343_v1 = vshll.u32 %v2342_v18, 23  ;;  %v2064_v16 = vsel %vm2062_vm0, %v3784_v13, %v2063_v26  ;;  %v2168_v20 = vsel %vm2166_vm1, %v3784_v13, %v2063_v26 }
 0x162   :  { %v2540_v57 = vmul.u32 %v5808_v55, %v2524_v22  ;;  %vm2542_vm9 = vc.u32 %v5945_v37, %v5932_v51  ;;  %v2068_v41 = vsel %vm2061_vm4, %v2064_v16, %v2067_v3  ;;  %v2172_v43 = vsel %vm2165_vm5, %v2168_v20, %v2171_v60 }
 0x163   :  { %v2344_v52 = vor.u32 4788187, %v2343_v1  ;;  %v2347_v24 = vcvt.s32.f32 %v5960_v12  ;;  %v2069_v11 = vsel %vm2059_vm11, nan, %v2068_v41  ;;  %v2173_v13 = vsel %vm2059_vm11, nan, %v2172_v43 }
 0x164   :  { %v2544_v55 = vsel %vm2542_vm9, %v2543_v54, %v5933_v4  ;;  %v3647_v5 = vadd.s32 4294967169, %v2722_v8  ;;  %v2174_v39 = vsub.f32 0.0, %v2173_v13  ;;  %v2175_v47 = vmul.f32 %v2069_v11, %v5771_v27 }
 0x165   :  { %v2176_v2 = vmul.f32 %v2173_v13, %v5541_v23  ;;  %v2179_v42 = vmul.f32 %v2069_v11, %v5541_v23  ;;  %v2187_v18 = vmul.f32 %v2069_v11, %v5720_v61  ;;  %v2193_v22 = vmul.f32 %v2069_v11, %v5775_v17 }
 0x166   :  { %v2194_v26 = vmul.f32 %v2173_v13, %v5538_v9  ;;  %v2197_v3 = vmul.f32 %v2069_v11, %v5538_v9  ;;  %v2178_v60 = vmul.f32 %v2174_v39, %v5771_v27  ;;  %v2188_v4 = vmul.f32 %v2174_v39, %v5720_v61 }
 0x167   :  { %v2177_v19 = vadd.f32 %v2176_v2, %v2175_v47  ;;  %v2196_v54 = vmul.f32 %v2174_v39, %v5775_v17  ;;  %2210 = vst [vmem:[%s6750_s1 + $0x3e8] sm:$0xff] %v2187_v18  ;;  %2258 = vst [vmem:[%s6750_s1 + $0x448] sm:$0xff] %v2187_v18  ;;  %v2236_v8 = vmul.f32 0.006, %v2187_v18  ;;  %v2345_v12 = vand.u32 2147483647, %v2344_v52 }
 0x168   :  { %v2195_v23 = vadd.f32 %v2194_v26, %v2193_v22  ;;  %v5995_v1 = vadd.s32 %v2544_v55, %v2540_v57  ;;  %v2180_v9 = vadd.f32 %v2179_v42, %v2178_v60  ;;  %2211 = vst [vmem:[%s6750_s1 + $0x3f0] sm:$0xff] %v2188_v4  ;;  %v2230_v16 = vmul.f32 %v2188_v4, %v5740_v14 }
 0x169   :  { %2206 = vst [vmem:[%s6750_s1 + $0x3c8] sm:$0xff] %v2177_v19  ;;  %2254 = vst [vmem:[%s6750_s1 + $0x428] sm:$0xff] %v2177_v19  ;;  %v2198_v27 = vadd.f32 %v2197_v3, %v2196_v54  ;;  %v2224_v17 = vmul.f32 0.006, %v2177_v19  ;;  %v2233_v20 = vmul.f32 %v2188_v4, %v5720_v61  ;;  %v2237_v57 = vadd.f32 %v2236_v8, %v5879_v46 }
 0x16a   :  { %2214 = vst [vmem:[%s6750_s1 + $0x408] sm:$0xff] %v2195_v23  ;;  %2262 = vst [vmem:[%s6750_s1 + $0x468] sm:$0xff] %v2195_v23  ;;  %v2238_v41 = vmul.f32 0.0465, %v2188_v4  ;;  %v2248_v43 = vmul.f32 0.006, %v2195_v23  ;;  %v2218_v52 = vmul.f32 %v2180_v9, %v5740_v14  ;;  %v2221_v11 = vmul.f32 %v2180_v9, %v5720_v61 }
 0x16b   :  { %2207 = vst [vmem:[%s6750_s1 + $0x3d0] sm:$0xff] %v2180_v9  ;;  %2215 = vst [vmem:[%s6750_s1 + $0x410] sm:$0xff] %v2198_v27  ;;  %v2225_v13 = vadd.f32 %v2224_v17, %v5856_v21  ;;  %v2226_v55 = vmul.f32 0.0465, %v2180_v9  ;;  %v2231_v39 = vadd.f32 %v2230_v16, %v5860_v25  ;;  %v2234_v46 = vadd.f32 %v2233_v20, %v5867_v6 }
 0x16c   :  { %v2239_v47 = vadd.f32 %v2238_v41, %v2237_v57  ;;  %v2242_v2 = vmul.f32 %v2198_v27, %v5740_v14  ;;  %v2219_v42 = vadd.f32 %v2218_v52, %v5836_v15  ;;  %v2222_v18 = vadd.f32 %v2221_v11, %v5853_v58 }
 0x16d   :  { %v2227_v22 = vadd.f32 %v2226_v55, %v2225_v13  ;;  %v2245_v26 = vmul.f32 %v2198_v27, %v5720_v61  ;;  %2257 = vst [vmem:[%s6750_s1 + $0x440] sm:$0xff] %v2231_v39  ;;  %2259 = vst [vmem:[%s6750_s1 + $0x450] sm:$0xff] %v2234_v46  ;;  %v2249_v14 = vadd.f32 %v2248_v43, %v5941_v34  ;;  %v2250_v15 = vmul.f32 0.0465, %v2198_v27 }
 0x16e   :  { %v2240_v21 = vadd.f32 %v2239_v47, %v5795_v44  ;;  %v2243_v25 = vadd.f32 %v2242_v2, %v5888_v32  ;;  %2253 = vst [vmem:[%s6750_s1 + $0x420] sm:$0xff] %v2219_v42  ;;  %2255 = vst [vmem:[%s6750_s1 + $0x430] sm:$0xff] %v2222_v18  ;;  %v2348_v6 = vmul.f32 %v2347_v24, %v2345_v12  ;;  %v2546_v44 = vadd.s32 536870912, %v5995_v1 }
 0x16f   :  { %v2228_v61 = vadd.f32 %v2227_v22, %v5813_v56  ;;  %v2246_v58 = vadd.f32 %v2245_v26, %v5892_v62  ;;  %v2251_v32 = vadd.f32 %v2250_v15, %v2249_v14  ;;  %v2461_v34 = vadd.s32 3, %v5953_v50 }
 0x170   :  { %2260 = vst [vmem:[%s6750_s1 + $0x458] sm:$0xff] %v2240_v21  ;;  %2261 = vst [vmem:[%s6750_s1 + $0x460] sm:$0xff] %v2243_v25  ;;  %v2718_v3 = vand.u32 2147483647, %v5921_v49  ;;  %v2728_v19 = vadd.s32 1, %v3647_v5  ;;  %v2349_v56 = vxor.u32 2147483648, %v2348_v6  ;;  %v3103_v24 = vsel %vm3018_vm6, %v3102_v29, %v4143_v7 }
 0x171   :  { %2256 = vst [vmem:[%s6750_s1 + $0x438] sm:$0xff] %v2228_v61  ;;  %2263 = vst [vmem:[%s6750_s1 + $0x470] sm:$0xff] %v2246_v58  ;;  %v6062_v62 = vshrl.u32 %v2546_v44, 30  ;;  %v2252_v60 = vadd.f32 %v2251_v32, %v5816_v53  ;;  %v6073_v4 = vand.u32 3, %v5953_v50  ;;  %v6082_v10 = vand.u32 3, %v2461_v34 }
 0x172   :  { %vm2729_vm13 = vcmp.gt.s32.totalorder %v2728_v19, 0  ;;  %v2350_v5 = vsel %vm2267_vm12, %v2349_v56, %v2348_v6  ;;  %v2725_v29 = vand.u32 8388607, %v2718_v3  ;;  %v6091_v8 = vsel %vm5689_vm8, 0, %v3103_v24 }
 0x173   :  { %v2548_v54 = vshll.u32 %v6062_v62, 30  ;;  %v2730_v23 = vsel %vm2729_vm13, %v2728_v19, 0  ;;  %2264 = vst [vmem:[%s6750_s1 + $0x478] sm:$0xff] %v2252_v60  ;;  %v2353_v7 = vsel %vm5896_vm2, %v5425_v28, %v2350_v5  ;;  %vm2363_vm6 = vcmp.eq.s32.totalorder %v6073_v4, 2 }
 0x174   :  { %v2732_v53 = vand.u32 31, %v2730_v23  ;;  %3787 = vcosq.f32 %v2353_v7  ;;  %vm2360_vm12 = vcmp.eq.s32.totalorder %v6073_v4, 0  ;;  %vm2464_vm14 = vcmp.eq.s32.totalorder %v6082_v10, 0 }
 0x175   :  { %v6087_v50 = vsub.s32 %v5995_v1, %v2548_v54  ;;  %3789 = vsinq.f32 %v2353_v7  ;;  %vm2467_vm15 = vcmp.eq.s32.totalorder %v6082_v10, 2  ;;  %v2726_v63 = vor.u32 8388608, %v2725_v29 }
 0x176   :  { %v2733_v12 = vsub.s32 32, %v2732_v53  ;;  %v2735_v9 = vshll.u32 %v3815_v31, %v2732_v53  ;;  %3791 = vcosq.f32 %v5793_v30  ;;  %v2738_v27 = vshll.u32 %v3816_v33, %v2732_v53 }
 0x177   :  { %v2551_v45 = vsub.s32 0, %v6087_v50  ;;  %vm2359_vm8 = vcmp.lt.s32.totalorder %v6073_v4, 2  ;;  %vm2463_vm0 = vcmp.lt.s32.totalorder %v6082_v10, 2  ;;  %v2541_v30 = vadd.s32 %v5932_v51, %v5945_v37 }
 0x178   :  { %v2736_v1 = vshrl.u32 %v3816_v33, %v2733_v12  ;;  %v2739_v17 = vshrl.u32 %v3817_v35, %v2733_v12  ;;  %v6108_v20 = vshrl.u32 %v2730_v23, 5  ;;  %v2741_v57 = vshll.u32 %v3817_v35, %v2732_v53 }
 0x179   :  { %v3640_v16 = vmin.u32 %v2551_v45, %v6087_v50  ;;  %vm2357_vm1 = vweird.f32 %v5425_v28  ;;  %v2734_v41 = vshrl.u32 %v3815_v31, %v2733_v12  ;;  %v2742_v52 = vshrl.u32 %v3819_v38, %v2733_v12 }
 0x17a   :  { %v2737_v43 = vor.u32 %v2736_v1, %v2735_v9  ;;  %v6115_v11 = vand.u32 3, %v6091_v8  ;;  %v2740_v55 = vor.u32 %v2739_v17, %v2738_v27  ;;  %v2744_v51 = vshll.u32 %v3819_v38, %v2732_v53 }
 0x17b   :  { %v2553_v13 = vclz %v3640_v16  ;;  %v2745_v37 = vshrl.u32 %v3820_v40, %v2733_v12  ;;  %v2571_v39 = vsub.s32 4, %v6062_v62  ;;  %v2747_v46 = vshll.u32 %v3820_v40, %v2732_v53 }
 0x17c   :  { %v6121_v47 = vshll.u32 %v2726_v63, 8  ;;  %v3112_v2 = vxor.u32 2147483648, %v5873_v36  ;;  %v2743_v18 = vor.u32 %v2742_v52, %v2741_v57  ;;  %vm2750_vm2 = vcmp.lt.s32.totalorder %v6108_v20, 1 }
 0x17d   :  { %v3641_v42 = vadd.s32 4294967294, %v2553_v13  ;;  %v2746_v22 = vor.u32 %v2745_v37, %v2744_v51  ;;  %v2748_v26 = vshrl.u32 %v3821_v48, %v2733_v12  ;;  %vm2751_vm3 = vcmp.lt.s32.totalorder %v6108_v20, 2 }
 0x17e   :  { %vm2752_vm4 = vcmp.lt.s32.totalorder %v6108_v20, 3  ;;  %vm2753_vm5 = vcmp.lt.s32.totalorder %v6108_v20, 4  ;;  %v3788_v21 = vpop.eup %3787  ;;  %v2754_v25 = vsel %vm2750_vm2, %v2734_v41, %v2737_v43  ;;  %v2758_v15 = vsel %vm2750_vm2, %v2737_v43, %v2740_v55 }
 0x17f   :  { %vm3642_vm10 = vcmp.lt.s32.totalorder %v3641_v42, 0  ;;  %v2755_v14 = vsel %vm2753_vm5, %v2743_v18, 2102212464  ;;  %v3790_v61 = vpop.eup %3789  ;;  %v2364_v58 = vxor.u32 2147483648, %v3788_v21  ;;  %vm2487_vm11 = vcmp.lt.s32.totalorder %v5578_v59, 0 }
 0x180   :  { %v2556_v6 = vsel %vm3642_vm10, 0, %v3641_v42  ;;  %v2756_v44 = vsel %vm2752_vm4, %v2740_v55, %v2755_v14  ;;  %v2759_v32 = vsel %vm2753_vm5, %v2746_v22, 920167782  ;;  %vm3111_vm7 = vcmp.eq.s32.totalorder %v6115_v11, 0  ;;  %v6141_v34 = vpop.eup %3791 }
 0x181   :  { %v2361_v19 = vxor.u32 2147483648, %v3790_v61  ;;  %v2557_v56 = vsub.s32 32, %v2556_v6  ;;  %v2558_v24 = vshll.u32 %v6087_v50, %v2556_v6  ;;  %v2561_v60 = vsub.s32 4294967266, %v2556_v6 }
 0x182   :  { %v2365_v5 = vsel %vm2363_vm6, %v2364_v58, %v3790_v61  ;;  %v2469_v54 = vsel %vm2467_vm15, %v2364_v58, %v3790_v61  ;;  %v2749_v23 = vor.u32 %v2748_v26, %v2747_v46  ;;  %v2760_v7 = vsel %vm2752_vm4, %v2743_v18, %v2759_v32  ;;  %v3808_v32 = vld [vmem:[%s6749_s0 + $0x40] sm:$0xff] }
 0x183   :  { %v2362_v29 = vsel %vm2360_vm12, %v3788_v21, %v2361_v19  ;;  %v2466_v53 = vsel %vm2464_vm14, %v3788_v21, %v2361_v19  ;;  %v2559_v12 = vshrl.u32 %v2541_v30, %v2557_v56  ;;  %v2562_v9 = vadd.s32 127, %v2561_v60 }
 0x184   :  { %v2366_v50 = vsel %vm2359_vm8, %v2362_v29, %v2365_v5  ;;  %v2470_v45 = vsel %vm2463_vm0, %v2466_v53, %v2469_v54  ;;  %v2757_v27 = vsel %vm2751_vm3, %v2754_v25, %v2756_v44  ;;  %v2761_v63 = vsel %vm2751_vm3, %v2758_v15, %v2760_v7 }
 0x185   :  { %vm3110_vm9 = vcmp.lt.s32.totalorder %v6115_v11, 2  ;;  %v6165_v1 = vsel %vm2357_vm1, nan, %v2366_v50  ;;  %v6169_v17 = vsel %vm2357_vm1, nan, %v2470_v45  ;;  %vm6173_vm13 = vcmp.le.f32.partialorder %v2485_v0, 0.7853982 }
 0x186   :  { %v2560_v10 = vor.u32 %v2559_v12, %v2558_v24  ;;  %v2563_v30 = vshll.u32 %v2562_v9, 23  ;;  %2473 = vst [vmem:[%s6750_s1 + $0x480] sm:$0xff] %v6165_v1  ;;  %2478 = vst [vmem:[%s6750_s1 + $0x4a8] sm:$0xff] %v6165_v1  ;;  %v6190_v28 = vsub.f32 0.0, %v6169_v17  ;;  %v2695_v0 = vmul.f32 0.004, %v6165_v1 }
 0x187   :  { %2705 = vst [vmem:[%s6750_s1 + $0x4e0] sm:$0xff] %v6165_v1  ;;  %2477 = vst [vmem:[%s6750_s1 + $0x4a0] sm:$0xff] %v6169_v17  ;;  %v2701_v16 = vmul.f32 0.004, %v6169_v17  ;;  %v2762_v57 = vsel %vm2750_vm2, %v2740_v55, %v2743_v18  ;;  %v2702_v52 = vmul.f32 0.008, %v6165_v1  ;;  %v2572_v18 = vsel %vm2487_vm11, %v2571_v39, %v6062_v62 }
 0x188   :  { %2709 = vst [vmem:[%s6750_s1 + $0x500] sm:$0xff] %v6169_v17  ;;  %v2564_v41 = vor.u32 4788187, %v2563_v30  ;;  %v2567_v43 = vcvt.s32.f32 %v2560_v10  ;;  %v2763_v13 = vsel %vm2753_vm5, %v2749_v23, 1326507024  ;;  %2474 = vst [vmem:[%s6750_s1 + $0x488] sm:$0xff] %v6190_v28  ;;  %v2773_v15 = vmul.u32 %v6121_v47, %v2757_v27 }
 0x189   :  { %v2696_v51 = vmul.f32 0.008, %v6190_v28  ;;  %v2764_v37 = vsel %vm2752_vm4, %v2746_v22, %v2763_v13  ;;  %v6215_v46 = vmul.u32.u64.low %v6121_v47, %v2761_v63  ;;  %v6216_v55 = vmul.u32.u64.high %v6121_v47, %v2761_v63, %v6215_v46 }
 0x18a   :  { %v2565_v42 = vand.u32 2147483647, %v2564_v41  ;;  %v2703_v26 = vadd.f32 %v2702_v52, %v2701_v16  ;;  %v2765_v21 = vsel %vm2751_vm3, %v2762_v57, %v2764_v37  ;;  %v3113_v62 = vsel %vm3111_vm7, %v6141_v34, %v3112_v2 }
 0x18b   :  { %v2697_v25 = vadd.f32 %v2696_v51, %v2695_v0  ;;  %v6227_v14 = vmul.u32.u64.low %v6121_v47, %v2765_v21  ;;  %v6228_v22 = vmul.u32.u64.high %v6121_v47, %v2765_v21, %v6227_v14  ;;  %vm3114_vm6 = vcmp.eq.s32.totalorder %v6115_v11, 2 }
 0x18c   :  { %v2568_v61 = vmul.f32 %v2567_v43, %v2565_v42  ;;  %v6231_v58 = vadd.f32 0.007, %v2703_v26  ;;  %v2776_v39 = vadd.s32 1, %v6216_v55  ;;  %v3115_v6 = vxor.u32 2147483648, %v6141_v34 }
 0x18d   :  { %v6239_v20 = vadd.f32 0.002, %v2697_v25  ;;  %v3212_v44 = vadd.s32 3, %v6091_v8  ;;  %vm3108_vm12 = vweird.f32 %v3808_v32  ;;  %v2574_v19 = vsel %vm6173_vm13, 0, %v2572_v18 }
 0x18e   :  { %v2569_v47 = vxor.u32 2147483648, %v2568_v61  ;;  %2712 = vst [vmem:[%s6750_s1 + $0x518] sm:$0xff] %v6231_v58  ;;  %vm2775_vm14 = vc.u32 %v6228_v22, %v6215_v46  ;;  %v3116_v8 = vsel %vm3114_vm6, %v3115_v6, %v5873_v36  ;;  %v3830_v24 = vmov 0.011  }
 0x18f   :  { %2708 = vst [vmem:[%s6750_s1 + $0x4f8] sm:$0xff] %v6239_v20  ;;  %v3213_v56 = vand.u32 3, %v3212_v44  ;;  %3231 = vst [vmem:[%s6750_s1 + $0x638] sm:$0xff] %v3830_v24  ;;  %v3831_v60 = vmov 0.054   ;;  %v2777_v54 = vsel %vm2775_vm14, %v2776_v39, %v6216_v55  ;;  %v3117_v23 = vsel %vm3110_vm9, %v3113_v62, %v3116_v8  ;;  %v3809_v55 = vld [vmem:[%s6749_s0 + $0x38] sm:$0xff] }
 0x190   :  { %3235 = vst [vmem:[%s6750_s1 + $0x658] sm:$0xff] %v3831_v60  ;;  %v2570_v5 = vsel %vm2487_vm11, %v2569_v47, %v2568_v61  ;;  %v6271_v7 = vmul.f32 0.5, %v3808_v32  ;;  %v2778_v53 = vadd.s32 %v2777_v54, %v2773_v15  ;;  %v6277_v12 = vsel %vm3108_vm12, nan, %v3117_v23 }
 0x191   :  { %v2573_v29 = vsel %vm6173_vm13, %v5578_v59, %v2570_v5  ;;  %vm3214_vm15 = vcmp.lt.s32.totalorder %v3213_v56, 2  ;;  %3229 = vst [vmem:[%s6750_s1 + $0x628] sm:$0xff] %v6277_v12  ;;  %3234 = vst [vmem:[%s6750_s1 + $0x650] sm:$0xff] %v6277_v12  ;;  %vm3215_vm8 = vcmp.eq.s32.totalorder %v3213_v56, 0  ;;  %vm3218_vm0 = vcmp.eq.s32.totalorder %v3213_v56, 2 }
 0x192   :  { %3793 = vcosq.f32 %v2573_v29  ;;  %3462 = vst [vmem:[%s6750_s1 + $0x688] sm:$0xff] %v6277_v12  ;;  %v2779_v59 = vadd.s32 536870912, %v2778_v53  ;;  %v3217_v11 = vsel %vm3215_vm8, %v6141_v34, %v3112_v2  ;;  %v3220_v9 = vsel %vm3218_vm0, %v3115_v6, %v5873_v36 }
 0x193   :  { %3795 = vsinq.f32 %v2573_v29  ;;  %v2681_v50 = vadd.s32 3, %v2574_v19  ;;  %v3221_v45 = vsel %vm3214_vm15, %v3217_v11, %v3220_v9  ;;  %v3240_v27 = vand.u32 2139095040, %v6271_v7 }
 0x194   :  { %v6296_v63 = vshrl.u32 %v2779_v59, 30  ;;  %v6299_v4 = vsel %vm3108_vm12, nan, %v3221_v45  ;;  %v3447_v2 = vmul.f32 0.012, %v6277_v12  ;;  %v3454_v0 = vmul.f32 0.0555, %v6277_v12 }
 0x195   :  { %v6302_v10 = vsub.f32 0.0, %v6299_v4  ;;  %3233 = vst [vmem:[%s6750_s1 + $0x648] sm:$0xff] %v6299_v4  ;;  %3466 = vst [vmem:[%s6750_s1 + $0x6a8] sm:$0xff] %v6299_v4  ;;  %v3241_v36 = vshrl.u32 %v3240_v27, 23  ;;  %v3453_v34 = vmul.f32 0.012, %v6299_v4  ;;  %vm2577_vm1 = vweird.f32 %v3809_v55 }
 0x196   :  { %v2781_v30 = vshll.u32 %v6296_v63, 30  ;;  %v2578_v16 = vand.u32 3, %v2574_v19  ;;  %v2682_v57 = vand.u32 3, %v2681_v50  ;;  %v3237_v13 = vand.u32 2147483647, %v6271_v7 }
 0x197   :  { %3230 = vst [vmem:[%s6750_s1 + $0x630] sm:$0xff] %v6302_v10  ;;  %v3663_v41 = vadd.s32 4294967169, %v3241_v36  ;;  %v3448_v43 = vmul.f32 0.0555, %v6302_v10  ;;  %v3455_v51 = vadd.f32 %v3454_v0, %v3453_v34  ;;  %v2932_v6 = vmul.f32 0.006, %v6165_v1 }
 0x198   :  { %v6321_v52 = vsub.s32 %v2778_v53, %v2781_v30  ;;  %vm2580_vm2 = vcmp.eq.s32.totalorder %v2578_v16, 0  ;;  %vm2583_vm3 = vcmp.eq.s32.totalorder %v2578_v16, 2  ;;  %vm2687_vm4 = vcmp.eq.s32.totalorder %v2682_v57, 2 }
 0x199   :  { %v3449_v37 = vadd.f32 %v3448_v43, %v3447_v2  ;;  %v3247_v18 = vadd.s32 1, %v3663_v41  ;;  %v6328_v26 = vadd.f32 0.054, %v3455_v51  ;;  %vm2684_vm5 = vcmp.eq.s32.totalorder %v2682_v57, 0 }
 0x19a   :  { %v2784_v42 = vsub.s32 0, %v6321_v52  ;;  %v6335_v62 = vand.u32 8388607, %v3237_v13  ;;  %vm2579_vm10 = vcmp.lt.s32.totalorder %v2578_v16, 2  ;;  %vm2683_vm11 = vcmp.lt.s32.totalorder %v2682_v57, 2 }
 0x19b   :  { %v6330_v25 = vadd.f32 0.011, %v3449_v37  ;;  %3468 = vst [vmem:[%s6750_s1 + $0x6b8] sm:$0xff] %v6328_v26  ;;  %vm3248_vm7 = vcmp.gt.s32.totalorder %v3247_v18, 0  ;;  %v2774_v56 = vadd.s32 %v6215_v46, %v6228_v22  ;;  %v2944_v24 = vmul.f32 0.006, %v6169_v17 }
 0x19c   :  { %v3794_v21 = vpop.eup %3793  ;;  %v3648_v61 = vmin.u32 %v2784_v42, %v6321_v52  ;;  %v3245_v23 = vor.u32 8388608, %v6335_v62  ;;  %v2804_v59 = vsub.s32 4, %v6296_v63  ;;  %v3249_v11 = vsel %vm3248_vm7, %v3247_v18, 0 }
 0x19d   :  { %v3796_v14 = vpop.eup %3795  ;;  %v2584_v15 = vxor.u32 2147483648, %v3794_v21  ;;  %3464 = vst [vmem:[%s6750_s1 + $0x698] sm:$0xff] %v6330_v25  ;;  %v6383_v36 = vshrl.u32 %v3249_v11, 5  ;;  %v3251_v37 = vand.u32 31, %v3249_v11  ;;  %vm2720_vm13 = vcmp.lt.s32.totalorder %v5921_v49, 0 }
 0x19e   :  { %v2581_v39 = vxor.u32 2147483648, %v3796_v14  ;;  %v2786_v32 = vclz %v3648_v61  ;;  %vm6427_vm6 = vcmp.le.f32.partialorder %v2718_v3, 0.7853982 }
 0x19f   :  { %v2585_v44 = vsel %vm2583_vm3, %v2584_v15, %v3796_v14  ;;  %v2689_v47 = vsel %vm2687_vm4, %v2584_v15, %v3796_v14  ;;  %vm3269_vm12 = vcmp.lt.s32.totalorder %v6383_v36, 1  ;;  %v3266_v11 = vshll.u32 %v3820_v40, %v3251_v37 }
 0x1a0   :  { %v2582_v19 = vsel %vm2580_vm2, %v3794_v21, %v2581_v39  ;;  %v2686_v8 = vsel %vm2684_vm5, %v3794_v21, %v2581_v39  ;;  %v3649_v54 = vadd.s32 4294967294, %v2786_v32  ;;  %vm3270_vm14 = vcmp.lt.s32.totalorder %v6383_v36, 2 }
 0x1a1   :  { %v2586_v60 = vsel %vm2579_vm10, %v2582_v19, %v2585_v44  ;;  %v2690_v5 = vsel %vm2683_vm11, %v2686_v8, %v2689_v47  ;;  %v2805_v44 = vsel %vm2720_vm13, %v2804_v59, %v6296_v63  ;;  %v3285_v47 = vshll.u32 %v3245_v23, 8 }
 0x1a2   :  { %v6352_v29 = vsel %vm2577_vm1, nan, %v2586_v60  ;;  %v6355_v53 = vsel %vm2577_vm1, nan, %v2690_v5  ;;  %vm3650_vm9 = vcmp.lt.s32.totalorder %v3649_v54, 0  ;;  %v3252_v8 = vsub.s32 32, %v3251_v37 }
 0x1a3   :  { %v6360_v9 = vmul.f32 %v6352_v29, %v6190_v28  ;;  %2715 = vst [vmem:[%s6750_s1 + $0x530] sm:$0xff] %v6352_v29  ;;  %v6367_v46 = vsub.f32 0.0, %v6355_v53  ;;  %2714 = vst [vmem:[%s6750_s1 + $0x528] sm:$0xff] %v6355_v53  ;;  %v6379_v22 = vmul.f32 %v6352_v29, %v6165_v1  ;;  %v2789_v50 = vsel %vm3650_vm9, 0, %v3649_v54 }
 0x1a4   :  { %2965 = vst [vmem:[%s6750_s1 + $0x588] sm:$0xff] %v6355_v53  ;;  %v2952_v45 = vmul.f32 0.009, %v6355_v53  ;;  %v2953_v27 = vmul.f32 0.051, %v6352_v29  ;;  %v2790_v30 = vsub.s32 32, %v2789_v50  ;;  %v2791_v0 = vshll.u32 %v6321_v52, %v2789_v50 }
 0x1a5   :  { %2706 = vst [vmem:[%s6750_s1 + $0x4e8] sm:$0xff] %v6360_v9  ;;  %2957 = vst [vmem:[%s6750_s1 + $0x548] sm:$0xff] %v6360_v9  ;;  %v6395_v2 = vmul.f32 %v6367_v46, %v6190_v28  ;;  %v6407_v34 = vmul.f32 %v6367_v46, %v6165_v1  ;;  %v2794_v16 = vsub.s32 4294967266, %v2789_v50  ;;  %v2933_v28 = vmul.f32 0.009, %v6360_v9 }
 0x1a6   :  { %2710 = vst [vmem:[%s6750_s1 + $0x508] sm:$0xff] %v6379_v22  ;;  %2961 = vst [vmem:[%s6750_s1 + $0x568] sm:$0xff] %v6379_v22  ;;  %v2945_v57 = vmul.f32 0.009, %v6379_v22  ;;  %v2954_v41 = vadd.f32 %v2953_v27, %v2952_v45  ;;  %v2792_v43 = vshrl.u32 %v2774_v56, %v2790_v30  ;;  %v3254_v56 = vshll.u32 %v3815_v31, %v3251_v37 }
 0x1a7   :  { %2707 = vst [vmem:[%s6750_s1 + $0x4f0] sm:$0xff] %v6395_v2  ;;  %2711 = vst [vmem:[%s6750_s1 + $0x510] sm:$0xff] %v6407_v34  ;;  %v2935_v51 = vmul.f32 0.051, %v6395_v2  ;;  %v2947_v52 = vmul.f32 0.051, %v6407_v34  ;;  %v2934_v42 = vadd.f32 %v2933_v28, %v2932_v6  ;;  %v3260_v60 = vshll.u32 %v3817_v35, %v3251_v37 }
 0x1a8   :  { %v2795_v55 = vadd.s32 127, %v2794_v16  ;;  %v2946_v18 = vadd.f32 %v2945_v57, %v2944_v24  ;;  %v6422_v21 = vadd.f32 0.0975, %v2954_v41  ;;  %v2793_v14 = vor.u32 %v2792_v43, %v2791_v0 }
 0x1a9   :  { %v2936_v62 = vadd.f32 %v2935_v51, %v2934_v42  ;;  %v3257_v24 = vshll.u32 %v3816_v33, %v3251_v37  ;;  %v3263_v5 = vshll.u32 %v3819_v38, %v3251_v37  ;;  %v3258_v54 = vshrl.u32 %v3817_v35, %v3252_v8 }
 0x1aa   :  { %v2796_v61 = vshll.u32 %v2795_v55, 23  ;;  %v2948_v39 = vadd.f32 %v2947_v52, %v2946_v18  ;;  %2967 = vst [vmem:[%s6750_s1 + $0x598] sm:$0xff] %v6422_v21  ;;  %v2800_v6 = vcvt.s32.f32 %v2793_v14  ;;  %v3261_v23 = vshrl.u32 %v3819_v38, %v3252_v8 }
 0x1ab   :  { %v6440_v32 = vadd.f32 %v2936_v62, %v6239_v20  ;;  %v3255_v20 = vshrl.u32 %v3816_v33, %v3252_v8  ;;  %v3264_v59 = vshrl.u32 %v3820_v40, %v3252_v8  ;;  %v3267_v50 = vshrl.u32 %v3821_v48, %v3252_v8 }
 0x1ac   :  { %v2797_v3 = vor.u32 4788187, %v2796_v61  ;;  %v6443_v19 = vadd.f32 %v2948_v39, %v6231_v58  ;;  %v3253_v58 = vshrl.u32 %v3815_v31, %v3252_v8  ;;  %v3259_v30 = vor.u32 %v3258_v54, %v3257_v24 }
 0x1ad   :  { %2959 = vst [vmem:[%s6750_s1 + $0x558] sm:$0xff] %v6440_v32  ;;  %v3256_v27 = vor.u32 %v3255_v20, %v3254_v56  ;;  %v3262_v0 = vor.u32 %v3261_v23, %v3260_v60  ;;  %v3265_v16 = vor.u32 %v3264_v59, %v3263_v5  ;;  %v3268_v31 = vor.u32 %v3267_v50, %v3266_v11 }
 0x1ae   :  { %v2798_v63 = vand.u32 2147483647, %v2797_v3  ;;  %2963 = vst [vmem:[%s6750_s1 + $0x578] sm:$0xff] %v6443_v19  ;;  %vm3271_vm15 = vcmp.lt.s32.totalorder %v6383_v36, 3  ;;  %vm3272_vm8 = vcmp.lt.s32.totalorder %v6383_v36, 4  ;;  %v2807_v55 = vsel %vm6427_vm6, 0, %v2805_v44 }
 0x1af   :  { %v3273_v35 = vsel %vm3269_vm12, %v3253_v58, %v3256_v27  ;;  %v3277_v38 = vsel %vm3269_vm12, %v3256_v27, %v3259_v30  ;;  %v3274_v40 = vsel %vm3272_vm8, %v3262_v0, 2102212464  ;;  %v3278_v48 = vsel %vm3272_vm8, %v3265_v16, 920167782 }
 0x1b0   :  { %v2801_v45 = vmul.f32 %v2800_v6, %v2798_v63  ;;  %v3281_v28 = vsel %vm3269_vm12, %v3259_v30, %v3262_v0  ;;  %v3282_v57 = vsel %vm3272_vm8, %v3268_v31, 1326507024  ;;  %v3275_v43 = vsel %vm3271_vm15, %v3259_v30, %v3274_v40 }
 0x1b1   :  { %v3279_v51 = vsel %vm3271_vm15, %v3262_v0, %v3278_v48  ;;  %v3283_v52 = vsel %vm3271_vm15, %v3265_v16, %v3282_v57  ;;  %v3276_v62 = vsel %vm3270_vm14, %v3273_v35, %v3275_v43  ;;  %v2914_v15 = vadd.s32 3, %v2807_v55 }
 0x1b2   :  { %v2802_v33 = vxor.u32 2147483648, %v2801_v45  ;;  %v3280_v42 = vsel %vm3270_vm14, %v3277_v38, %v3279_v51  ;;  %v3284_v18 = vsel %vm3270_vm14, %v3281_v28, %v3283_v52  ;;  %v3292_v44 = vmul.u32 %v3285_v47, %v3276_v62 }
 0x1b3   :  { %v6484_v14 = vmul.u32.u64.low %v3285_v47, %v3284_v18  ;;  %v6485_v61 = vmul.u32.u64.high %v3285_v47, %v3284_v18, %v6484_v14  ;;  %v6489_v39 = vmul.u32.u64.low %v3285_v47, %v3280_v42  ;;  %v6490_v6 = vmul.u32.u64.high %v3285_v47, %v3280_v42, %v6489_v39 }
 0x1b4   :  { %v2803_v41 = vsel %vm2720_vm13, %v2802_v33, %v2801_v45  ;;  %v2811_v8 = vand.u32 3, %v2807_v55  ;;  %v2915_v56 = vand.u32 3, %v2914_v15  ;;  %vm2810_vm1 = vweird.f32 %v5921_v49 }
 0x1b5   :  { %v2806_v37 = vsel %vm6427_vm6, %v5921_v49, %v2803_v41  ;;  %vm3294_vm0 = vc.u32 %v6485_v61, %v6489_v39  ;;  %v3295_v3 = vadd.s32 1, %v6490_v6  ;;  %v2969_v20 = vmul.f32 %v6360_v9, %v6355_v53 }
 0x1b6   :  { %3797 = vcosq.f32 %v2806_v37  ;;  %vm2812_vm2 = vcmp.lt.s32.totalorder %v2811_v8, 2  ;;  %vm2816_vm3 = vcmp.eq.s32.totalorder %v2811_v8, 2  ;;  %vm2920_vm4 = vcmp.eq.s32.totalorder %v2915_v56, 2 }
 0x1b7   :  { %3799 = vsinq.f32 %v2806_v37  ;;  %v3296_v24 = vsel %vm3294_vm0, %v3295_v3, %v6490_v6  ;;  %vm2813_vm5 = vcmp.eq.s32.totalorder %v2811_v8, 0  ;;  %vm2916_vm10 = vcmp.lt.s32.totalorder %v2915_v56, 2 }
 0x1b8   :  { %v3297_v60 = vadd.s32 %v3296_v24, %v3292_v44  ;;  %vm2917_vm11 = vcmp.eq.s32.totalorder %v2915_v56, 0  ;;  %v2993_v54 = vmul.f32 %v6355_v53, %v6355_v53  ;;  %v2972_v50 = vmul.f32 %v6360_v9, %v6352_v29 }
 0x1b9   :  { %v2975_v45 = vmul.f32 0.01, %v6360_v9  ;;  %v2981_v0 = vmul.f32 %v6379_v22, %v6355_v53  ;;  %v2984_v35 = vmul.f32 %v6379_v22, %v6352_v29  ;;  %v2987_v38 = vmul.f32 0.01, %v6379_v22 }
 0x1ba   :  { %v3298_v5 = vadd.s32 536870912, %v3297_v60  ;;  %v2996_v48 = vmul.f32 %v6355_v53, %v6352_v29  ;;  %vm3239_vm9 = vcmp.lt.s32.totalorder %v6271_v7, 0  ;;  %vm3238_vm13 = vcmp.le.f32.partialorder %v3237_v13, 0.7853982 }
 0x1bc   :  { %v6502_v23 = vshrl.u32 %v3298_v5, 30 }
 0x1be   :  { %v3300_v16 = vshll.u32 %v6502_v23, 30 }
 0x1c0   :  { %v3798_v36 = vpop.eup %3797  ;;  %v6520_v28 = vsub.s32 %v3297_v60, %v3300_v16 }
 0x1c1   :  { %v3800_v63 = vpop.eup %3799  ;;  %v2817_v47 = vxor.u32 2147483648, %v3798_v36 }
 0x1c2   :  { %v2814_v58 = vxor.u32 2147483648, %v3800_v63  ;;  %v3303_v6 = vsub.s32 0, %v6520_v28 }
 0x1c3   :  { %v2818_v59 = vsel %vm2816_vm3, %v2817_v47, %v3800_v63  ;;  %v2922_v11 = vsel %vm2920_vm4, %v2817_v47, %v3800_v63 }
 0x1c4   :  { %v2815_v27 = vsel %vm2813_vm5, %v3798_v36, %v2814_v58  ;;  %v2919_v30 = vsel %vm2917_vm11, %v3798_v36, %v2814_v58  ;;  %v3664_v56 = vmin.u32 %v3303_v6, %v6520_v28 }
 0x1c5   :  { %v2819_v31 = vsel %vm2812_vm2, %v2815_v27, %v2818_v59  ;;  %v2923_v33 = vsel %vm2916_vm10, %v2919_v30, %v2922_v11 }
 0x1c6   :  { %v2820_v40 = vsel %vm2810_vm1, nan, %v2819_v31  ;;  %v2924_v9 = vsel %vm2810_vm1, nan, %v2923_v33  ;;  %vm3329_vm1 = vweird.f32 %v6271_v7 }
 0x1c7   :  { %v2925_v57 = vsub.f32 0.0, %v2924_v9  ;;  %v2926_v41 = vmul.f32 %v2820_v40, %v6165_v1  ;;  %v2929_v43 = vmul.f32 %v2924_v9, %v6165_v1  ;;  %v2930_v51 = vmul.f32 %v2820_v40, %v6395_v2 }
 0x1c8   :  { %v2938_v22 = vmul.f32 %v2820_v40, %v6169_v17  ;;  %v2941_v52 = vmul.f32 %v2924_v9, %v6169_v17  ;;  %v2942_v37 = vmul.f32 %v2820_v40, %v6407_v34  ;;  %v2951_v49 = vmul.f32 %v2820_v40, %v6352_v29 }
 0x1c9   :  { %v2927_v55 = vmul.f32 %v2925_v57, %v6395_v2  ;;  %v2931_v42 = vadd.f32 %v2930_v51, %v2929_v43  ;;  %v2939_v18 = vmul.f32 %v2925_v57, %v6407_v34  ;;  %v2950_v14 = vmul.f32 %v2925_v57, %v6352_v29 }
 0x1ca   :  { %v2943_v62 = vadd.f32 %v2942_v37, %v2941_v52  ;;  %2966 = vst [vmem:[%s6750_s1 + $0x590] sm:$0xff] %v2951_v49  ;;  %3014 = vst [vmem:[%s6750_s1 + $0x5f0] sm:$0xff] %v2951_v49  ;;  %v2999_v1 = vmul.f32 0.01, %v6355_v53  ;;  %v3001_v17 = vmul.f32 0.0525, %v2951_v49  ;;  %v3305_v40 = vclz %v3664_v56 }
 0x1cb   :  { %v2928_v2 = vadd.f32 %v2927_v55, %v2926_v41  ;;  %2958 = vst [vmem:[%s6750_s1 + $0x550] sm:$0xff] %v2931_v42  ;;  %3006 = vst [vmem:[%s6750_s1 + $0x5b0] sm:$0xff] %v2931_v42  ;;  %v2940_v34 = vadd.f32 %v2939_v18, %v2938_v22  ;;  %v2977_v15 = vmul.f32 0.0525, %v2931_v42  ;;  %v2992_v53 = vmul.f32 %v2950_v14, %v6352_v29 }
 0x1cc   :  { %2964 = vst [vmem:[%s6750_s1 + $0x580] sm:$0xff] %v2950_v14  ;;  %2962 = vst [vmem:[%s6750_s1 + $0x570] sm:$0xff] %v2943_v62  ;;  %v2989_v44 = vmul.f32 0.0525, %v2943_v62  ;;  %v2995_v3 = vmul.f32 %v2950_v14, %v6367_v46  ;;  %v2998_v8 = vmul.f32 0.008, %v2950_v14 }
 0x1cd   :  { %3010 = vst [vmem:[%s6750_s1 + $0x5d0] sm:$0xff] %v2943_v62  ;;  %2956 = vst [vmem:[%s6750_s1 + $0x540] sm:$0xff] %v2928_v2  ;;  %v2968_v24 = vmul.f32 %v2928_v2, %v6352_v29  ;;  %v2971_v60 = vmul.f32 %v2928_v2, %v6367_v46  ;;  %v2974_v36 = vmul.f32 0.008, %v2928_v2  ;;  %v2980_v5 = vmul.f32 %v2940_v34, %v6352_v29 }
 0x1ce   :  { %2960 = vst [vmem:[%s6750_s1 + $0x560] sm:$0xff] %v2940_v34  ;;  %v2983_v63 = vmul.f32 %v2940_v34, %v6367_v46  ;;  %v2986_v47 = vmul.f32 0.008, %v2940_v34  ;;  %v2994_v58 = vadd.f32 %v2993_v54, %v2992_v53  ;;  %v2997_v59 = vadd.f32 %v2996_v48, %v2995_v3 }
 0x1cf   :  { %v2970_v11 = vadd.f32 %v2969_v20, %v2968_v24  ;;  %v2973_v27 = vadd.f32 %v2972_v50, %v2971_v60  ;;  %v2976_v30 = vadd.f32 %v2975_v45, %v2974_v36  ;;  %v2982_v16 = vadd.f32 %v2981_v0, %v2980_v5 }
 0x1d0   :  { %v2985_v31 = vadd.f32 %v2984_v35, %v2983_v63  ;;  %v2988_v33 = vadd.f32 %v2987_v38, %v2986_v47  ;;  %3012 = vst [vmem:[%s6750_s1 + $0x5e0] sm:$0xff] %v2994_v58  ;;  %3013 = vst [vmem:[%s6750_s1 + $0x5e8] sm:$0xff] %v2997_v59  ;;  %v3000_v29 = vadd.f32 %v2999_v1, %v2998_v8  ;;  %v3665_v50 = vadd.s32 4294967294, %v3305_v40 }
 0x1d1   :  { %3004 = vst [vmem:[%s6750_s1 + $0x5a0] sm:$0xff] %v2970_v11  ;;  %3005 = vst [vmem:[%s6750_s1 + $0x5a8] sm:$0xff] %v2973_v27  ;;  %v2978_v46 = vadd.f32 %v2977_v15, %v2976_v30  ;;  %v3293_v38 = vadd.s32 %v6489_v39, %v6485_v61  ;;  %v3323_v22 = vsub.s32 4, %v6502_v23  ;;  %v3474_v53 = vmul.f32 %v6299_v4, %v6277_v12 }
 0x1d2   :  { %3008 = vst [vmem:[%s6750_s1 + $0x5c0] sm:$0xff] %v2982_v16  ;;  %3009 = vst [vmem:[%s6750_s1 + $0x5c8] sm:$0xff] %v2985_v31  ;;  %v2990_v20 = vadd.f32 %v2989_v44, %v2988_v33  ;;  %v3002_v54 = vadd.f32 %v3001_v17, %v3000_v29  ;;  %vm3666_vm7 = vcmp.lt.s32.totalorder %v3665_v50, 0  ;;  %v3477_v8 = vmul.f32 %v6277_v12, %v6277_v12 }
 0x1d3   :  { %v2979_v45 = vadd.f32 %v2978_v46, %v6440_v32  ;;  %v3308_v9 = vsel %vm3666_vm7, 0, %v3665_v50  ;;  %v3324_v49 = vsel %vm3239_vm9, %v3323_v22, %v6502_v23  ;;  %v3480_v56 = vmul.f32 0.013, %v6277_v12 }
 0x1d4   :  { %v2991_v0 = vadd.f32 %v2990_v20, %v6443_v19  ;;  %v3003_v35 = vadd.f32 %v3002_v54, %v6422_v21  ;;  %v3309_v32 = vsub.s32 32, %v3308_v9  ;;  %v3310_v21 = vshll.u32 %v6520_v28, %v3308_v9 }
 0x1d5   :  { %3007 = vst [vmem:[%s6750_s1 + $0x5b8] sm:$0xff] %v2979_v45  ;;  %v3313_v19 = vsub.s32 4294967266, %v3308_v9  ;;  %v3326_v42 = vsel %vm3238_vm13, 0, %v3324_v49  ;;  %v3486_v36 = vmul.f32 %v6299_v4, %v6299_v4 }
 0x1d6   :  { %3011 = vst [vmem:[%s6750_s1 + $0x5d8] sm:$0xff] %v2991_v0  ;;  %3015 = vst [vmem:[%s6750_s1 + $0x5f8] sm:$0xff] %v3003_v35  ;;  %v3311_v48 = vshrl.u32 %v3293_v38, %v3309_v32  ;;  %v3433_v18 = vadd.s32 3, %v3326_v42  ;;  %v3330_v14 = vand.u32 3, %v3326_v42 }
 0x1d7   :  { %v3314_v61 = vadd.s32 127, %v3313_v19 }
 0x1d8   :  { %v3312_v39 = vor.u32 %v3311_v48, %v3310_v21  ;;  %v3434_v62 = vand.u32 3, %v3433_v18  ;;  %vm3335_vm6 = vcmp.eq.s32.totalorder %v3330_v14, 2  ;;  %vm3332_vm14 = vcmp.eq.s32.totalorder %v3330_v14, 0 }
 0x1d9   :  { %v3315_v57 = vshll.u32 %v3314_v61, 23  ;;  %vm3331_vm8 = vcmp.lt.s32.totalorder %v3330_v14, 2 }
 0x1da   :  { %v3319_v43 = vcvt.s32.f32 %v3312_v39  ;;  %vm3439_vm12 = vcmp.eq.s32.totalorder %v3434_v62, 2  ;;  %vm3436_vm15 = vcmp.eq.s32.totalorder %v3434_v62, 0  ;;  %vm3435_vm0 = vcmp.lt.s32.totalorder %v3434_v62, 2 }
 0x1db   :  { %v3316_v41 = vor.u32 4788187, %v3315_v57 }
 0x1dd   :  { %v3317_v51 = vand.u32 2147483647, %v3316_v41 }
 0x1df   :  { %v3320_v52 = vmul.f32 %v3319_v43, %v3317_v51 }
 0x1e1   :  { %v3321_v37 = vxor.u32 2147483648, %v3320_v52 }
 0x1e3   :  { %v3322_v28 = vsel %vm3239_vm9, %v3321_v37, %v3320_v52 }
 0x1e4   :  { %v3325_v55 = vsel %vm3238_vm13, %v6271_v7, %v3322_v28  ;;  %v3491_v7 = vmul.f32 0.013, %v6299_v4 }
 0x1e5   :  { %3801 = vcosq.f32 %v3325_v55 }
 0x1e6   :  { %3803 = vsinq.f32 %v3325_v55 }
 0x1ef   :  { %v3802_v1 = vpop.eup %3801 }
 0x1f0   :  { %v3804_v17 = vpop.eup %3803  ;;  %v3336_v6 = vxor.u32 2147483648, %v3802_v1 }
 0x1f1   :  { %v3333_v13 = vxor.u32 2147483648, %v3804_v17 }
 0x1f2   :  { %v3337_v23 = vsel %vm3335_vm6, %v3336_v6, %v3804_v17  ;;  %v3441_v2 = vsel %vm3439_vm12, %v3336_v6, %v3804_v17 }
 0x1f3   :  { %v3334_v34 = vsel %vm3332_vm14, %v3802_v1, %v3333_v13  ;;  %v3438_v15 = vsel %vm3436_vm15, %v3802_v1, %v3333_v13 }
 0x1f4   :  { %v3338_v44 = vsel %vm3331_vm8, %v3334_v34, %v3337_v23  ;;  %v3442_v3 = vsel %vm3435_vm0, %v3438_v15, %v3441_v2 }
 0x1f5   :  { %v3339_v24 = vsel %vm3329_vm1, nan, %v3338_v44  ;;  %v3443_v60 = vsel %vm3329_vm1, nan, %v3442_v3 }
 0x1f6   :  { %v6617_v5 = vmul.f32 %v3339_v24, %v6302_v10  ;;  %v6620_v63 = vmul.f32 %v3339_v24, %v6277_v12  ;;  %3457 = vst [vmem:[%s6750_s1 + $0x660] sm:$0xff] %v3339_v24  ;;  %3459 = vst [vmem:[%s6750_s1 + $0x670] sm:$0xff] %v3443_v60  ;;  %v3444_v47 = vsub.f32 0.0, %v3443_v60  ;;  %v3469_v58 = vmul.f32 0.006, %v3339_v24 }
 0x1f7   :  { %3498 = vst [vmem:[%s6750_s1 + $0x6d0] sm:$0xff] %v3443_v60  ;;  %v3470_v59 = vmul.f32 0.057, %v3443_v60  ;;  %v3509_v11 = vmul.f32 %v3443_v60, %v6299_v4  ;;  %v3512_v27 = vmul.f32 %v3443_v60, %v6277_v12  ;;  %v3517_v30 = vmul.f32 0.0585, %v3443_v60 }
 0x1f8   :  { %3463 = vst [vmem:[%s6750_s1 + $0x690] sm:$0xff] %v6617_v5  ;;  %3467 = vst [vmem:[%s6750_s1 + $0x6b0] sm:$0xff] %v6620_v63  ;;  %v3445_v16 = vmul.f32 %v3444_v47, %v6302_v10  ;;  %v3451_v31 = vmul.f32 %v3444_v47, %v6277_v12  ;;  %v3482_v33 = vmul.f32 0.057, %v6617_v5  ;;  %v3493_v29 = vmul.f32 0.057, %v6620_v63 }
 0x1f9   :  { %3496 = vst [vmem:[%s6750_s1 + $0x6c0] sm:$0xff] %v6620_v63  ;;  %3497 = vst [vmem:[%s6750_s1 + $0x6c8] sm:$0xff] %v6617_v5  ;;  %v3471_v40 = vadd.f32 %v3470_v59, %v3469_v58  ;;  %v3508_v46 = vmul.f32 %v6617_v5, %v6277_v12  ;;  %v3511_v20 = vmul.f32 %v6617_v5, %v6302_v10  ;;  %v3514_v54 = vmul.f32 0.008, %v6620_v63 }
 0x1fa   :  { %3502 = vst [vmem:[%s6750_s1 + $0x6f0] sm:$0xff] %v6617_v5  ;;  %3506 = vst [vmem:[%s6750_s1 + $0x710] sm:$0xff] %v6620_v63  ;;  %v3473_v50 = vmul.f32 %v3445_v16, %v6277_v12  ;;  %v3476_v45 = vmul.f32 %v3445_v16, %v6302_v10  ;;  %v3479_v0 = vmul.f32 0.006, %v3445_v16  ;;  %v3485_v35 = vmul.f32 %v3451_v31, %v6277_v12 }
 0x1fb   :  { %3543 = vst [vmem:[%s6750_s1 + $0x720] sm:$0xff] %v6620_v63  ;;  %3461 = vst [vmem:[%s6750_s1 + $0x680] sm:$0xff] %v3445_v16  ;;  %v3472_v38 = vadd.f32 0.006, %v3471_v40  ;;  %v3488_v9 = vmul.f32 %v3451_v31, %v6302_v10  ;;  %v3490_v32 = vmul.f32 0.006, %v3451_v31  ;;  %v3510_v21 = vadd.f32 %v3509_v11, %v3508_v46 }
 0x1fc   :  { %3465 = vst [vmem:[%s6750_s1 + $0x6a0] sm:$0xff] %v3451_v31  ;;  %v3475_v19 = vadd.f32 %v3474_v53, %v3473_v50  ;;  %v3478_v48 = vadd.f32 %v3477_v8, %v3476_v45  ;;  %v3481_v61 = vadd.f32 %v3480_v56, %v3479_v0  ;;  %v3487_v39 = vadd.f32 %v3486_v36, %v3485_v35 }
 0x1fd   :  { %3499 = vst [vmem:[%s6750_s1 + $0x6d8] sm:$0xff] %v3472_v38  ;;  %v3489_v57 = vadd.f32 %v3488_v9, %v3474_v53  ;;  %v3492_v41 = vadd.f32 %v3491_v7, %v3490_v32  ;;  %3544 = vst [vmem:[%s6750_s1 + $0x728] sm:$0xff] %v3510_v21  ;;  %v3513_v43 = vadd.f32 %v3512_v27, %v3511_v20  ;;  %v3515_v51 = vmul.f32 0.014, %v6617_v5 }
 0x1fe   :  { %3500 = vst [vmem:[%s6750_s1 + $0x6e0] sm:$0xff] %v3475_v19  ;;  %3547 = vst [vmem:[%s6750_s1 + $0x740] sm:$0xff] %v3475_v19  ;;  %v3483_v22 = vadd.f32 %v3482_v33, %v3481_v61  ;;  %v3520_v52 = vmul.f32 %v3478_v48, %v6277_v12  ;;  %v3521_v37 = vmul.f32 %v6617_v5, %v6299_v4  ;;  %v3525_v42 = vmul.f32 0.008, %v3475_v19 }
 0x1ff   :  { %3501 = vst [vmem:[%s6750_s1 + $0x6e8] sm:$0xff] %v3478_v48  ;;  %3504 = vst [vmem:[%s6750_s1 + $0x700] sm:$0xff] %v3487_v39  ;;  %v3523_v49 = vmul.f32 %v3478_v48, %v6302_v10  ;;  %v3494_v28 = vadd.f32 %v3493_v29, %v3492_v41  ;;  %v3516_v55 = vadd.f32 %v3515_v51, %v3514_v54  ;;  %v3526_v18 = vmul.f32 0.014, %v3478_v48 }
 0x200   :  { %3551 = vst [vmem:[%s6750_s1 + $0x760] sm:$0xff] %v3487_v39  ;;  %3505 = vst [vmem:[%s6750_s1 + $0x708] sm:$0xff] %v3489_v57  ;;  %v3484_v14 = vadd.f32 %v3483_v22, %v6330_v25  ;;  %v3522_v62 = vadd.f32 %v3521_v37, %v3520_v52  ;;  %v3528_v17 = vmul.f32 0.0585, %v6617_v5  ;;  %v3531_v2 = vmul.f32 %v3489_v57, %v6277_v12 }
 0x201   :  { %3545 = vst [vmem:[%s6750_s1 + $0x730] sm:$0xff] %v3513_v43  ;;  %v3524_v1 = vadd.f32 %v3523_v49, %v3508_v46  ;;  %v3495_v6 = vadd.f32 %v3494_v28, %v6328_v26  ;;  %v3518_v13 = vadd.f32 %v3517_v30, %v3516_v55  ;;  %v3527_v23 = vadd.f32 %v3526_v18, %v3525_v42 }
 0x202   :  { %3503 = vst [vmem:[%s6750_s1 + $0x6f8] sm:$0xff] %v3484_v14  ;;  %3548 = vst [vmem:[%s6750_s1 + $0x748] sm:$0xff] %v3522_v62  ;;  %v3532_v25 = vmul.f32 %v6620_v63, %v6299_v4  ;;  %v3534_v26 = vmul.f32 %v3489_v57, %v6302_v10  ;;  %v3535_v34 = vmul.f32 %v6620_v63, %v6277_v12  ;;  %v3537_v15 = vmul.f32 0.008, %v3487_v39 }
 0x203   :  { %3549 = vst [vmem:[%s6750_s1 + $0x750] sm:$0xff] %v3524_v1  ;;  %3507 = vst [vmem:[%s6750_s1 + $0x718] sm:$0xff] %v3495_v6  ;;  %v3519_v53 = vadd.f32 %v3518_v13, %v3472_v38  ;;  %v3529_v44 = vadd.f32 %v3528_v17, %v3527_v23  ;;  %v3538_v3 = vmul.f32 0.014, %v3489_v57  ;;  %v3540_v8 = vmul.f32 0.0585, %v6620_v63 }
 0x204   :  { %v3533_v56 = vadd.f32 %v3532_v25, %v3531_v2  ;;  %v3536_v24 = vadd.f32 %v3535_v34, %v3534_v26 }
 0x205   :  { %3546 = vst [vmem:[%s6750_s1 + $0x738] sm:$0xff] %v3519_v53  ;;  %v3530_v4 = vadd.f32 %v3529_v44, %v3484_v14  ;;  %v3539_v10 = vadd.f32 %v3538_v3, %v3537_v15 }
 0x206   :  { %3552 = vst [vmem:[%s6750_s1 + $0x768] sm:$0xff] %v3533_v56  ;;  %3553 = vst [vmem:[%s6750_s1 + $0x770] sm:$0xff] %v3536_v24 }
 0x207   :  { %3550 = vst [vmem:[%s6750_s1 + $0x758] sm:$0xff] %v3530_v4  ;;  %v3541_v12 = vadd.f32 %v3540_v8, %v3539_v10 }
 0x209   :  { %v3542_v60 = vadd.f32 %v3541_v12, %v3495_v6 }
 0x20b   :  { %3554 = vst [vmem:[%s6750_s1 + $0x778] sm:$0xff] %v3542_v60 }

</bundles_post_ra>
